<compile_context>
chip_gen: v5e
topology: v5e:2x2
jax: 0.10.0
libtpu: 0.0.40
codegen_flags: <defaults>
</compile_context>

<pallas_src>
import math

import jax
import jax.numpy as jnp
from jax import lax
from jax.experimental import pallas as pl
from jax.experimental.pallas import tpu as pltpu


# ----------------------------------------------------------------------------
# Fused ARFB kernel (channels-major: activations are (C, M), M = B*H*W)
# ----------------------------------------------------------------------------
def _make_arfb_kernel(H, W, C, G, B):
    HW = H * W
    M = B * HW

    def conv3x3(act, w_ref, b_ref, mask_ref):
        """3x3 conv, padding=1, channels-major.

        act:  (Cin, M) f32 value
        w_ref:(9, Cout, Cin) — tap-major weights, tap k = dh*3 + dw
        b_ref:(Cout, 1) or None
        mask_ref: (9, M) — 1.0 where the shifted tap is inside the image, else 0.
        Returns (Cout, M) f32.
        """
        acc = None
        for k in range(9):
            dh, dw = divmod(k, 3)
            off = (dh - 1) * W + (dw - 1)          # flat source offset for this tap
            if off == 0:
                tap = act                           # center tap: mask is all-ones
            else:
                # shifted[m] = act[m + off]  (wrap-around positions are masked out)
                tap = pltpu.roll(act, shift=(-off) % M, axis=1)
                tap = tap * mask_ref[k:k + 1, :]
            wk = w_ref[k]                           # (Cout, Cin), aligned leading-dim load
            contrib = jnp.dot(wk, tap, preferred_element_type=jnp.float32)
            acc = contrib if acc is None else acc + contrib
        if b_ref is not None:
            acc = acc + b_ref[...]                  # (Cout, 1) broadcast over lanes
        return acc

    def kernel(scal_ref, x_ref, mask_ref, pool_ref, bcast_ref,
               w1c_ref, b1c_ref, a1_ref, w1c1_ref, b1c1_ref,
               w2c_ref, b2c_ref, a2_ref, w2c1_ref, b2c1_ref,
               wal_ref, caw1_ref, cab1_ref, caw2_ref, cab2_ref,
               wl4_ref, o_ref):
        x = x_ref[...].astype(jnp.float32)                              # (C, M)

        # ---- ResidualUnits #1: w1*x + w2*conv1(PReLU(conv(x))) ----
        t = conv3x3(x, w1c_ref, b1c_ref, mask_ref)                      # (G, M)
        t = jnp.where(t > 0, t, a1_ref[...] * t)                        # PReLU (per-channel)
        y1 = conv3x3(t, w1c1_ref, b1c1_ref, mask_ref)                   # (C, M)
        x1 = scal_ref[0] * x + scal_ref[1] * y1

        # ---- ResidualUnits #2 ----
        t = conv3x3(x1, w2c_ref, b2c_ref, mask_ref)
        t = jnp.where(t > 0, t, a2_ref[...] * t)
        y2 = conv3x3(t, w2c1_ref, b2c1_ref, mask_ref)
        x2 = scal_ref[2] * x1 + scal_ref[3] * y2

        # ---- alise(cat([w2*x2, w3*x1], ch)) + ReLU ----
        # concat + Weight() scalars folded into CxC weight-block scales (cheap),
        # instead of scaling the full (C, M) activations.
        wA = scal_ref[4] * wal_ref[0]                                   # (C, C)
        wB = scal_ref[5] * wal_ref[1]                                   # (C, C)
        x4 = jnp.maximum(
            jnp.dot(wA, x2, preferred_element_type=jnp.float32)
            + jnp.dot(wB, x1, preferred_element_type=jnp.float32), 0.0)  # (C, M)

        # ---- CALayer: per-image global-avg-pool -> 1x1+ReLU -> 1x1 -> sigmoid -> gate ----
        # Pool and gate-broadcast done as matmuls against tiny constant matrices so the
        # whole layer stays on the MXU (no cross-lane reduces / 3-D reshapes).
        pooled = jnp.dot(x4, pool_ref[...], preferred_element_type=jnp.float32)   # (C, B)
        h = jnp.maximum(
            jnp.dot(caw1_ref[...], pooled, preferred_element_type=jnp.float32)
            + cab1_ref[...], 0.0)                                                  # (Cr, B)
        gate = jax.nn.sigmoid(
            jnp.dot(caw2_ref[...], h, preferred_element_type=jnp.float32)
            + cab2_ref[...])                                                       # (C, B)
        gate_full = jnp.dot(gate, bcast_ref[...], preferred_element_type=jnp.float32)  # (C, M)
        x5 = x4 * gate_full

        # ---- layer4: 3x3 conv (no bias) + ReLU ----
        y6 = jnp.maximum(conv3x3(x5, wl4_ref, None, mask_ref), 0.0)

        # ---- out = w4*x + w5*x6 ; lane-dense (C, M) store, M multiple of 128 ----
        o_ref[...] = (scal_ref[6] * x + scal_ref[7] * y6).astype(o_ref.dtype)

    return kernel


# ----------------------------------------------------------------------------
# Wrapper
# ----------------------------------------------------------------------------
def arfb_forward(p, x):
    """AdaptiveResidualFeatureBlock forward.  x: (B, H, W, C) NHWC -> NHWC."""
    B, H, W, C = x.shape
    G = C // 2
    HW = H * W
    M = B * HW
    Cr = p["atten"]["w1"].shape[1]

    # Learnable scalar Weight() values -> SMEM (read at runtime, never recompiled).
    scal = jnp.stack([p["layer1"]["w1"], p["layer1"]["w2"],
                      p["layer2"]["w1"], p["layer2"]["w2"],
                      p["w2"], p["w3"], p["w4"], p["w5"]]).astype(jnp.float32)

    # Channels-major activation slab: (C, B*H*W).
    x_cm = jnp.transpose(x, (3, 0, 1, 2)).reshape(C, M)

    # Per-tap boundary masks (9, M): 1.0 where the shifted source pixel is in-bounds.
    hh = jnp.arange(HW, dtype=jnp.int32) // W
    ww = jnp.arange(HW, dtype=jnp.int32) % W
    rows = []
    for dh in range(3):
        for dw in range(3):
            valid = ((hh + (dh - 1) >= 0) & (hh + (dh - 1) < H) &
                     (ww + (dw - 1) >= 0) & (ww + (dw - 1) < W))
            rows.append(jnp.tile(valid.astype(jnp.float32), B))
    mask = jnp.stack(rows, axis=0)                                      # (9, M)

    # Per-image average-pool / gate-broadcast matrices for the CALayer.
    img = jnp.repeat(jnp.arange(B, dtype=jnp.int32), HW)                # (M,)
    onehot = (img[:, None] == jnp.arange(B, dtype=jnp.int32)[None, :]).astype(jnp.float32)
    pool_mat = onehot * (1.0 / HW)                                      # (M, B)
    bcast_mat = onehot.T                                                # (B, M)

    def wconv(w):  # (3,3,Cin,Cout) HWIO -> (9, Cout, Cin), tap k = dh*3 + dw
        kh, kw, ci, co = w.shape
        return jnp.transpose(w, (0, 1, 3, 2)).reshape(kh * kw, co, ci)

    inputs = [
        scal,
        x_cm, mask, pool_mat, bcast_mat,
        wconv(p["layer1"]["wc"]), p["layer1"]["bc"].reshape(G, 1),
        p["layer1"]["alpha"].reshape(G, 1),
        wconv(p["layer1"]["wc1"]), p["layer1"]["bc1"].reshape(C, 1),
        wconv(p["layer2"]["wc"]), p["layer2"]["bc"].reshape(G, 1),
        p["layer2"]["alpha"].reshape(G, 1),
        wconv(p["layer2"]["wc1"]), p["layer2"]["bc1"].reshape(C, 1),
        jnp.stack([p["alise_w"][:C, :].T, p["alise_w"][C:, :].T]),      # (2, C, C)
        p["atten"]["w1"].T, p["atten"]["b1"].reshape(Cr, 1),
        p["atten"]["w2"].T, p["atten"]["b2"].reshape(C, 1),
        wconv(p["layer4_w"]),
    ]

    def vspec(shape):
        if len(shape) == 2:
            return pl.BlockSpec(shape, lambda i: (0, 0))
        assert len(shape) == 3
        return pl.BlockSpec(shape, lambda i: (0, 0, 0))

    in_specs = ([pl.BlockSpec(memory_space=pltpu.MemorySpace.SMEM)]
                + [vspec(a.shape) for a in inputs[1:]])
    out_specs = pl.BlockSpec((C, M), lambda i: (0, 0))

    y = pl.pallas_call(
        _make_arfb_kernel(H, W, C, G, B),
        out_shape=jax.ShapeDtypeStruct((C, M), x.dtype),
        grid=(1,),
        in_specs=in_specs,
        out_specs=out_specs,
    )(*inputs)

    return jnp.transpose(y.reshape(C, B, H, W), (1, 2, 3, 0))           # back to NHWC


# ----------------------------------------------------------------------------
# Pure-JAX reference (for correctness check)
# ----------------------------------------------------------------------------
def _conv3x3_ref(x, w, b=None):
    y = lax.conv_general_dilated(
        x, w, window_strides=(1, 1), padding="SAME",
        dimension_numbers=("NHWC", "HWIO", "NHWC"),
        precision=lax.Precision.HIGHEST)
    if b is not None:
        y = y + b
    return y


def arfb_ref(p, x):
    hp = lax.Precision.HIGHEST

    def residual_units(rp, v):
        t = _conv3x3_ref(v, rp["wc"], rp["bc"])
        t = jnp.where(t > 0, t, rp["alpha"] * t)            # PReLU
        y = _conv3x3_ref(t, rp["wc1"], rp["bc1"])
        return rp["w1"] * v + rp["w2"] * y

    x1 = residual_units(p["layer1"], x)
    x2 = residual_units(p["layer2"], x1)
    x3 = jnp.concatenate([p["w2"] * x2, p["w3"] * x1], axis=-1)
    x4 = jnp.maximum(jnp.einsum("bhwc,cd->bhwd", x3, p["alise_w"], precision=hp), 0.0)
    pooled = jnp.mean(x4, axis=(1, 2))                      # (B, C)
    h = jnp.maximum(jnp.dot(pooled, p["atten"]["w1"], precision=hp) + p["atten"]["b1"], 0.0)
    gate = jax.nn.sigmoid(jnp.dot(h, p["atten"]["w2"], precision=hp) + p["atten"]["b2"])
    x5 = x4 * gate[:, None, None, :]
    x6 = jnp.maximum(_conv3x3_ref(x5, p["layer4_w"]), 0.0)
    return p["w4"] * x + p["w5"] * x6


# ----------------------------------------------------------------------------
# Parameter init (deterministic; mirrors PyTorch default Conv2d/PReLU init shapes)
# ----------------------------------------------------------------------------
def _init_conv(key, kh, kw, cin, cout, bias=True):
    k1, k2 = jax.random.split(key)
    fan_in = cin * kh * kw
    bound = 1.0 / math.sqrt(fan_in)
    w = jax.random.uniform(k1, (kh, kw, cin, cout), jnp.float32, -bound, bound)
    b = jax.random.uniform(k2, (cout,), jnp.float32, -bound, bound) if bias else None
    return w, b


def _init_residual_units(key, n, g):
    k1, k2, k3 = jax.random.split(key, 3)
    wc, bc = _init_conv(k1, 3, 3, n, g)
    wc1, bc1 = _init_conv(k2, 3, 3, g, n)
    w1, w2 = jax.random.uniform(k3, (2,), jnp.float32, 0.9, 1.1)
    return dict(wc=wc, bc=bc, wc1=wc1, bc1=bc1,
                alpha=jnp.full((g,), 0.25, jnp.float32),    # PReLU default init
                w1=w1, w2=w2)


def _init_ca(key, c, reduction=16):
    k1, k2 = jax.random.split(key)
    cr = max(c // reduction, 1)
    w1, b1 = _init_conv(k1, 1, 1, c, cr)
    w2, b2 = _init_conv(k2, 1, 1, cr, c)
    return dict(w1=w1.reshape(c, cr), b1=b1, w2=w2.reshape(cr, c), b2=b2)


def init_arfb(key, n):
    ks = jax.random.split(key, 6)
    p = {}
    p["layer1"] = _init_residual_units(ks[0], n, n // 2)
    p["layer2"] = _init_residual_units(ks[1], n, n // 2)
    w4, _ = _init_conv(ks[2], 3, 3, n, n, bias=False)
    p["layer4_w"] = w4
    wa, _ = _init_conv(ks[3], 1, 1, 2 * n, n, bias=False)
    p["alise_w"] = wa.reshape(2 * n, n)
    p["atten"] = _init_ca(ks[4], n)
    w2, w3, w4s, w5 = jax.random.uniform(ks[5], (4,), jnp.float32, 0.9, 1.1)
    p["w2"], p["w3"], p["w4"], p["w5"] = w2, w3, w4s, w5
    return p


# ----------------------------------------------------------------------------
if __name__ == "__main__":
    key = jax.random.PRNGKey(0)
    kp, kx = jax.random.split(key)

    n_feats = 16                       # CALayer(reduction=16) requires n_feats >= 16
    B, H, W = 2, 16, 16
    params = init_arfb(kp, n_feats)
    x = jax.random.normal(kx, (B, H, W, n_feats), jnp.float32)   # NHWC

    fwd = jax.jit(arfb_forward)
    y = fwd(params, x)
    jax.block_until_ready(y)

    y_ref = arfb_ref(params, x)
    assert y.shape == (B, H, W, n_feats)
    assert bool(jnp.all(jnp.isfinite(y)))
    rel_err = float(jnp.max(jnp.abs(y - y_ref)) / (jnp.max(jnp.abs(y_ref)) + 1e-6))
    assert rel_err < 5e-2, f"relative error too large: {rel_err}"
    print("KERNEL_OK")
</pallas_src>

<mosaic_0001>
module attributes {stable_mosaic.version = 11 : i64} {
  func.func @kernel(%arg0: i32, %arg1: memref<8xf32, #tpu.memory_space<smem>>, %arg2: memref<16x512xf32, #tpu.memory_space<vmem>>, %arg3: memref<9x512xf32, #tpu.memory_space<vmem>>, %arg4: memref<512x2xf32, #tpu.memory_space<vmem>>, %arg5: memref<2x512xf32, #tpu.memory_space<vmem>>, %arg6: memref<9x8x16xf32, #tpu.memory_space<vmem>>, %arg7: memref<8x1xf32, #tpu.memory_space<vmem>>, %arg8: memref<8x1xf32, #tpu.memory_space<vmem>>, %arg9: memref<9x16x8xf32, #tpu.memory_space<vmem>>, %arg10: memref<16x1xf32, #tpu.memory_space<vmem>>, %arg11: memref<9x8x16xf32, #tpu.memory_space<vmem>>, %arg12: memref<8x1xf32, #tpu.memory_space<vmem>>, %arg13: memref<8x1xf32, #tpu.memory_space<vmem>>, %arg14: memref<9x16x8xf32, #tpu.memory_space<vmem>>, %arg15: memref<16x1xf32, #tpu.memory_space<vmem>>, %arg16: memref<2x16x16xf32, #tpu.memory_space<vmem>>, %arg17: memref<1x16xf32, #tpu.memory_space<vmem>>, %arg18: memref<1x1xf32, #tpu.memory_space<vmem>>, %arg19: memref<16x1xf32, #tpu.memory_space<vmem>>, %arg20: memref<16x1xf32, #tpu.memory_space<vmem>>, %arg21: memref<9x16x16xf32, #tpu.memory_space<vmem>>, %arg22: memref<16x512xf32, #tpu.memory_space<vmem>>) attributes {dimension_semantics = [#tpu.dimension_semantics<arbitrary>], iteration_bounds = array<i64: 1>, scalar_prefetch = 0 : i64, scratch_operands = 0 : i64, tpu.core_type = #tpu.core_type<tc>, window_params = [{transform_indices = @transform_0, window_bounds = array<i64: 8>}, {pipeline_mode = #tpu.pipeline_mode<synchronous>, transform_indices = @transform_1, window_bounds = array<i64: 16, 512>}, {pipeline_mode = #tpu.pipeline_mode<synchronous>, transform_indices = @transform_2, window_bounds = array<i64: 9, 512>}, {pipeline_mode = #tpu.pipeline_mode<synchronous>, transform_indices = @transform_3, window_bounds = array<i64: 512, 2>}, {pipeline_mode = #tpu.pipeline_mode<synchronous>, transform_indices = @transform_4, window_bounds = array<i64: 2, 512>}, {pipeline_mode = #tpu.pipeline_mode<synchronous>, transform_indices = @transform_5, window_bounds = array<i64: 9, 8, 16>}, {pipeline_mode = #tpu.pipeline_mode<synchronous>, transform_indices = @transform_6, window_bounds = array<i64: 8, 1>}, {pipeline_mode = #tpu.pipeline_mode<synchronous>, transform_indices = @transform_7, window_bounds = array<i64: 8, 1>}, {pipeline_mode = #tpu.pipeline_mode<synchronous>, transform_indices = @transform_8, window_bounds = array<i64: 9, 16, 8>}, {pipeline_mode = #tpu.pipeline_mode<synchronous>, transform_indices = @transform_9, window_bounds = array<i64: 16, 1>}, {pipeline_mode = #tpu.pipeline_mode<synchronous>, transform_indices = @transform_10, window_bounds = array<i64: 9, 8, 16>}, {pipeline_mode = #tpu.pipeline_mode<synchronous>, transform_indices = @transform_11, window_bounds = array<i64: 8, 1>}, {pipeline_mode = #tpu.pipeline_mode<synchronous>, transform_indices = @transform_12, window_bounds = array<i64: 8, 1>}, {pipeline_mode = #tpu.pipeline_mode<synchronous>, transform_indices = @transform_13, window_bounds = array<i64: 9, 16, 8>}, {pipeline_mode = #tpu.pipeline_mode<synchronous>, transform_indices = @transform_14, window_bounds = array<i64: 16, 1>}, {pipeline_mode = #tpu.pipeline_mode<synchronous>, transform_indices = @transform_15, window_bounds = array<i64: 2, 16, 16>}, {pipeline_mode = #tpu.pipeline_mode<synchronous>, transform_indices = @transform_16, window_bounds = array<i64: 1, 16>}, {pipeline_mode = #tpu.pipeline_mode<synchronous>, transform_indices = @transform_17, window_bounds = array<i64: 1, 1>}, {pipeline_mode = #tpu.pipeline_mode<synchronous>, transform_indices = @transform_18, window_bounds = array<i64: 16, 1>}, {pipeline_mode = #tpu.pipeline_mode<synchronous>, transform_indices = @transform_19, window_bounds = array<i64: 16, 1>}, {pipeline_mode = #tpu.pipeline_mode<synchronous>, transform_indices = @transform_20, window_bounds = array<i64: 9, 16, 16>}, {pipeline_mode = #tpu.pipeline_mode<synchronous>, transform_indices = @transform_21, window_bounds = array<i64: 16, 512>}]} {
    %c0 = arith.constant 0 : index
    %c0_0 = arith.constant 0 : index
    %0 = vector.load %arg2[%c0, %c0_0] : memref<16x512xf32, #tpu.memory_space<vmem>>, vector<16x512xf32>
    %c17_i32 = arith.constant 17 : i32
    %1 = tpu.dynamic_rotate %0 by %c17_i32 dim 1 : vector<16x512xf32>, i32 -> vector<16x512xf32>
    %c0_1 = arith.constant 0 : index
    %c0_2 = arith.constant 0 : index
    %2 = vector.load %arg3[%c0_1, %c0_2] : memref<9x512xf32, #tpu.memory_space<vmem>>, vector<1x512xf32>
    %3 = vector.broadcast %2 : vector<1x512xf32> to vector<16x512xf32>
    %4 = arith.mulf %1, %3 : vector<16x512xf32>
    %c0_3 = arith.constant 0 : index
    %c0_4 = arith.constant 0 : index
    %c0_5 = arith.constant 0 : index
    %5 = vector.load %arg6[%c0_3, %c0_4, %c0_5] : memref<9x8x16xf32, #tpu.memory_space<vmem>>, vector<1x8x16xf32>
    %6 = vector.shape_cast %5 : vector<1x8x16xf32> to vector<8x16xf32>
    %cst = arith.constant dense<0.000000e+00> : vector<8x512xf32>
    %7 = tpu.matmul %6, %4, %cst {dimension_numbers = #tpu.dot_dimension_numbers<[1], [0], [0], [1], [0, 0, 1, 1], [], []>} : vector<8x16xf32>, vector<16x512xf32>, vector<8x512xf32> -> vector<8x512xf32>
    %c16_i32 = arith.constant 16 : i32
    %8 = tpu.dynamic_rotate %0 by %c16_i32 dim 1 : vector<16x512xf32>, i32 -> vector<16x512xf32>
    %c1 = arith.constant 1 : index
    %c0_6 = arith.constant 0 : index
    %9 = vector.load %arg3[%c1, %c0_6] : memref<9x512xf32, #tpu.memory_space<vmem>>, vector<1x512xf32>
    %10 = vector.broadcast %9 : vector<1x512xf32> to vector<16x512xf32>
    %11 = arith.mulf %8, %10 : vector<16x512xf32>
    %c1_7 = arith.constant 1 : index
    %c0_8 = arith.constant 0 : index
    %c0_9 = arith.constant 0 : index
    %12 = vector.load %arg6[%c1_7, %c0_8, %c0_9] : memref<9x8x16xf32, #tpu.memory_space<vmem>>, vector<1x8x16xf32>
    %13 = vector.shape_cast %12 : vector<1x8x16xf32> to vector<8x16xf32>
    %cst_10 = arith.constant dense<0.000000e+00> : vector<8x512xf32>
    %14 = tpu.matmul %13, %11, %cst_10 {dimension_numbers = #tpu.dot_dimension_numbers<[1], [0], [0], [1], [0, 0, 1, 1], [], []>} : vector<8x16xf32>, vector<16x512xf32>, vector<8x512xf32> -> vector<8x512xf32>
    %15 = arith.addf %7, %14 : vector<8x512xf32>
    %c15_i32 = arith.constant 15 : i32
    %16 = tpu.dynamic_rotate %0 by %c15_i32 dim 1 : vector<16x512xf32>, i32 -> vector<16x512xf32>
    %c2 = arith.constant 2 : index
    %c0_11 = arith.constant 0 : index
    %17 = vector.load %arg3[%c2, %c0_11] : memref<9x512xf32, #tpu.memory_space<vmem>>, vector<1x512xf32>
    %18 = vector.broadcast %17 : vector<1x512xf32> to vector<16x512xf32>
    %19 = arith.mulf %16, %18 : vector<16x512xf32>
    %c2_12 = arith.constant 2 : index
    %c0_13 = arith.constant 0 : index
    %c0_14 = arith.constant 0 : index
    %20 = vector.load %arg6[%c2_12, %c0_13, %c0_14] : memref<9x8x16xf32, #tpu.memory_space<vmem>>, vector<1x8x16xf32>
    %21 = vector.shape_cast %20 : vector<1x8x16xf32> to vector<8x16xf32>
    %cst_15 = arith.constant dense<0.000000e+00> : vector<8x512xf32>
    %22 = tpu.matmul %21, %19, %cst_15 {dimension_numbers = #tpu.dot_dimension_numbers<[1], [0], [0], [1], [0, 0, 1, 1], [], []>} : vector<8x16xf32>, vector<16x512xf32>, vector<8x512xf32> -> vector<8x512xf32>
    %23 = arith.addf %15, %22 : vector<8x512xf32>
    %c1_i32 = arith.constant 1 : i32
    %24 = tpu.dynamic_rotate %0 by %c1_i32 dim 1 : vector<16x512xf32>, i32 -> vector<16x512xf32>
    %c3 = arith.constant 3 : index
    %c0_16 = arith.constant 0 : index
    %25 = vector.load %arg3[%c3, %c0_16] : memref<9x512xf32, #tpu.memory_space<vmem>>, vector<1x512xf32>
    %26 = vector.broadcast %25 : vector<1x512xf32> to vector<16x512xf32>
    %27 = arith.mulf %24, %26 : vector<16x512xf32>
    %c3_17 = arith.constant 3 : index
    %c0_18 = arith.constant 0 : index
    %c0_19 = arith.constant 0 : index
    %28 = vector.load %arg6[%c3_17, %c0_18, %c0_19] : memref<9x8x16xf32, #tpu.memory_space<vmem>>, vector<1x8x16xf32>
    %29 = vector.shape_cast %28 : vector<1x8x16xf32> to vector<8x16xf32>
    %cst_20 = arith.constant dense<0.000000e+00> : vector<8x512xf32>
    %30 = tpu.matmul %29, %27, %cst_20 {dimension_numbers = #tpu.dot_dimension_numbers<[1], [0], [0], [1], [0, 0, 1, 1], [], []>} : vector<8x16xf32>, vector<16x512xf32>, vector<8x512xf32> -> vector<8x512xf32>
    %31 = arith.addf %23, %30 : vector<8x512xf32>
    %c4 = arith.constant 4 : index
    %c0_21 = arith.constant 0 : index
    %c0_22 = arith.constant 0 : index
    %32 = vector.load %arg6[%c4, %c0_21, %c0_22] : memref<9x8x16xf32, #tpu.memory_space<vmem>>, vector<1x8x16xf32>
    %33 = vector.shape_cast %32 : vector<1x8x16xf32> to vector<8x16xf32>
    %cst_23 = arith.constant dense<0.000000e+00> : vector<8x512xf32>
    %34 = tpu.matmul %33, %0, %cst_23 {dimension_numbers = #tpu.dot_dimension_numbers<[1], [0], [0], [1], [0, 0, 1, 1], [], []>} : vector<8x16xf32>, vector<16x512xf32>, vector<8x512xf32> -> vector<8x512xf32>
    %35 = arith.addf %31, %34 : vector<8x512xf32>
    %c511_i32 = arith.constant 511 : i32
    %36 = tpu.dynamic_rotate %0 by %c511_i32 dim 1 : vector<16x512xf32>, i32 -> vector<16x512xf32>
    %c5 = arith.constant 5 : index
    %c0_24 = arith.constant 0 : index
    %37 = vector.load %arg3[%c5, %c0_24] : memref<9x512xf32, #tpu.memory_space<vmem>>, vector<1x512xf32>
    %38 = vector.broadcast %37 : vector<1x512xf32> to vector<16x512xf32>
    %39 = arith.mulf %36, %38 : vector<16x512xf32>
    %c5_25 = arith.constant 5 : index
    %c0_26 = arith.constant 0 : index
    %c0_27 = arith.constant 0 : index
    %40 = vector.load %arg6[%c5_25, %c0_26, %c0_27] : memref<9x8x16xf32, #tpu.memory_space<vmem>>, vector<1x8x16xf32>
    %41 = vector.shape_cast %40 : vector<1x8x16xf32> to vector<8x16xf32>
    %cst_28 = arith.constant dense<0.000000e+00> : vector<8x512xf32>
    %42 = tpu.matmul %41, %39, %cst_28 {dimension_numbers = #tpu.dot_dimension_numbers<[1], [0], [0], [1], [0, 0, 1, 1], [], []>} : vector<8x16xf32>, vector<16x512xf32>, vector<8x512xf32> -> vector<8x512xf32>
    %43 = arith.addf %35, %42 : vector<8x512xf32>
    %c497_i32 = arith.constant 497 : i32
    %44 = tpu.dynamic_rotate %0 by %c497_i32 dim 1 : vector<16x512xf32>, i32 -> vector<16x512xf32>
    %c6 = arith.constant 6 : index
    %c0_29 = arith.constant 0 : index
    %45 = vector.load %arg3[%c6, %c0_29] : memref<9x512xf32, #tpu.memory_space<vmem>>, vector<1x512xf32>
    %46 = vector.broadcast %45 : vector<1x512xf32> to vector<16x512xf32>
    %47 = arith.mulf %44, %46 : vector<16x512xf32>
    %c6_30 = arith.constant 6 : index
    %c0_31 = arith.constant 0 : index
    %c0_32 = arith.constant 0 : index
    %48 = vector.load %arg6[%c6_30, %c0_31, %c0_32] : memref<9x8x16xf32, #tpu.memory_space<vmem>>, vector<1x8x16xf32>
    %49 = vector.shape_cast %48 : vector<1x8x16xf32> to vector<8x16xf32>
    %cst_33 = arith.constant dense<0.000000e+00> : vector<8x512xf32>
    %50 = tpu.matmul %49, %47, %cst_33 {dimension_numbers = #tpu.dot_dimension_numbers<[1], [0], [0], [1], [0, 0, 1, 1], [], []>} : vector<8x16xf32>, vector<16x512xf32>, vector<8x512xf32> -> vector<8x512xf32>
    %51 = arith.addf %43, %50 : vector<8x512xf32>
    %c496_i32 = arith.constant 496 : i32
    %52 = tpu.dynamic_rotate %0 by %c496_i32 dim 1 : vector<16x512xf32>, i32 -> vector<16x512xf32>
    %c7 = arith.constant 7 : index
    %c0_34 = arith.constant 0 : index
    %53 = vector.load %arg3[%c7, %c0_34] : memref<9x512xf32, #tpu.memory_space<vmem>>, vector<1x512xf32>
    %54 = vector.broadcast %53 : vector<1x512xf32> to vector<16x512xf32>
    %55 = arith.mulf %52, %54 : vector<16x512xf32>
    %c7_35 = arith.constant 7 : index
    %c0_36 = arith.constant 0 : index
    %c0_37 = arith.constant 0 : index
    %56 = vector.load %arg6[%c7_35, %c0_36, %c0_37] : memref<9x8x16xf32, #tpu.memory_space<vmem>>, vector<1x8x16xf32>
    %57 = vector.shape_cast %56 : vector<1x8x16xf32> to vector<8x16xf32>
    %cst_38 = arith.constant dense<0.000000e+00> : vector<8x512xf32>
    %58 = tpu.matmul %57, %55, %cst_38 {dimension_numbers = #tpu.dot_dimension_numbers<[1], [0], [0], [1], [0, 0, 1, 1], [], []>} : vector<8x16xf32>, vector<16x512xf32>, vector<8x512xf32> -> vector<8x512xf32>
    %59 = arith.addf %51, %58 : vector<8x512xf32>
    %c495_i32 = arith.constant 495 : i32
    %60 = tpu.dynamic_rotate %0 by %c495_i32 dim 1 : vector<16x512xf32>, i32 -> vector<16x512xf32>
    %c8 = arith.constant 8 : index
    %c0_39 = arith.constant 0 : index
    %61 = vector.load %arg3[%c8, %c0_39] : memref<9x512xf32, #tpu.memory_space<vmem>>, vector<1x512xf32>
    %62 = vector.broadcast %61 : vector<1x512xf32> to vector<16x512xf32>
    %63 = arith.mulf %60, %62 : vector<16x512xf32>
    %c8_40 = arith.constant 8 : index
    %c0_41 = arith.constant 0 : index
    %c0_42 = arith.constant 0 : index
    %64 = vector.load %arg6[%c8_40, %c0_41, %c0_42] : memref<9x8x16xf32, #tpu.memory_space<vmem>>, vector<1x8x16xf32>
    %65 = vector.shape_cast %64 : vector<1x8x16xf32> to vector<8x16xf32>
    %cst_43 = arith.constant dense<0.000000e+00> : vector<8x512xf32>
    %66 = tpu.matmul %65, %63, %cst_43 {dimension_numbers = #tpu.dot_dimension_numbers<[1], [0], [0], [1], [0, 0, 1, 1], [], []>} : vector<8x16xf32>, vector<16x512xf32>, vector<8x512xf32> -> vector<8x512xf32>
    %67 = arith.addf %59, %66 : vector<8x512xf32>
    %c0_44 = arith.constant 0 : index
    %c0_45 = arith.constant 0 : index
    %68 = vector.load %arg7[%c0_44, %c0_45] : memref<8x1xf32, #tpu.memory_space<vmem>>, vector<8x1xf32>
    %69 = vector.broadcast %68 : vector<8x1xf32> to vector<8x512xf32>
    %70 = arith.addf %67, %69 : vector<8x512xf32>
    %cst_46 = arith.constant 0.000000e+00 : f32
    %71 = vector.broadcast %cst_46 : f32 to vector<8x512xf32>
    %72 = arith.cmpf ogt, %70, %71 : vector<8x512xf32>
    %c0_47 = arith.constant 0 : index
    %c0_48 = arith.constant 0 : index
    %73 = vector.load %arg8[%c0_47, %c0_48] : memref<8x1xf32, #tpu.memory_space<vmem>>, vector<8x1xf32>
    %74 = vector.broadcast %73 : vector<8x1xf32> to vector<8x512xf32>
    %75 = arith.mulf %74, %70 : vector<8x512xf32>
    %76 = arith.select %72, %70, %75 : vector<8x512xi1>, vector<8x512xf32>
    %c17_i32_49 = arith.constant 17 : i32
    %77 = tpu.dynamic_rotate %76 by %c17_i32_49 dim 1 : vector<8x512xf32>, i32 -> vector<8x512xf32>
    %c0_50 = arith.constant 0 : index
    %c0_51 = arith.constant 0 : index
    %78 = vector.load %arg3[%c0_50, %c0_51] : memref<9x512xf32, #tpu.memory_space<vmem>>, vector<1x512xf32>
    %79 = vector.broadcast %78 : vector<1x512xf32> to vector<8x512xf32>
    %80 = arith.mulf %77, %79 : vector<8x512xf32>
    %c0_52 = arith.constant 0 : index
    %c0_53 = arith.constant 0 : index
    %c0_54 = arith.constant 0 : index
    %81 = vector.load %arg9[%c0_52, %c0_53, %c0_54] : memref<9x16x8xf32, #tpu.memory_space<vmem>>, vector<1x16x8xf32>
    %82 = vector.shape_cast %81 : vector<1x16x8xf32> to vector<16x8xf32>
    %cst_55 = arith.constant dense<0.000000e+00> : vector<16x512xf32>
    %83 = tpu.matmul %82, %80, %cst_55 {dimension_numbers = #tpu.dot_dimension_numbers<[1], [0], [0], [1], [0, 0, 1, 1], [], []>} : vector<16x8xf32>, vector<8x512xf32>, vector<16x512xf32> -> vector<16x512xf32>
    %c16_i32_56 = arith.constant 16 : i32
    %84 = tpu.dynamic_rotate %76 by %c16_i32_56 dim 1 : vector<8x512xf32>, i32 -> vector<8x512xf32>
    %c1_57 = arith.constant 1 : index
    %c0_58 = arith.constant 0 : index
    %85 = vector.load %arg3[%c1_57, %c0_58] : memref<9x512xf32, #tpu.memory_space<vmem>>, vector<1x512xf32>
    %86 = vector.broadcast %85 : vector<1x512xf32> to vector<8x512xf32>
    %87 = arith.mulf %84, %86 : vector<8x512xf32>
    %c1_59 = arith.constant 1 : index
    %c0_60 = arith.constant 0 : index
    %c0_61 = arith.constant 0 : index
    %88 = vector.load %arg9[%c1_59, %c0_60, %c0_61] : memref<9x16x8xf32, #tpu.memory_space<vmem>>, vector<1x16x8xf32>
    %89 = vector.shape_cast %88 : vector<1x16x8xf32> to vector<16x8xf32>
    %cst_62 = arith.constant dense<0.000000e+00> : vector<16x512xf32>
    %90 = tpu.matmul %89, %87, %cst_62 {dimension_numbers = #tpu.dot_dimension_numbers<[1], [0], [0], [1], [0, 0, 1, 1], [], []>} : vector<16x8xf32>, vector<8x512xf32>, vector<16x512xf32> -> vector<16x512xf32>
    %91 = arith.addf %83, %90 : vector<16x512xf32>
    %c15_i32_63 = arith.constant 15 : i32
    %92 = tpu.dynamic_rotate %76 by %c15_i32_63 dim 1 : vector<8x512xf32>, i32 -> vector<8x512xf32>
    %c2_64 = arith.constant 2 : index
    %c0_65 = arith.constant 0 : index
    %93 = vector.load %arg3[%c2_64, %c0_65] : memref<9x512xf32, #tpu.memory_space<vmem>>, vector<1x512xf32>
    %94 = vector.broadcast %93 : vector<1x512xf32> to vector<8x512xf32>
    %95 = arith.mulf %92, %94 : vector<8x512xf32>
    %c2_66 = arith.constant 2 : index
    %c0_67 = arith.constant 0 : index
    %c0_68 = arith.constant 0 : index
    %96 = vector.load %arg9[%c2_66, %c0_67, %c0_68] : memref<9x16x8xf32, #tpu.memory_space<vmem>>, vector<1x16x8xf32>
    %97 = vector.shape_cast %96 : vector<1x16x8xf32> to vector<16x8xf32>
    %cst_69 = arith.constant dense<0.000000e+00> : vector<16x512xf32>
    %98 = tpu.matmul %97, %95, %cst_69 {dimension_numbers = #tpu.dot_dimension_numbers<[1], [0], [0], [1], [0, 0, 1, 1], [], []>} : vector<16x8xf32>, vector<8x512xf32>, vector<16x512xf32> -> vector<16x512xf32>
    %99 = arith.addf %91, %98 : vector<16x512xf32>
    %c1_i32_70 = arith.constant 1 : i32
    %100 = tpu.dynamic_rotate %76 by %c1_i32_70 dim 1 : vector<8x512xf32>, i32 -> vector<8x512xf32>
    %c3_71 = arith.constant 3 : index
    %c0_72 = arith.constant 0 : index
    %101 = vector.load %arg3[%c3_71, %c0_72] : memref<9x512xf32, #tpu.memory_space<vmem>>, vector<1x512xf32>
    %102 = vector.broadcast %101 : vector<1x512xf32> to vector<8x512xf32>
    %103 = arith.mulf %100, %102 : vector<8x512xf32>
    %c3_73 = arith.constant 3 : index
    %c0_74 = arith.constant 0 : index
    %c0_75 = arith.constant 0 : index
    %104 = vector.load %arg9[%c3_73, %c0_74, %c0_75] : memref<9x16x8xf32, #tpu.memory_space<vmem>>, vector<1x16x8xf32>
    %105 = vector.shape_cast %104 : vector<1x16x8xf32> to vector<16x8xf32>
    %cst_76 = arith.constant dense<0.000000e+00> : vector<16x512xf32>
    %106 = tpu.matmul %105, %103, %cst_76 {dimension_numbers = #tpu.dot_dimension_numbers<[1], [0], [0], [1], [0, 0, 1, 1], [], []>} : vector<16x8xf32>, vector<8x512xf32>, vector<16x512xf32> -> vector<16x512xf32>
    %107 = arith.addf %99, %106 : vector<16x512xf32>
    %c4_77 = arith.constant 4 : index
    %c0_78 = arith.constant 0 : index
    %c0_79 = arith.constant 0 : index
    %108 = vector.load %arg9[%c4_77, %c0_78, %c0_79] : memref<9x16x8xf32, #tpu.memory_space<vmem>>, vector<1x16x8xf32>
    %109 = vector.shape_cast %108 : vector<1x16x8xf32> to vector<16x8xf32>
    %cst_80 = arith.constant dense<0.000000e+00> : vector<16x512xf32>
    %110 = tpu.matmul %109, %76, %cst_80 {dimension_numbers = #tpu.dot_dimension_numbers<[1], [0], [0], [1], [0, 0, 1, 1], [], []>} : vector<16x8xf32>, vector<8x512xf32>, vector<16x512xf32> -> vector<16x512xf32>
    %111 = arith.addf %107, %110 : vector<16x512xf32>
    %c511_i32_81 = arith.constant 511 : i32
    %112 = tpu.dynamic_rotate %76 by %c511_i32_81 dim 1 : vector<8x512xf32>, i32 -> vector<8x512xf32>
    %c5_82 = arith.constant 5 : index
    %c0_83 = arith.constant 0 : index
    %113 = vector.load %arg3[%c5_82, %c0_83] : memref<9x512xf32, #tpu.memory_space<vmem>>, vector<1x512xf32>
    %114 = vector.broadcast %113 : vector<1x512xf32> to vector<8x512xf32>
    %115 = arith.mulf %112, %114 : vector<8x512xf32>
    %c5_84 = arith.constant 5 : index
    %c0_85 = arith.constant 0 : index
    %c0_86 = arith.constant 0 : index
    %116 = vector.load %arg9[%c5_84, %c0_85, %c0_86] : memref<9x16x8xf32, #tpu.memory_space<vmem>>, vector<1x16x8xf32>
    %117 = vector.shape_cast %116 : vector<1x16x8xf32> to vector<16x8xf32>
    %cst_87 = arith.constant dense<0.000000e+00> : vector<16x512xf32>
    %118 = tpu.matmul %117, %115, %cst_87 {dimension_numbers = #tpu.dot_dimension_numbers<[1], [0], [0], [1], [0, 0, 1, 1], [], []>} : vector<16x8xf32>, vector<8x512xf32>, vector<16x512xf32> -> vector<16x512xf32>
    %119 = arith.addf %111, %118 : vector<16x512xf32>
    %c497_i32_88 = arith.constant 497 : i32
    %120 = tpu.dynamic_rotate %76 by %c497_i32_88 dim 1 : vector<8x512xf32>, i32 -> vector<8x512xf32>
    %c6_89 = arith.constant 6 : index
    %c0_90 = arith.constant 0 : index
    %121 = vector.load %arg3[%c6_89, %c0_90] : memref<9x512xf32, #tpu.memory_space<vmem>>, vector<1x512xf32>
    %122 = vector.broadcast %121 : vector<1x512xf32> to vector<8x512xf32>
    %123 = arith.mulf %120, %122 : vector<8x512xf32>
    %c6_91 = arith.constant 6 : index
    %c0_92 = arith.constant 0 : index
    %c0_93 = arith.constant 0 : index
    %124 = vector.load %arg9[%c6_91, %c0_92, %c0_93] : memref<9x16x8xf32, #tpu.memory_space<vmem>>, vector<1x16x8xf32>
    %125 = vector.shape_cast %124 : vector<1x16x8xf32> to vector<16x8xf32>
    %cst_94 = arith.constant dense<0.000000e+00> : vector<16x512xf32>
    %126 = tpu.matmul %125, %123, %cst_94 {dimension_numbers = #tpu.dot_dimension_numbers<[1], [0], [0], [1], [0, 0, 1, 1], [], []>} : vector<16x8xf32>, vector<8x512xf32>, vector<16x512xf32> -> vector<16x512xf32>
    %127 = arith.addf %119, %126 : vector<16x512xf32>
    %c496_i32_95 = arith.constant 496 : i32
    %128 = tpu.dynamic_rotate %76 by %c496_i32_95 dim 1 : vector<8x512xf32>, i32 -> vector<8x512xf32>
    %c7_96 = arith.constant 7 : index
    %c0_97 = arith.constant 0 : index
    %129 = vector.load %arg3[%c7_96, %c0_97] : memref<9x512xf32, #tpu.memory_space<vmem>>, vector<1x512xf32>
    %130 = vector.broadcast %129 : vector<1x512xf32> to vector<8x512xf32>
    %131 = arith.mulf %128, %130 : vector<8x512xf32>
    %c7_98 = arith.constant 7 : index
    %c0_99 = arith.constant 0 : index
    %c0_100 = arith.constant 0 : index
    %132 = vector.load %arg9[%c7_98, %c0_99, %c0_100] : memref<9x16x8xf32, #tpu.memory_space<vmem>>, vector<1x16x8xf32>
    %133 = vector.shape_cast %132 : vector<1x16x8xf32> to vector<16x8xf32>
    %cst_101 = arith.constant dense<0.000000e+00> : vector<16x512xf32>
    %134 = tpu.matmul %133, %131, %cst_101 {dimension_numbers = #tpu.dot_dimension_numbers<[1], [0], [0], [1], [0, 0, 1, 1], [], []>} : vector<16x8xf32>, vector<8x512xf32>, vector<16x512xf32> -> vector<16x512xf32>
    %135 = arith.addf %127, %134 : vector<16x512xf32>
    %c495_i32_102 = arith.constant 495 : i32
    %136 = tpu.dynamic_rotate %76 by %c495_i32_102 dim 1 : vector<8x512xf32>, i32 -> vector<8x512xf32>
    %c8_103 = arith.constant 8 : index
    %c0_104 = arith.constant 0 : index
    %137 = vector.load %arg3[%c8_103, %c0_104] : memref<9x512xf32, #tpu.memory_space<vmem>>, vector<1x512xf32>
    %138 = vector.broadcast %137 : vector<1x512xf32> to vector<8x512xf32>
    %139 = arith.mulf %136, %138 : vector<8x512xf32>
    %c8_105 = arith.constant 8 : index
    %c0_106 = arith.constant 0 : index
    %c0_107 = arith.constant 0 : index
    %140 = vector.load %arg9[%c8_105, %c0_106, %c0_107] : memref<9x16x8xf32, #tpu.memory_space<vmem>>, vector<1x16x8xf32>
    %141 = vector.shape_cast %140 : vector<1x16x8xf32> to vector<16x8xf32>
    %cst_108 = arith.constant dense<0.000000e+00> : vector<16x512xf32>
    %142 = tpu.matmul %141, %139, %cst_108 {dimension_numbers = #tpu.dot_dimension_numbers<[1], [0], [0], [1], [0, 0, 1, 1], [], []>} : vector<16x8xf32>, vector<8x512xf32>, vector<16x512xf32> -> vector<16x512xf32>
    %143 = arith.addf %135, %142 : vector<16x512xf32>
    %c0_109 = arith.constant 0 : index
    %c0_110 = arith.constant 0 : index
    %144 = vector.load %arg10[%c0_109, %c0_110] : memref<16x1xf32, #tpu.memory_space<vmem>>, vector<16x1xf32>
    %145 = vector.broadcast %144 : vector<16x1xf32> to vector<16x512xf32>
    %146 = arith.addf %143, %145 : vector<16x512xf32>
    %c0_111 = arith.constant 0 : index
    %147 = memref.load %arg1[%c0_111] : memref<8xf32, #tpu.memory_space<smem>>
    %148 = vector.broadcast %147 : f32 to vector<16x512xf32>
    %149 = arith.mulf %148, %0 : vector<16x512xf32>
    %c1_112 = arith.constant 1 : index
    %150 = memref.load %arg1[%c1_112] : memref<8xf32, #tpu.memory_space<smem>>
    %151 = vector.broadcast %150 : f32 to vector<16x512xf32>
    %152 = arith.mulf %151, %146 : vector<16x512xf32>
    %153 = arith.addf %149, %152 : vector<16x512xf32>
    %c17_i32_113 = arith.constant 17 : i32
    %154 = tpu.dynamic_rotate %153 by %c17_i32_113 dim 1 : vector<16x512xf32>, i32 -> vector<16x512xf32>
    %c0_114 = arith.constant 0 : index
    %c0_115 = arith.constant 0 : index
    %155 = vector.load %arg3[%c0_114, %c0_115] : memref<9x512xf32, #tpu.memory_space<vmem>>, vector<1x512xf32>
    %156 = vector.broadcast %155 : vector<1x512xf32> to vector<16x512xf32>
    %157 = arith.mulf %154, %156 : vector<16x512xf32>
    %c0_116 = arith.constant 0 : index
    %c0_117 = arith.constant 0 : index
    %c0_118 = arith.constant 0 : index
    %158 = vector.load %arg11[%c0_116, %c0_117, %c0_118] : memref<9x8x16xf32, #tpu.memory_space<vmem>>, vector<1x8x16xf32>
    %159 = vector.shape_cast %158 : vector<1x8x16xf32> to vector<8x16xf32>
    %cst_119 = arith.constant dense<0.000000e+00> : vector<8x512xf32>
    %160 = tpu.matmul %159, %157, %cst_119 {dimension_numbers = #tpu.dot_dimension_numbers<[1], [0], [0], [1], [0, 0, 1, 1], [], []>} : vector<8x16xf32>, vector<16x512xf32>, vector<8x512xf32> -> vector<8x512xf32>
    %c16_i32_120 = arith.constant 16 : i32
    %161 = tpu.dynamic_rotate %153 by %c16_i32_120 dim 1 : vector<16x512xf32>, i32 -> vector<16x512xf32>
    %c1_121 = arith.constant 1 : index
    %c0_122 = arith.constant 0 : index
    %162 = vector.load %arg3[%c1_121, %c0_122] : memref<9x512xf32, #tpu.memory_space<vmem>>, vector<1x512xf32>
    %163 = vector.broadcast %162 : vector<1x512xf32> to vector<16x512xf32>
    %164 = arith.mulf %161, %163 : vector<16x512xf32>
    %c1_123 = arith.constant 1 : index
    %c0_124 = arith.constant 0 : index
    %c0_125 = arith.constant 0 : index
    %165 = vector.load %arg11[%c1_123, %c0_124, %c0_125] : memref<9x8x16xf32, #tpu.memory_space<vmem>>, vector<1x8x16xf32>
    %166 = vector.shape_cast %165 : vector<1x8x16xf32> to vector<8x16xf32>
    %cst_126 = arith.constant dense<0.000000e+00> : vector<8x512xf32>
    %167 = tpu.matmul %166, %164, %cst_126 {dimension_numbers = #tpu.dot_dimension_numbers<[1], [0], [0], [1], [0, 0, 1, 1], [], []>} : vector<8x16xf32>, vector<16x512xf32>, vector<8x512xf32> -> vector<8x512xf32>
    %168 = arith.addf %160, %167 : vector<8x512xf32>
    %c15_i32_127 = arith.constant 15 : i32
    %169 = tpu.dynamic_rotate %153 by %c15_i32_127 dim 1 : vector<16x512xf32>, i32 -> vector<16x512xf32>
    %c2_128 = arith.constant 2 : index
    %c0_129 = arith.constant 0 : index
    %170 = vector.load %arg3[%c2_128, %c0_129] : memref<9x512xf32, #tpu.memory_space<vmem>>, vector<1x512xf32>
    %171 = vector.broadcast %170 : vector<1x512xf32> to vector<16x512xf32>
    %172 = arith.mulf %169, %171 : vector<16x512xf32>
    %c2_130 = arith.constant 2 : index
    %c0_131 = arith.constant 0 : index
    %c0_132 = arith.constant 0 : index
    %173 = vector.load %arg11[%c2_130, %c0_131, %c0_132] : memref<9x8x16xf32, #tpu.memory_space<vmem>>, vector<1x8x16xf32>
    %174 = vector.shape_cast %173 : vector<1x8x16xf32> to vector<8x16xf32>
    %cst_133 = arith.constant dense<0.000000e+00> : vector<8x512xf32>
    %175 = tpu.matmul %174, %172, %cst_133 {dimension_numbers = #tpu.dot_dimension_numbers<[1], [0], [0], [1], [0, 0, 1, 1], [], []>} : vector<8x16xf32>, vector<16x512xf32>, vector<8x512xf32> -> vector<8x512xf32>
    %176 = arith.addf %168, %175 : vector<8x512xf32>
    %c1_i32_134 = arith.constant 1 : i32
    %177 = tpu.dynamic_rotate %153 by %c1_i32_134 dim 1 : vector<16x512xf32>, i32 -> vector<16x512xf32>
    %c3_135 = arith.constant 3 : index
    %c0_136 = arith.constant 0 : index
    %178 = vector.load %arg3[%c3_135, %c0_136] : memref<9x512xf32, #tpu.memory_space<vmem>>, vector<1x512xf32>
    %179 = vector.broadcast %178 : vector<1x512xf32> to vector<16x512xf32>
    %180 = arith.mulf %177, %179 : vector<16x512xf32>
    %c3_137 = arith.constant 3 : index
    %c0_138 = arith.constant 0 : index
    %c0_139 = arith.constant 0 : index
    %181 = vector.load %arg11[%c3_137, %c0_138, %c0_139] : memref<9x8x16xf32, #tpu.memory_space<vmem>>, vector<1x8x16xf32>
    %182 = vector.shape_cast %181 : vector<1x8x16xf32> to vector<8x16xf32>
    %cst_140 = arith.constant dense<0.000000e+00> : vector<8x512xf32>
    %183 = tpu.matmul %182, %180, %cst_140 {dimension_numbers = #tpu.dot_dimension_numbers<[1], [0], [0], [1], [0, 0, 1, 1], [], []>} : vector<8x16xf32>, vector<16x512xf32>, vector<8x512xf32> -> vector<8x512xf32>
    %184 = arith.addf %176, %183 : vector<8x512xf32>
    %c4_141 = arith.constant 4 : index
    %c0_142 = arith.constant 0 : index
    %c0_143 = arith.constant 0 : index
    %185 = vector.load %arg11[%c4_141, %c0_142, %c0_143] : memref<9x8x16xf32, #tpu.memory_space<vmem>>, vector<1x8x16xf32>
    %186 = vector.shape_cast %185 : vector<1x8x16xf32> to vector<8x16xf32>
    %cst_144 = arith.constant dense<0.000000e+00> : vector<8x512xf32>
    %187 = tpu.matmul %186, %153, %cst_144 {dimension_numbers = #tpu.dot_dimension_numbers<[1], [0], [0], [1], [0, 0, 1, 1], [], []>} : vector<8x16xf32>, vector<16x512xf32>, vector<8x512xf32> -> vector<8x512xf32>
    %188 = arith.addf %184, %187 : vector<8x512xf32>
    %c511_i32_145 = arith.constant 511 : i32
    %189 = tpu.dynamic_rotate %153 by %c511_i32_145 dim 1 : vector<16x512xf32>, i32 -> vector<16x512xf32>
    %c5_146 = arith.constant 5 : index
    %c0_147 = arith.constant 0 : index
    %190 = vector.load %arg3[%c5_146, %c0_147] : memref<9x512xf32, #tpu.memory_space<vmem>>, vector<1x512xf32>
    %191 = vector.broadcast %190 : vector<1x512xf32> to vector<16x512xf32>
    %192 = arith.mulf %189, %191 : vector<16x512xf32>
    %c5_148 = arith.constant 5 : index
    %c0_149 = arith.constant 0 : index
    %c0_150 = arith.constant 0 : index
    %193 = vector.load %arg11[%c5_148, %c0_149, %c0_150] : memref<9x8x16xf32, #tpu.memory_space<vmem>>, vector<1x8x16xf32>
    %194 = vector.shape_cast %193 : vector<1x8x16xf32> to vector<8x16xf32>
    %cst_151 = arith.constant dense<0.000000e+00> : vector<8x512xf32>
    %195 = tpu.matmul %194, %192, %cst_151 {dimension_numbers = #tpu.dot_dimension_numbers<[1], [0], [0], [1], [0, 0, 1, 1], [], []>} : vector<8x16xf32>, vector<16x512xf32>, vector<8x512xf32> -> vector<8x512xf32>
    %196 = arith.addf %188, %195 : vector<8x512xf32>
    %c497_i32_152 = arith.constant 497 : i32
    %197 = tpu.dynamic_rotate %153 by %c497_i32_152 dim 1 : vector<16x512xf32>, i32 -> vector<16x512xf32>
    %c6_153 = arith.constant 6 : index
    %c0_154 = arith.constant 0 : index
    %198 = vector.load %arg3[%c6_153, %c0_154] : memref<9x512xf32, #tpu.memory_space<vmem>>, vector<1x512xf32>
    %199 = vector.broadcast %198 : vector<1x512xf32> to vector<16x512xf32>
    %200 = arith.mulf %197, %199 : vector<16x512xf32>
    %c6_155 = arith.constant 6 : index
    %c0_156 = arith.constant 0 : index
    %c0_157 = arith.constant 0 : index
    %201 = vector.load %arg11[%c6_155, %c0_156, %c0_157] : memref<9x8x16xf32, #tpu.memory_space<vmem>>, vector<1x8x16xf32>
    %202 = vector.shape_cast %201 : vector<1x8x16xf32> to vector<8x16xf32>
    %cst_158 = arith.constant dense<0.000000e+00> : vector<8x512xf32>
    %203 = tpu.matmul %202, %200, %cst_158 {dimension_numbers = #tpu.dot_dimension_numbers<[1], [0], [0], [1], [0, 0, 1, 1], [], []>} : vector<8x16xf32>, vector<16x512xf32>, vector<8x512xf32> -> vector<8x512xf32>
    %204 = arith.addf %196, %203 : vector<8x512xf32>
    %c496_i32_159 = arith.constant 496 : i32
    %205 = tpu.dynamic_rotate %153 by %c496_i32_159 dim 1 : vector<16x512xf32>, i32 -> vector<16x512xf32>
    %c7_160 = arith.constant 7 : index
    %c0_161 = arith.constant 0 : index
    %206 = vector.load %arg3[%c7_160, %c0_161] : memref<9x512xf32, #tpu.memory_space<vmem>>, vector<1x512xf32>
    %207 = vector.broadcast %206 : vector<1x512xf32> to vector<16x512xf32>
    %208 = arith.mulf %205, %207 : vector<16x512xf32>
    %c7_162 = arith.constant 7 : index
    %c0_163 = arith.constant 0 : index
    %c0_164 = arith.constant 0 : index
    %209 = vector.load %arg11[%c7_162, %c0_163, %c0_164] : memref<9x8x16xf32, #tpu.memory_space<vmem>>, vector<1x8x16xf32>
    %210 = vector.shape_cast %209 : vector<1x8x16xf32> to vector<8x16xf32>
    %cst_165 = arith.constant dense<0.000000e+00> : vector<8x512xf32>
    %211 = tpu.matmul %210, %208, %cst_165 {dimension_numbers = #tpu.dot_dimension_numbers<[1], [0], [0], [1], [0, 0, 1, 1], [], []>} : vector<8x16xf32>, vector<16x512xf32>, vector<8x512xf32> -> vector<8x512xf32>
    %212 = arith.addf %204, %211 : vector<8x512xf32>
    %c495_i32_166 = arith.constant 495 : i32
    %213 = tpu.dynamic_rotate %153 by %c495_i32_166 dim 1 : vector<16x512xf32>, i32 -> vector<16x512xf32>
    %c8_167 = arith.constant 8 : index
    %c0_168 = arith.constant 0 : index
    %214 = vector.load %arg3[%c8_167, %c0_168] : memref<9x512xf32, #tpu.memory_space<vmem>>, vector<1x512xf32>
    %215 = vector.broadcast %214 : vector<1x512xf32> to vector<16x512xf32>
    %216 = arith.mulf %213, %215 : vector<16x512xf32>
    %c8_169 = arith.constant 8 : index
    %c0_170 = arith.constant 0 : index
    %c0_171 = arith.constant 0 : index
    %217 = vector.load %arg11[%c8_169, %c0_170, %c0_171] : memref<9x8x16xf32, #tpu.memory_space<vmem>>, vector<1x8x16xf32>
    %218 = vector.shape_cast %217 : vector<1x8x16xf32> to vector<8x16xf32>
    %cst_172 = arith.constant dense<0.000000e+00> : vector<8x512xf32>
    %219 = tpu.matmul %218, %216, %cst_172 {dimension_numbers = #tpu.dot_dimension_numbers<[1], [0], [0], [1], [0, 0, 1, 1], [], []>} : vector<8x16xf32>, vector<16x512xf32>, vector<8x512xf32> -> vector<8x512xf32>
    %220 = arith.addf %212, %219 : vector<8x512xf32>
    %c0_173 = arith.constant 0 : index
    %c0_174 = arith.constant 0 : index
    %221 = vector.load %arg12[%c0_173, %c0_174] : memref<8x1xf32, #tpu.memory_space<vmem>>, vector<8x1xf32>
    %222 = vector.broadcast %221 : vector<8x1xf32> to vector<8x512xf32>
    %223 = arith.addf %220, %222 : vector<8x512xf32>
    %cst_175 = arith.constant 0.000000e+00 : f32
    %224 = vector.broadcast %cst_175 : f32 to vector<8x512xf32>
    %225 = arith.cmpf ogt, %223, %224 : vector<8x512xf32>
    %c0_176 = arith.constant 0 : index
    %c0_177 = arith.constant 0 : index
    %226 = vector.load %arg13[%c0_176, %c0_177] : memref<8x1xf32, #tpu.memory_space<vmem>>, vector<8x1xf32>
    %227 = vector.broadcast %226 : vector<8x1xf32> to vector<8x512xf32>
    %228 = arith.mulf %227, %223 : vector<8x512xf32>
    %229 = arith.select %225, %223, %228 : vector<8x512xi1>, vector<8x512xf32>
    %c17_i32_178 = arith.constant 17 : i32
    %230 = tpu.dynamic_rotate %229 by %c17_i32_178 dim 1 : vector<8x512xf32>, i32 -> vector<8x512xf32>
    %c0_179 = arith.constant 0 : index
    %c0_180 = arith.constant 0 : index
    %231 = vector.load %arg3[%c0_179, %c0_180] : memref<9x512xf32, #tpu.memory_space<vmem>>, vector<1x512xf32>
    %232 = vector.broadcast %231 : vector<1x512xf32> to vector<8x512xf32>
    %233 = arith.mulf %230, %232 : vector<8x512xf32>
    %c0_181 = arith.constant 0 : index
    %c0_182 = arith.constant 0 : index
    %c0_183 = arith.constant 0 : index
    %234 = vector.load %arg14[%c0_181, %c0_182, %c0_183] : memref<9x16x8xf32, #tpu.memory_space<vmem>>, vector<1x16x8xf32>
    %235 = vector.shape_cast %234 : vector<1x16x8xf32> to vector<16x8xf32>
    %cst_184 = arith.constant dense<0.000000e+00> : vector<16x512xf32>
    %236 = tpu.matmul %235, %233, %cst_184 {dimension_numbers = #tpu.dot_dimension_numbers<[1], [0], [0], [1], [0, 0, 1, 1], [], []>} : vector<16x8xf32>, vector<8x512xf32>, vector<16x512xf32> -> vector<16x512xf32>
    %c16_i32_185 = arith.constant 16 : i32
    %237 = tpu.dynamic_rotate %229 by %c16_i32_185 dim 1 : vector<8x512xf32>, i32 -> vector<8x512xf32>
    %c1_186 = arith.constant 1 : index
    %c0_187 = arith.constant 0 : index
    %238 = vector.load %arg3[%c1_186, %c0_187] : memref<9x512xf32, #tpu.memory_space<vmem>>, vector<1x512xf32>
    %239 = vector.broadcast %238 : vector<1x512xf32> to vector<8x512xf32>
    %240 = arith.mulf %237, %239 : vector<8x512xf32>
    %c1_188 = arith.constant 1 : index
    %c0_189 = arith.constant 0 : index
    %c0_190 = arith.constant 0 : index
    %241 = vector.load %arg14[%c1_188, %c0_189, %c0_190] : memref<9x16x8xf32, #tpu.memory_space<vmem>>, vector<1x16x8xf32>
    %242 = vector.shape_cast %241 : vector<1x16x8xf32> to vector<16x8xf32>
    %cst_191 = arith.constant dense<0.000000e+00> : vector<16x512xf32>
    %243 = tpu.matmul %242, %240, %cst_191 {dimension_numbers = #tpu.dot_dimension_numbers<[1], [0], [0], [1], [0, 0, 1, 1], [], []>} : vector<16x8xf32>, vector<8x512xf32>, vector<16x512xf32> -> vector<16x512xf32>
    %244 = arith.addf %236, %243 : vector<16x512xf32>
    %c15_i32_192 = arith.constant 15 : i32
    %245 = tpu.dynamic_rotate %229 by %c15_i32_192 dim 1 : vector<8x512xf32>, i32 -> vector<8x512xf32>
    %c2_193 = arith.constant 2 : index
    %c0_194 = arith.constant 0 : index
    %246 = vector.load %arg3[%c2_193, %c0_194] : memref<9x512xf32, #tpu.memory_space<vmem>>, vector<1x512xf32>
    %247 = vector.broadcast %246 : vector<1x512xf32> to vector<8x512xf32>
    %248 = arith.mulf %245, %247 : vector<8x512xf32>
    %c2_195 = arith.constant 2 : index
    %c0_196 = arith.constant 0 : index
    %c0_197 = arith.constant 0 : index
    %249 = vector.load %arg14[%c2_195, %c0_196, %c0_197] : memref<9x16x8xf32, #tpu.memory_space<vmem>>, vector<1x16x8xf32>
    %250 = vector.shape_cast %249 : vector<1x16x8xf32> to vector<16x8xf32>
    %cst_198 = arith.constant dense<0.000000e+00> : vector<16x512xf32>
    %251 = tpu.matmul %250, %248, %cst_198 {dimension_numbers = #tpu.dot_dimension_numbers<[1], [0], [0], [1], [0, 0, 1, 1], [], []>} : vector<16x8xf32>, vector<8x512xf32>, vector<16x512xf32> -> vector<16x512xf32>
    %252 = arith.addf %244, %251 : vector<16x512xf32>
    %c1_i32_199 = arith.constant 1 : i32
    %253 = tpu.dynamic_rotate %229 by %c1_i32_199 dim 1 : vector<8x512xf32>, i32 -> vector<8x512xf32>
    %c3_200 = arith.constant 3 : index
    %c0_201 = arith.constant 0 : index
    %254 = vector.load %arg3[%c3_200, %c0_201] : memref<9x512xf32, #tpu.memory_space<vmem>>, vector<1x512xf32>
    %255 = vector.broadcast %254 : vector<1x512xf32> to vector<8x512xf32>
    %256 = arith.mulf %253, %255 : vector<8x512xf32>
    %c3_202 = arith.constant 3 : index
    %c0_203 = arith.constant 0 : index
    %c0_204 = arith.constant 0 : index
    %257 = vector.load %arg14[%c3_202, %c0_203, %c0_204] : memref<9x16x8xf32, #tpu.memory_space<vmem>>, vector<1x16x8xf32>
    %258 = vector.shape_cast %257 : vector<1x16x8xf32> to vector<16x8xf32>
    %cst_205 = arith.constant dense<0.000000e+00> : vector<16x512xf32>
    %259 = tpu.matmul %258, %256, %cst_205 {dimension_numbers = #tpu.dot_dimension_numbers<[1], [0], [0], [1], [0, 0, 1, 1], [], []>} : vector<16x8xf32>, vector<8x512xf32>, vector<16x512xf32> -> vector<16x512xf32>
    %260 = arith.addf %252, %259 : vector<16x512xf32>
    %c4_206 = arith.constant 4 : index
    %c0_207 = arith.constant 0 : index
    %c0_208 = arith.constant 0 : index
    %261 = vector.load %arg14[%c4_206, %c0_207, %c0_208] : memref<9x16x8xf32, #tpu.memory_space<vmem>>, vector<1x16x8xf32>
    %262 = vector.shape_cast %261 : vector<1x16x8xf32> to vector<16x8xf32>
    %cst_209 = arith.constant dense<0.000000e+00> : vector<16x512xf32>
    %263 = tpu.matmul %262, %229, %cst_209 {dimension_numbers = #tpu.dot_dimension_numbers<[1], [0], [0], [1], [0, 0, 1, 1], [], []>} : vector<16x8xf32>, vector<8x512xf32>, vector<16x512xf32> -> vector<16x512xf32>
    %264 = arith.addf %260, %263 : vector<16x512xf32>
    %c511_i32_210 = arith.constant 511 : i32
    %265 = tpu.dynamic_rotate %229 by %c511_i32_210 dim 1 : vector<8x512xf32>, i32 -> vector<8x512xf32>
    %c5_211 = arith.constant 5 : index
    %c0_212 = arith.constant 0 : index
    %266 = vector.load %arg3[%c5_211, %c0_212] : memref<9x512xf32, #tpu.memory_space<vmem>>, vector<1x512xf32>
    %267 = vector.broadcast %266 : vector<1x512xf32> to vector<8x512xf32>
    %268 = arith.mulf %265, %267 : vector<8x512xf32>
    %c5_213 = arith.constant 5 : index
    %c0_214 = arith.constant 0 : index
    %c0_215 = arith.constant 0 : index
    %269 = vector.load %arg14[%c5_213, %c0_214, %c0_215] : memref<9x16x8xf32, #tpu.memory_space<vmem>>, vector<1x16x8xf32>
    %270 = vector.shape_cast %269 : vector<1x16x8xf32> to vector<16x8xf32>
    %cst_216 = arith.constant dense<0.000000e+00> : vector<16x512xf32>
    %271 = tpu.matmul %270, %268, %cst_216 {dimension_numbers = #tpu.dot_dimension_numbers<[1], [0], [0], [1], [0, 0, 1, 1], [], []>} : vector<16x8xf32>, vector<8x512xf32>, vector<16x512xf32> -> vector<16x512xf32>
    %272 = arith.addf %264, %271 : vector<16x512xf32>
    %c497_i32_217 = arith.constant 497 : i32
    %273 = tpu.dynamic_rotate %229 by %c497_i32_217 dim 1 : vector<8x512xf32>, i32 -> vector<8x512xf32>
    %c6_218 = arith.constant 6 : index
    %c0_219 = arith.constant 0 : index
    %274 = vector.load %arg3[%c6_218, %c0_219] : memref<9x512xf32, #tpu.memory_space<vmem>>, vector<1x512xf32>
    %275 = vector.broadcast %274 : vector<1x512xf32> to vector<8x512xf32>
    %276 = arith.mulf %273, %275 : vector<8x512xf32>
    %c6_220 = arith.constant 6 : index
    %c0_221 = arith.constant 0 : index
    %c0_222 = arith.constant 0 : index
    %277 = vector.load %arg14[%c6_220, %c0_221, %c0_222] : memref<9x16x8xf32, #tpu.memory_space<vmem>>, vector<1x16x8xf32>
    %278 = vector.shape_cast %277 : vector<1x16x8xf32> to vector<16x8xf32>
    %cst_223 = arith.constant dense<0.000000e+00> : vector<16x512xf32>
    %279 = tpu.matmul %278, %276, %cst_223 {dimension_numbers = #tpu.dot_dimension_numbers<[1], [0], [0], [1], [0, 0, 1, 1], [], []>} : vector<16x8xf32>, vector<8x512xf32>, vector<16x512xf32> -> vector<16x512xf32>
    %280 = arith.addf %272, %279 : vector<16x512xf32>
    %c496_i32_224 = arith.constant 496 : i32
    %281 = tpu.dynamic_rotate %229 by %c496_i32_224 dim 1 : vector<8x512xf32>, i32 -> vector<8x512xf32>
    %c7_225 = arith.constant 7 : index
    %c0_226 = arith.constant 0 : index
    %282 = vector.load %arg3[%c7_225, %c0_226] : memref<9x512xf32, #tpu.memory_space<vmem>>, vector<1x512xf32>
    %283 = vector.broadcast %282 : vector<1x512xf32> to vector<8x512xf32>
    %284 = arith.mulf %281, %283 : vector<8x512xf32>
    %c7_227 = arith.constant 7 : index
    %c0_228 = arith.constant 0 : index
    %c0_229 = arith.constant 0 : index
    %285 = vector.load %arg14[%c7_227, %c0_228, %c0_229] : memref<9x16x8xf32, #tpu.memory_space<vmem>>, vector<1x16x8xf32>
    %286 = vector.shape_cast %285 : vector<1x16x8xf32> to vector<16x8xf32>
    %cst_230 = arith.constant dense<0.000000e+00> : vector<16x512xf32>
    %287 = tpu.matmul %286, %284, %cst_230 {dimension_numbers = #tpu.dot_dimension_numbers<[1], [0], [0], [1], [0, 0, 1, 1], [], []>} : vector<16x8xf32>, vector<8x512xf32>, vector<16x512xf32> -> vector<16x512xf32>
    %288 = arith.addf %280, %287 : vector<16x512xf32>
    %c495_i32_231 = arith.constant 495 : i32
    %289 = tpu.dynamic_rotate %229 by %c495_i32_231 dim 1 : vector<8x512xf32>, i32 -> vector<8x512xf32>
    %c8_232 = arith.constant 8 : index
    %c0_233 = arith.constant 0 : index
    %290 = vector.load %arg3[%c8_232, %c0_233] : memref<9x512xf32, #tpu.memory_space<vmem>>, vector<1x512xf32>
    %291 = vector.broadcast %290 : vector<1x512xf32> to vector<8x512xf32>
    %292 = arith.mulf %289, %291 : vector<8x512xf32>
    %c8_234 = arith.constant 8 : index
    %c0_235 = arith.constant 0 : index
    %c0_236 = arith.constant 0 : index
    %293 = vector.load %arg14[%c8_234, %c0_235, %c0_236] : memref<9x16x8xf32, #tpu.memory_space<vmem>>, vector<1x16x8xf32>
    %294 = vector.shape_cast %293 : vector<1x16x8xf32> to vector<16x8xf32>
    %cst_237 = arith.constant dense<0.000000e+00> : vector<16x512xf32>
    %295 = tpu.matmul %294, %292, %cst_237 {dimension_numbers = #tpu.dot_dimension_numbers<[1], [0], [0], [1], [0, 0, 1, 1], [], []>} : vector<16x8xf32>, vector<8x512xf32>, vector<16x512xf32> -> vector<16x512xf32>
    %296 = arith.addf %288, %295 : vector<16x512xf32>
    %c0_238 = arith.constant 0 : index
    %c0_239 = arith.constant 0 : index
    %297 = vector.load %arg15[%c0_238, %c0_239] : memref<16x1xf32, #tpu.memory_space<vmem>>, vector<16x1xf32>
    %298 = vector.broadcast %297 : vector<16x1xf32> to vector<16x512xf32>
    %299 = arith.addf %296, %298 : vector<16x512xf32>
    %c2_240 = arith.constant 2 : index
    %300 = memref.load %arg1[%c2_240] : memref<8xf32, #tpu.memory_space<smem>>
    %301 = vector.broadcast %300 : f32 to vector<16x512xf32>
    %302 = arith.mulf %301, %153 : vector<16x512xf32>
    %c3_241 = arith.constant 3 : index
    %303 = memref.load %arg1[%c3_241] : memref<8xf32, #tpu.memory_space<smem>>
    %304 = vector.broadcast %303 : f32 to vector<16x512xf32>
    %305 = arith.mulf %304, %299 : vector<16x512xf32>
    %306 = arith.addf %302, %305 : vector<16x512xf32>
    %c4_242 = arith.constant 4 : index
    %307 = memref.load %arg1[%c4_242] : memref<8xf32, #tpu.memory_space<smem>>
    %c0_243 = arith.constant 0 : index
    %c0_244 = arith.constant 0 : index
    %c0_245 = arith.constant 0 : index
    %308 = vector.load %arg16[%c0_243, %c0_244, %c0_245] : memref<2x16x16xf32, #tpu.memory_space<vmem>>, vector<1x16x16xf32>
    %309 = vector.shape_cast %308 : vector<1x16x16xf32> to vector<16x16xf32>
    %310 = vector.broadcast %307 : f32 to vector<16x16xf32>
    %311 = arith.mulf %310, %309 : vector<16x16xf32>
    %c5_246 = arith.constant 5 : index
    %312 = memref.load %arg1[%c5_246] : memref<8xf32, #tpu.memory_space<smem>>
    %c1_247 = arith.constant 1 : index
    %c0_248 = arith.constant 0 : index
    %c0_249 = arith.constant 0 : index
    %313 = vector.load %arg16[%c1_247, %c0_248, %c0_249] : memref<2x16x16xf32, #tpu.memory_space<vmem>>, vector<1x16x16xf32>
    %314 = vector.shape_cast %313 : vector<1x16x16xf32> to vector<16x16xf32>
    %315 = vector.broadcast %312 : f32 to vector<16x16xf32>
    %316 = arith.mulf %315, %314 : vector<16x16xf32>
    %cst_250 = arith.constant dense<0.000000e+00> : vector<16x512xf32>
    %317 = tpu.matmul %311, %306, %cst_250 {dimension_numbers = #tpu.dot_dimension_numbers<[1], [0], [0], [1], [0, 0, 1, 1], [], []>} : vector<16x16xf32>, vector<16x512xf32>, vector<16x512xf32> -> vector<16x512xf32>
    %cst_251 = arith.constant dense<0.000000e+00> : vector<16x512xf32>
    %318 = tpu.matmul %316, %153, %cst_251 {dimension_numbers = #tpu.dot_dimension_numbers<[1], [0], [0], [1], [0, 0, 1, 1], [], []>} : vector<16x16xf32>, vector<16x512xf32>, vector<16x512xf32> -> vector<16x512xf32>
    %319 = arith.addf %317, %318 : vector<16x512xf32>
    %cst_252 = arith.constant 0.000000e+00 : f32
    %320 = vector.broadcast %cst_252 : f32 to vector<16x512xf32>
    %321 = arith.maximumf %319, %320 : vector<16x512xf32>
    %c0_253 = arith.constant 0 : index
    %c0_254 = arith.constant 0 : index
    %322 = vector.load %arg4[%c0_253, %c0_254] : memref<512x2xf32, #tpu.memory_space<vmem>>, vector<512x2xf32>
    %cst_255 = arith.constant dense<0.000000e+00> : vector<16x2xf32>
    %323 = tpu.matmul %321, %322, %cst_255 {dimension_numbers = #tpu.dot_dimension_numbers<[1], [0], [0], [1], [0, 0, 1, 1], [], []>} : vector<16x512xf32>, vector<512x2xf32>, vector<16x2xf32> -> vector<16x2xf32>
    %c0_256 = arith.constant 0 : index
    %c0_257 = arith.constant 0 : index
    %324 = vector.load %arg17[%c0_256, %c0_257] : memref<1x16xf32, #tpu.memory_space<vmem>>, vector<1x16xf32>
    %cst_258 = arith.constant dense<0.000000e+00> : vector<1x2xf32>
    %325 = tpu.matmul %324, %323, %cst_258 {dimension_numbers = #tpu.dot_dimension_numbers<[1], [0], [0], [1], [0, 0, 1, 1], [], []>} : vector<1x16xf32>, vector<16x2xf32>, vector<1x2xf32> -> vector<1x2xf32>
    %c0_259 = arith.constant 0 : index
    %c0_260 = arith.constant 0 : index
    %326 = vector.load %arg18[%c0_259, %c0_260] : memref<1x1xf32, #tpu.memory_space<vmem>>, vector<1x1xf32>
    %327 = vector.broadcast %326 : vector<1x1xf32> to vector<1x2xf32>
    %328 = arith.addf %325, %327 : vector<1x2xf32>
    %cst_261 = arith.constant 0.000000e+00 : f32
    %329 = vector.broadcast %cst_261 : f32 to vector<1x2xf32>
    %330 = arith.maximumf %328, %329 : vector<1x2xf32>
    %c0_262 = arith.constant 0 : index
    %c0_263 = arith.constant 0 : index
    %331 = vector.load %arg19[%c0_262, %c0_263] : memref<16x1xf32, #tpu.memory_space<vmem>>, vector<16x1xf32>
    %cst_264 = arith.constant dense<0.000000e+00> : vector<16x2xf32>
    %332 = tpu.matmul %331, %330, %cst_264 {dimension_numbers = #tpu.dot_dimension_numbers<[1], [0], [0], [1], [0, 0, 1, 1], [], []>} : vector<16x1xf32>, vector<1x2xf32>, vector<16x2xf32> -> vector<16x2xf32>
    %c0_265 = arith.constant 0 : index
    %c0_266 = arith.constant 0 : index
    %333 = vector.load %arg20[%c0_265, %c0_266] : memref<16x1xf32, #tpu.memory_space<vmem>>, vector<16x1xf32>
    %334 = vector.broadcast %333 : vector<16x1xf32> to vector<16x2xf32>
    %335 = arith.addf %332, %334 : vector<16x2xf32>
    %336 = arith.negf %335 : vector<16x2xf32>
    %337 = math.exp %336 : vector<16x2xf32>
    %cst_267 = arith.constant 1.000000e+00 : f32
    %338 = vector.broadcast %cst_267 : f32 to vector<16x2xf32>
    %339 = arith.addf %338, %337 : vector<16x2xf32>
    %340 = arith.divf %338, %339 : vector<16x2xf32>
    %c0_268 = arith.constant 0 : index
    %c0_269 = arith.constant 0 : index
    %341 = vector.load %arg5[%c0_268, %c0_269] : memref<2x512xf32, #tpu.memory_space<vmem>>, vector<2x512xf32>
    %cst_270 = arith.constant dense<0.000000e+00> : vector<16x512xf32>
    %342 = tpu.matmul %340, %341, %cst_270 {dimension_numbers = #tpu.dot_dimension_numbers<[1], [0], [0], [1], [0, 0, 1, 1], [], []>} : vector<16x2xf32>, vector<2x512xf32>, vector<16x512xf32> -> vector<16x512xf32>
    %343 = arith.mulf %321, %342 : vector<16x512xf32>
    %c17_i32_271 = arith.constant 17 : i32
    %344 = tpu.dynamic_rotate %343 by %c17_i32_271 dim 1 : vector<16x512xf32>, i32 -> vector<16x512xf32>
    %c0_272 = arith.constant 0 : index
    %c0_273 = arith.constant 0 : index
    %345 = vector.load %arg3[%c0_272, %c0_273] : memref<9x512xf32, #tpu.memory_space<vmem>>, vector<1x512xf32>
    %346 = vector.broadcast %345 : vector<1x512xf32> to vector<16x512xf32>
    %347 = arith.mulf %344, %346 : vector<16x512xf32>
    %c0_274 = arith.constant 0 : index
    %c0_275 = arith.constant 0 : index
    %c0_276 = arith.constant 0 : index
    %348 = vector.load %arg21[%c0_274, %c0_275, %c0_276] : memref<9x16x16xf32, #tpu.memory_space<vmem>>, vector<1x16x16xf32>
    %349 = vector.shape_cast %348 : vector<1x16x16xf32> to vector<16x16xf32>
    %cst_277 = arith.constant dense<0.000000e+00> : vector<16x512xf32>
    %350 = tpu.matmul %349, %347, %cst_277 {dimension_numbers = #tpu.dot_dimension_numbers<[1], [0], [0], [1], [0, 0, 1, 1], [], []>} : vector<16x16xf32>, vector<16x512xf32>, vector<16x512xf32> -> vector<16x512xf32>
    %c16_i32_278 = arith.constant 16 : i32
    %351 = tpu.dynamic_rotate %343 by %c16_i32_278 dim 1 : vector<16x512xf32>, i32 -> vector<16x512xf32>
    %c1_279 = arith.constant 1 : index
    %c0_280 = arith.constant 0 : index
    %352 = vector.load %arg3[%c1_279, %c0_280] : memref<9x512xf32, #tpu.memory_space<vmem>>, vector<1x512xf32>
    %353 = vector.broadcast %352 : vector<1x512xf32> to vector<16x512xf32>
    %354 = arith.mulf %351, %353 : vector<16x512xf32>
    %c1_281 = arith.constant 1 : index
    %c0_282 = arith.constant 0 : index
    %c0_283 = arith.constant 0 : index
    %355 = vector.load %arg21[%c1_281, %c0_282, %c0_283] : memref<9x16x16xf32, #tpu.memory_space<vmem>>, vector<1x16x16xf32>
    %356 = vector.shape_cast %355 : vector<1x16x16xf32> to vector<16x16xf32>
    %cst_284 = arith.constant dense<0.000000e+00> : vector<16x512xf32>
    %357 = tpu.matmul %356, %354, %cst_284 {dimension_numbers = #tpu.dot_dimension_numbers<[1], [0], [0], [1], [0, 0, 1, 1], [], []>} : vector<16x16xf32>, vector<16x512xf32>, vector<16x512xf32> -> vector<16x512xf32>
    %358 = arith.addf %350, %357 : vector<16x512xf32>
    %c15_i32_285 = arith.constant 15 : i32
    %359 = tpu.dynamic_rotate %343 by %c15_i32_285 dim 1 : vector<16x512xf32>, i32 -> vector<16x512xf32>
    %c2_286 = arith.constant 2 : index
    %c0_287 = arith.constant 0 : index
    %360 = vector.load %arg3[%c2_286, %c0_287] : memref<9x512xf32, #tpu.memory_space<vmem>>, vector<1x512xf32>
    %361 = vector.broadcast %360 : vector<1x512xf32> to vector<16x512xf32>
    %362 = arith.mulf %359, %361 : vector<16x512xf32>
    %c2_288 = arith.constant 2 : index
    %c0_289 = arith.constant 0 : index
    %c0_290 = arith.constant 0 : index
    %363 = vector.load %arg21[%c2_288, %c0_289, %c0_290] : memref<9x16x16xf32, #tpu.memory_space<vmem>>, vector<1x16x16xf32>
    %364 = vector.shape_cast %363 : vector<1x16x16xf32> to vector<16x16xf32>
    %cst_291 = arith.constant dense<0.000000e+00> : vector<16x512xf32>
    %365 = tpu.matmul %364, %362, %cst_291 {dimension_numbers = #tpu.dot_dimension_numbers<[1], [0], [0], [1], [0, 0, 1, 1], [], []>} : vector<16x16xf32>, vector<16x512xf32>, vector<16x512xf32> -> vector<16x512xf32>
    %366 = arith.addf %358, %365 : vector<16x512xf32>
    %c1_i32_292 = arith.constant 1 : i32
    %367 = tpu.dynamic_rotate %343 by %c1_i32_292 dim 1 : vector<16x512xf32>, i32 -> vector<16x512xf32>
    %c3_293 = arith.constant 3 : index
    %c0_294 = arith.constant 0 : index
    %368 = vector.load %arg3[%c3_293, %c0_294] : memref<9x512xf32, #tpu.memory_space<vmem>>, vector<1x512xf32>
    %369 = vector.broadcast %368 : vector<1x512xf32> to vector<16x512xf32>
    %370 = arith.mulf %367, %369 : vector<16x512xf32>
    %c3_295 = arith.constant 3 : index
    %c0_296 = arith.constant 0 : index
    %c0_297 = arith.constant 0 : index
    %371 = vector.load %arg21[%c3_295, %c0_296, %c0_297] : memref<9x16x16xf32, #tpu.memory_space<vmem>>, vector<1x16x16xf32>
    %372 = vector.shape_cast %371 : vector<1x16x16xf32> to vector<16x16xf32>
    %cst_298 = arith.constant dense<0.000000e+00> : vector<16x512xf32>
    %373 = tpu.matmul %372, %370, %cst_298 {dimension_numbers = #tpu.dot_dimension_numbers<[1], [0], [0], [1], [0, 0, 1, 1], [], []>} : vector<16x16xf32>, vector<16x512xf32>, vector<16x512xf32> -> vector<16x512xf32>
    %374 = arith.addf %366, %373 : vector<16x512xf32>
    %c4_299 = arith.constant 4 : index
    %c0_300 = arith.constant 0 : index
    %c0_301 = arith.constant 0 : index
    %375 = vector.load %arg21[%c4_299, %c0_300, %c0_301] : memref<9x16x16xf32, #tpu.memory_space<vmem>>, vector<1x16x16xf32>
    %376 = vector.shape_cast %375 : vector<1x16x16xf32> to vector<16x16xf32>
    %cst_302 = arith.constant dense<0.000000e+00> : vector<16x512xf32>
    %377 = tpu.matmul %376, %343, %cst_302 {dimension_numbers = #tpu.dot_dimension_numbers<[1], [0], [0], [1], [0, 0, 1, 1], [], []>} : vector<16x16xf32>, vector<16x512xf32>, vector<16x512xf32> -> vector<16x512xf32>
    %378 = arith.addf %374, %377 : vector<16x512xf32>
    %c511_i32_303 = arith.constant 511 : i32
    %379 = tpu.dynamic_rotate %343 by %c511_i32_303 dim 1 : vector<16x512xf32>, i32 -> vector<16x512xf32>
    %c5_304 = arith.constant 5 : index
    %c0_305 = arith.constant 0 : index
    %380 = vector.load %arg3[%c5_304, %c0_305] : memref<9x512xf32, #tpu.memory_space<vmem>>, vector<1x512xf32>
    %381 = vector.broadcast %380 : vector<1x512xf32> to vector<16x512xf32>
    %382 = arith.mulf %379, %381 : vector<16x512xf32>
    %c5_306 = arith.constant 5 : index
    %c0_307 = arith.constant 0 : index
    %c0_308 = arith.constant 0 : index
    %383 = vector.load %arg21[%c5_306, %c0_307, %c0_308] : memref<9x16x16xf32, #tpu.memory_space<vmem>>, vector<1x16x16xf32>
    %384 = vector.shape_cast %383 : vector<1x16x16xf32> to vector<16x16xf32>
    %cst_309 = arith.constant dense<0.000000e+00> : vector<16x512xf32>
    %385 = tpu.matmul %384, %382, %cst_309 {dimension_numbers = #tpu.dot_dimension_numbers<[1], [0], [0], [1], [0, 0, 1, 1], [], []>} : vector<16x16xf32>, vector<16x512xf32>, vector<16x512xf32> -> vector<16x512xf32>
    %386 = arith.addf %378, %385 : vector<16x512xf32>
    %c497_i32_310 = arith.constant 497 : i32
    %387 = tpu.dynamic_rotate %343 by %c497_i32_310 dim 1 : vector<16x512xf32>, i32 -> vector<16x512xf32>
    %c6_311 = arith.constant 6 : index
    %c0_312 = arith.constant 0 : index
    %388 = vector.load %arg3[%c6_311, %c0_312] : memref<9x512xf32, #tpu.memory_space<vmem>>, vector<1x512xf32>
    %389 = vector.broadcast %388 : vector<1x512xf32> to vector<16x512xf32>
    %390 = arith.mulf %387, %389 : vector<16x512xf32>
    %c6_313 = arith.constant 6 : index
    %c0_314 = arith.constant 0 : index
    %c0_315 = arith.constant 0 : index
    %391 = vector.load %arg21[%c6_313, %c0_314, %c0_315] : memref<9x16x16xf32, #tpu.memory_space<vmem>>, vector<1x16x16xf32>
    %392 = vector.shape_cast %391 : vector<1x16x16xf32> to vector<16x16xf32>
    %cst_316 = arith.constant dense<0.000000e+00> : vector<16x512xf32>
    %393 = tpu.matmul %392, %390, %cst_316 {dimension_numbers = #tpu.dot_dimension_numbers<[1], [0], [0], [1], [0, 0, 1, 1], [], []>} : vector<16x16xf32>, vector<16x512xf32>, vector<16x512xf32> -> vector<16x512xf32>
    %394 = arith.addf %386, %393 : vector<16x512xf32>
    %c496_i32_317 = arith.constant 496 : i32
    %395 = tpu.dynamic_rotate %343 by %c496_i32_317 dim 1 : vector<16x512xf32>, i32 -> vector<16x512xf32>
    %c7_318 = arith.constant 7 : index
    %c0_319 = arith.constant 0 : index
    %396 = vector.load %arg3[%c7_318, %c0_319] : memref<9x512xf32, #tpu.memory_space<vmem>>, vector<1x512xf32>
    %397 = vector.broadcast %396 : vector<1x512xf32> to vector<16x512xf32>
    %398 = arith.mulf %395, %397 : vector<16x512xf32>
    %c7_320 = arith.constant 7 : index
    %c0_321 = arith.constant 0 : index
    %c0_322 = arith.constant 0 : index
    %399 = vector.load %arg21[%c7_320, %c0_321, %c0_322] : memref<9x16x16xf32, #tpu.memory_space<vmem>>, vector<1x16x16xf32>
    %400 = vector.shape_cast %399 : vector<1x16x16xf32> to vector<16x16xf32>
    %cst_323 = arith.constant dense<0.000000e+00> : vector<16x512xf32>
    %401 = tpu.matmul %400, %398, %cst_323 {dimension_numbers = #tpu.dot_dimension_numbers<[1], [0], [0], [1], [0, 0, 1, 1], [], []>} : vector<16x16xf32>, vector<16x512xf32>, vector<16x512xf32> -> vector<16x512xf32>
    %402 = arith.addf %394, %401 : vector<16x512xf32>
    %c495_i32_324 = arith.constant 495 : i32
    %403 = tpu.dynamic_rotate %343 by %c495_i32_324 dim 1 : vector<16x512xf32>, i32 -> vector<16x512xf32>
    %c8_325 = arith.constant 8 : index
    %c0_326 = arith.constant 0 : index
    %404 = vector.load %arg3[%c8_325, %c0_326] : memref<9x512xf32, #tpu.memory_space<vmem>>, vector<1x512xf32>
    %405 = vector.broadcast %404 : vector<1x512xf32> to vector<16x512xf32>
    %406 = arith.mulf %403, %405 : vector<16x512xf32>
    %c8_327 = arith.constant 8 : index
    %c0_328 = arith.constant 0 : index
    %c0_329 = arith.constant 0 : index
    %407 = vector.load %arg21[%c8_327, %c0_328, %c0_329] : memref<9x16x16xf32, #tpu.memory_space<vmem>>, vector<1x16x16xf32>
    %408 = vector.shape_cast %407 : vector<1x16x16xf32> to vector<16x16xf32>
    %cst_330 = arith.constant dense<0.000000e+00> : vector<16x512xf32>
    %409 = tpu.matmul %408, %406, %cst_330 {dimension_numbers = #tpu.dot_dimension_numbers<[1], [0], [0], [1], [0, 0, 1, 1], [], []>} : vector<16x16xf32>, vector<16x512xf32>, vector<16x512xf32> -> vector<16x512xf32>
    %410 = arith.addf %402, %409 : vector<16x512xf32>
    %cst_331 = arith.constant 0.000000e+00 : f32
    %411 = vector.broadcast %cst_331 : f32 to vector<16x512xf32>
    %412 = arith.maximumf %410, %411 : vector<16x512xf32>
    %c6_332 = arith.constant 6 : index
    %413 = memref.load %arg1[%c6_332] : memref<8xf32, #tpu.memory_space<smem>>
    %414 = vector.broadcast %413 : f32 to vector<16x512xf32>
    %415 = arith.mulf %414, %0 : vector<16x512xf32>
    %c7_333 = arith.constant 7 : index
    %416 = memref.load %arg1[%c7_333] : memref<8xf32, #tpu.memory_space<smem>>
    %417 = vector.broadcast %416 : f32 to vector<16x512xf32>
    %418 = arith.mulf %417, %412 : vector<16x512xf32>
    %419 = arith.addf %415, %418 : vector<16x512xf32>
    %c0_334 = arith.constant 0 : index
    %c0_335 = arith.constant 0 : index
    %420 = vector.load %arg22[%c0_334, %c0_335] : memref<16x512xf32, #tpu.memory_space<vmem>>, vector<16x512xf32>
    tpu.vector_store %arg22[%c0_334, %c0_335], %419 {strides = array<i32>} : memref<16x512xf32, #tpu.memory_space<vmem>>, vector<16x512xf32>,
    return
  }
  func.func @transform_0(%arg0: i32) -> i32 {
    %c0_i32 = arith.constant 0 : i32
    %c0_i32_0 = arith.constant 0 : i32
    return %c0_i32 : i32
  }
  func.func @transform_1(%arg0: i32) -> (i32, i32) {
    %c0_i32 = arith.constant 0 : i32
    %c0_i32_0 = arith.constant 0 : i32
    %c0_i32_1 = arith.constant 0 : i32
    return %c0_i32, %c0_i32_0 : i32, i32
  }
  func.func @transform_2(%arg0: i32) -> (i32, i32) {
    %c0_i32 = arith.constant 0 : i32
    %c0_i32_0 = arith.constant 0 : i32
    %c0_i32_1 = arith.constant 0 : i32
    return %c0_i32, %c0_i32_0 : i32, i32
  }
  func.func @transform_3(%arg0: i32) -> (i32, i32) {
    %c0_i32 = arith.constant 0 : i32
    %c0_i32_0 = arith.constant 0 : i32
    %c0_i32_1 = arith.constant 0 : i32
    return %c0_i32, %c0_i32_0 : i32, i32
  }
  func.func @transform_4(%arg0: i32) -> (i32, i32) {
    %c0_i32 = arith.constant 0 : i32
    %c0_i32_0 = arith.constant 0 : i32
    %c0_i32_1 = arith.constant 0 : i32
    return %c0_i32, %c0_i32_0 : i32, i32
  }
  func.func @transform_5(%arg0: i32) -> (i32, i32, i32) {
    %c0_i32 = arith.constant 0 : i32
    %c0_i32_0 = arith.constant 0 : i32
    %c0_i32_1 = arith.constant 0 : i32
    %c0_i32_2 = arith.constant 0 : i32
    return %c0_i32, %c0_i32_0, %c0_i32_1 : i32, i32, i32
  }
  func.func @transform_6(%arg0: i32) -> (i32, i32) {
    %c0_i32 = arith.constant 0 : i32
    %c0_i32_0 = arith.constant 0 : i32
    %c0_i32_1 = arith.constant 0 : i32
    return %c0_i32, %c0_i32_0 : i32, i32
  }
  func.func @transform_7(%arg0: i32) -> (i32, i32) {
    %c0_i32 = arith.constant 0 : i32
    %c0_i32_0 = arith.constant 0 : i32
    %c0_i32_1 = arith.constant 0 : i32
    return %c0_i32, %c0_i32_0 : i32, i32
  }
  func.func @transform_8(%arg0: i32) -> (i32, i32, i32) {
    %c0_i32 = arith.constant 0 : i32
    %c0_i32_0 = arith.constant 0 : i32
    %c0_i32_1 = arith.constant 0 : i32
    %c0_i32_2 = arith.constant 0 : i32
    return %c0_i32, %c0_i32_0, %c0_i32_1 : i32, i32, i32
  }
  func.func @transform_9(%arg0: i32) -> (i32, i32) {
    %c0_i32 = arith.constant 0 : i32
    %c0_i32_0 = arith.constant 0 : i32
    %c0_i32_1 = arith.constant 0 : i32
    return %c0_i32, %c0_i32_0 : i32, i32
  }
  func.func @transform_10(%arg0: i32) -> (i32, i32, i32) {
    %c0_i32 = arith.constant 0 : i32
    %c0_i32_0 = arith.constant 0 : i32
    %c0_i32_1 = arith.constant 0 : i32
    %c0_i32_2 = arith.constant 0 : i32
    return %c0_i32, %c0_i32_0, %c0_i32_1 : i32, i32, i32
  }
  func.func @transform_11(%arg0: i32) -> (i32, i32) {
    %c0_i32 = arith.constant 0 : i32
    %c0_i32_0 = arith.constant 0 : i32
    %c0_i32_1 = arith.constant 0 : i32
    return %c0_i32, %c0_i32_0 : i32, i32
  }
  func.func @transform_12(%arg0: i32) -> (i32, i32) {
    %c0_i32 = arith.constant 0 : i32
    %c0_i32_0 = arith.constant 0 : i32
    %c0_i32_1 = arith.constant 0 : i32
    return %c0_i32, %c0_i32_0 : i32, i32
  }
  func.func @transform_13(%arg0: i32) -> (i32, i32, i32) {
    %c0_i32 = arith.constant 0 : i32
    %c0_i32_0 = arith.constant 0 : i32
    %c0_i32_1 = arith.constant 0 : i32
    %c0_i32_2 = arith.constant 0 : i32
    return %c0_i32, %c0_i32_0, %c0_i32_1 : i32, i32, i32
  }
  func.func @transform_14(%arg0: i32) -> (i32, i32) {
    %c0_i32 = arith.constant 0 : i32
    %c0_i32_0 = arith.constant 0 : i32
    %c0_i32_1 = arith.constant 0 : i32
    return %c0_i32, %c0_i32_0 : i32, i32
  }
  func.func @transform_15(%arg0: i32) -> (i32, i32, i32) {
    %c0_i32 = arith.constant 0 : i32
    %c0_i32_0 = arith.constant 0 : i32
    %c0_i32_1 = arith.constant 0 : i32
    %c0_i32_2 = arith.constant 0 : i32
    return %c0_i32, %c0_i32_0, %c0_i32_1 : i32, i32, i32
  }
  func.func @transform_16(%arg0: i32) -> (i32, i32) {
    %c0_i32 = arith.constant 0 : i32
    %c0_i32_0 = arith.constant 0 : i32
    %c0_i32_1 = arith.constant 0 : i32
    return %c0_i32, %c0_i32_0 : i32, i32
  }
  func.func @transform_17(%arg0: i32) -> (i32, i32) {
    %c0_i32 = arith.constant 0 : i32
    %c0_i32_0 = arith.constant 0 : i32
    %c0_i32_1 = arith.constant 0 : i32
    return %c0_i32, %c0_i32_0 : i32, i32
  }
  func.func @transform_18(%arg0: i32) -> (i32, i32) {
    %c0_i32 = arith.constant 0 : i32
    %c0_i32_0 = arith.constant 0 : i32
    %c0_i32_1 = arith.constant 0 : i32
    return %c0_i32, %c0_i32_0 : i32, i32
  }
  func.func @transform_19(%arg0: i32) -> (i32, i32) {
    %c0_i32 = arith.constant 0 : i32
    %c0_i32_0 = arith.constant 0 : i32
    %c0_i32_1 = arith.constant 0 : i32
    return %c0_i32, %c0_i32_0 : i32, i32
  }
  func.func @transform_20(%arg0: i32) -> (i32, i32, i32) {
    %c0_i32 = arith.constant 0 : i32
    %c0_i32_0 = arith.constant 0 : i32
    %c0_i32_1 = arith.constant 0 : i32
    %c0_i32_2 = arith.constant 0 : i32
    return %c0_i32, %c0_i32_0, %c0_i32_1 : i32, i32, i32
  }
  func.func @transform_21(%arg0: i32) -> (i32, i32) {
    %c0_i32 = arith.constant 0 : i32
    %c0_i32_0 = arith.constant 0 : i32
    %c0_i32_1 = arith.constant 0 : i32
    return %c0_i32, %c0_i32_0 : i32, i32
  }
}

</mosaic_0001>

<bundles_post_ra>
// kernel: arfb_forward.1
= control target key start
LH: loop header
LB: loop body
LE: loop exit
PB: predicated region body
PF: predicated region fallthrough
CT: control target
= control target key end

     0   :  { %s10145_s0 = inlined_call_operand.vmem [shape: f32[8], index: 0, kind: input, shape index: {}]   ;;  %s10146_s1 = inlined_call_operand.vmem [shape: f32[16,512], index: 1, kind: input, shape index: {}]   ;;  %s10147_s2 = inlined_call_operand.vmem [shape: f32[9,512], index: 2, kind: input, shape index: {}]   ;;  %s10148_s3 = inlined_call_operand.vmem [shape: f32[512,2], index: 3, kind: input, shape index: {}]   ;;  %s10149_s4 = inlined_call_operand.vmem [shape: f32[2,512], index: 4, kind: input, shape index: {}]   ;;  %s10150_s5 = inlined_call_operand.vmem [shape: f32[9,8,16], index: 5, kind: input, shape index: {}]   ;;  %s10151_s6 = inlined_call_operand.vmem [shape: f32[8,1], index: 6, kind: input, shape index: {}]   ;;  %s10152_s7 = inlined_call_operand.vmem [shape: f32[8,1], index: 7, kind: input, shape index: {}]   ;;  %s10153_s8 = inlined_call_operand.vmem [shape: f32[9,16,8], index: 8, kind: input, shape index: {}]   ;;  %s10154_s9 = inlined_call_operand.vmem [shape: f32[16,1], index: 9, kind: input, shape index: {}]   ;;  %s10155_s10 = inlined_call_operand.vmem [shape: f32[9,8,16], index: 10, kind: input, shape index: {}]   ;;  %s10156_s11 = inlined_call_operand.vmem [shape: f32[8,1], index: 11, kind: input, shape index: {}]   ;;  %s10157_s12 = inlined_call_operand.vmem [shape: f32[8,1], index: 12, kind: input, shape index: {}]   ;;  %s10158_s13 = inlined_call_operand.vmem [shape: f32[9,16,8], index: 13, kind: input, shape index: {}]   ;;  %s10159_s14 = inlined_call_operand.vmem [shape: f32[16,1], index: 14, kind: input, shape index: {}]   ;;  %s10160_s15 = inlined_call_operand.vmem [shape: f32[2,16,16], index: 15, kind: input, shape index: {}]   ;;  %s10161_s16 = inlined_call_operand.vmem [shape: f32[1,16], index: 16, kind: input, shape index: {}]   ;;  %s10162_s17 = inlined_call_operand.<no memory space> [shape: f32[1,1], index: 17, kind: input, shape index: {}]   ;;  %s10163_s18 = inlined_call_operand.vmem [shape: f32[16,1], index: 18, kind: input, shape index: {}]   ;;  %s10164_s19 = inlined_call_operand.vmem [shape: f32[16,1], index: 19, kind: input, shape index: {}]   ;;  %s10165_s20 = inlined_call_operand.vmem [shape: f32[9,16,16], index: 20, kind: input, shape index: {}]   ;;  %s10166_s21 = inlined_call_operand.vmem [shape: f32[16,512], index: 21, kind: output, shape index: {}]  }
   0x1   :  { %10288 = sst [smem:[#allocation56_spill]] %s10145_s0  ;;  %v26_v0 = vstv %s10162_s17 }
   0x2   :  { %10289 = sst [smem:[#allocation57_spill]] %s10146_s1  ;;  %27 = vst [vmem:[#allocation2] sm:$0x1] %v26_v0 }
   0x3   :  { %10290 = sst [smem:[#allocation58_spill]] %s10147_s2 }
   0x4   :  { %10291 = sst [smem:[#allocation59_spill]] %s10148_s3 }
   0x5   :  { %10292 = sst [smem:[#allocation60_spill]] %s10149_s4 }
   0x6   :  { %10293 = sst [smem:[#allocation61_spill]] %s10150_s5 }
   0x7   :  { %28 = vsyncpa [#allocation4], 0  ;;  %s10294_s3 = sld [smem:[#allocation56_spill]]  ;;  %s6958_s29 = smov [#allocation3]  }
   0xd   :  { %s34_s28 = sshll.u32 %s10294_s3, 4  ;;  %s35_s28 = int_to_ptr.vmem [resolvable:$true] %s34_s28 }
   0xe   :  { %37 = dma.vmem_to_smem %s35_s28, 16, %s6958_s29, [#allocation4]  }
   0xf   :  { %6956 = dma.done.wait [#allocation4], 16  }
  0x10   :  { %6957 = vsyncadd [#allocation4], 4294967280 }
  0x11   :  { %82 = sfence }
  0x12   :  { %s10295_s30 = sld [smem:[#allocation57_spill]]  ;;  %s6959_s17 = smov 16   ;;  %v107_v12 = vlaneseq  ;;  %vm183_vm2 = vcmask 130048   ;;  %vm1302_vm13 = vcmask 64512  }
  0x13   :  { %s6960_s5 = smov 17   ;;  %s6961_s22 = smov 15  }
  0x14   :  { %s6962_s23 = smov 1   ;;  %s6963_s1 = smov 127   ;;  %v7218_v16 = vand.u32 127, %v107_v12 }
  0x15   :  { %s6964_s24 = smov 113   ;;  %s10297_s26 = sld [smem:[#allocation58_spill]] }
  0x16   :  { %10296 = vst [vmem:[#allocation6_spill] sm:$0xff] %v7218_v16  ;;  %vm153_vm0 = vcmp.lt.s32.totalorder %v7218_v16, 16  ;;  %vm109_vm1 = vcmp.lt.s32.totalorder %v7218_v16, 17  ;;  %s6965_s28 = smov 112   ;;  %s10303_s4 = sld [smem:[#allocation61_spill]]  ;;  %vm366_vm3 = vcmp.lt.s32.totalorder %v7218_v16, 15 }
  0x17   :  { %s10171_s27 = smov 111   ;;  %vm499_vm4 = vcmp.lt.s32.totalorder %v7218_v16, 1  ;;  %vm721_vm5 = vcmp.lt.s32.totalorder %v7218_v16, 127  ;;  %vm854_vm6 = vcmp.lt.s32.totalorder %v7218_v16, 113  ;;  %vm987_vm7 = vcmp.lt.s32.totalorder %v7218_v16, 112  ;;  %s6644_s2 = sld [smem:[#allocation3 + $0x1]] }
  0x18   :  { %v7087_v1 = vld [vmem:[%s10295_s30 + $0x20] sm:$0xff]  ;;  %v7101_v3 = vld [vmem:[%s10295_s30 + $0x30] sm:$0xff]  ;;  %v7108_v4 = vld [vmem:[%s10295_s30 + $0x28] sm:$0xff]  ;;  %vm1120_vm8 = vcmp.lt.s32.totalorder %v7218_v16, 111  ;;  %s9246_s29 = sld [smem:[#allocation3 + $0x3]] }
  0x19   :  { %v7092_v2 = vld [vmem:[%s10295_s30] sm:$0xff]  ;;  %139 = vrot.lane.b32.xlu0 %v7087_v1, %s6959_s17  ;;  %147 = vrot.lane.b32.xlu2 %v7101_v3, %s6959_s17  ;;  %v7113_v5 = vld [vmem:[%s10295_s30 + $0x8] sm:$0xff] }
  0x1a   :  { %137 = vrot.lane.b32.xlu1 %v7092_v2, %s6959_s17  ;;  %v7118_v6 = vld [vmem:[%s10295_s30 + $0x10] sm:$0xff]  ;;  %v7129_v7 = vld [vmem:[%s10295_s30 + $0x38] sm:$0xff] }
  0x1b   :  { %v7134_v8 = vld [vmem:[%s10295_s30 + $0x18] sm:$0xff] }
  0x1c   :  { %v6505_v17 = vld [vmem:[%s10297_s26 + $0x1] ss:$8 sm:$0xf]  ;;  %v7226_v18 = vld [vmem:[%s10297_s26] ss:$8 sm:$0xf] }
  0x1d   :  { %v7233_v19 = vperm.slane %v6505_v17, 1  ;;  %v7239_v22 = vperm.slane %v7226_v18, 1  ;;  %v7248_v27 = vperm.slane %v6505_v17, 2  ;;  %v7260_v33 = vperm.slane %v6505_v17, 0  ;;  %v6506_v37 = vld [vmem:[%s10303_s4 + $0x8] sm:$0xff] }
  0x1e   :  { %v7268_v36 = vperm.slane %v6505_v17, 3  ;;  %v7293_v49 = vperm.slane %v7226_v18, 2  ;;  %v6515_v57 = vld [vmem:[%s10297_s26 + $0x2] ss:$8 sm:$0xf]  ;;  %v7318_v58 = vperm.slane %v7226_v18, 0 }
  0x1f   :  { %10298 = vst [vmem:[#allocation7_spill] sm:$0xff] %v7233_v19  ;;  %v7321_v59 = vperm.slane %v7226_v18, 3  ;;  %v7324_v62 = vperm.slane %v6515_v57, 3 }
  0x20   :  { %10299 = vst [vmem:[#allocation8_spill] sm:$0xff] %v7239_v22 }
  0x21   :  { %143 = vrot.lane.b32.xlu0 %v7108_v4, %s6959_s17  ;;  %145 = vrot.lane.b32.xlu2 %v7118_v6, %s6959_s17  ;;  %10300 = vst [vmem:[#allocation9_spill] sm:$0xff] %v7248_v27 }
  0x22   :  { %141 = vrot.lane.b32.xlu1 %v7113_v5, %s6959_s17  ;;  %10301 = vst [vmem:[#allocation10_spill] sm:$0xff] %v7260_v33 }
  0x23   :  { %10302 = vst [vmem:[#allocation11_spill] sm:$0xff] %v7268_v36 }
  0x24   :  { %10304 = vst [vmem:[#allocation12_spill] sm:$0xff] %v7293_v49 }
  0x25   :  { %10305 = vst [vmem:[#allocation13_spill] sm:$0xff] %v7318_v58 }
  0x26   :  { %10306 = vst [vmem:[#allocation14_spill] sm:$0xff] %v7321_v59 }
  0x27   :  { %10307 = vst [vmem:[#allocation15_spill] sm:$0xff] %v7324_v62 }
  0x29   :  { %151 = vrot.lane.b32.xlu0 %v7129_v7, %s6959_s17  ;;  %97 = vrot.lane.b32.xlu2 %v7108_v4, %s6960_s5 }
  0x2a   :  { %149 = vrot.lane.b32.xlu1 %v7134_v8, %s6959_s17 }
  0x31   :  { %101 = vrot.lane.b32.xlu0 %v7101_v3, %s6960_s5  ;;  %99 = vrot.lane.b32.xlu2 %v7118_v6, %s6960_s5 }
  0x32   :  { %95 = vrot.lane.b32.xlu1 %v7113_v5, %s6960_s5 }
  0x39   :  { %105 = vrot.lane.b32.xlu0 %v7129_v7, %s6960_s5  ;;  %93 = vrot.lane.b32.xlu2 %v7087_v1, %s6960_s5 }
  0x3a   :  { %103 = vrot.lane.b32.xlu1 %v7134_v8, %s6960_s5 }
  0x41   :  { %91 = vrot.lane.b32.xlu0 %v7092_v2, %s6960_s5  ;;  %360 = vrot.lane.b32.xlu2 %v7101_v3, %s6961_s22 }
  0x42   :  { %356 = vrot.lane.b32.xlu1 %v7108_v4, %s6961_s22 }
  0x49   :  { %354 = vrot.lane.b32.xlu0 %v7113_v5, %s6961_s22  ;;  %364 = vrot.lane.b32.xlu2 %v7129_v7, %s6961_s22 }
  0x4a   :  { %358 = vrot.lane.b32.xlu1 %v7118_v6, %s6961_s22 }
  0x51   :  { %362 = vrot.lane.b32.xlu0 %v7134_v8, %s6961_s22  ;;  %350 = vrot.lane.b32.xlu2 %v7092_v2, %s6961_s22 }
  0x52   :  { %352 = vrot.lane.b32.xlu1 %v7087_v1, %s6961_s22 }
  0x59   :  { %489 = vrot.lane.b32.xlu0 %v7108_v4, %s6962_s23  ;;  %487 = vrot.lane.b32.xlu2 %v7113_v5, %s6962_s23 }
  0x5a   :  { %493 = vrot.lane.b32.xlu1 %v7101_v3, %s6962_s23 }
  0x61   :  { %491 = vrot.lane.b32.xlu0 %v7118_v6, %s6962_s23  ;;  %495 = vrot.lane.b32.xlu2 %v7134_v8, %s6962_s23 }
  0x62   :  { %497 = vrot.lane.b32.xlu1 %v7129_v7, %s6962_s23 }
  0x69   :  { %485 = vrot.lane.b32.xlu0 %v7087_v1, %s6962_s23  ;;  %715 = vrot.lane.b32.xlu2 %v7101_v3, %s6963_s1 }
  0x6a   :  { %483 = vrot.lane.b32.xlu1 %v7092_v2, %s6962_s23 }
  0x71   :  { %719 = vrot.lane.b32.xlu0 %v7129_v7, %s6963_s1  ;;  %713 = vrot.lane.b32.xlu2 %v7118_v6, %s6963_s1 }
  0x72   :  { %707 = vrot.lane.b32.xlu1 %v7087_v1, %s6963_s1 }
  0x73   :  { %v148_v9 = vpop.permute.xlu2 %147 }
  0x79   :  { %717 = vrot.lane.b32.xlu0 %v7134_v8, %s6963_s1  ;;  %711 = vrot.lane.b32.xlu2 %v7108_v4, %s6963_s1 }
  0x7a   :  { %705 = vrot.lane.b32.xlu1 %v7092_v2, %s6963_s1 }
  0x7b   :  { %v146_v10 = vpop.permute.xlu2 %145 }
  0x81   :  { %709 = vrot.lane.b32.xlu0 %v7113_v5, %s6963_s1  ;;  %852 = vrot.lane.b32.xlu2 %v7129_v7, %s6964_s24 }
  0x82   :  { %848 = vrot.lane.b32.xlu1 %v7101_v3, %s6964_s24 }
  0x83   :  { %v7208_v11 = vpop.permute.xlu2 %97 }
  0x89   :  { %840 = vrot.lane.b32.xlu0 %v7087_v1, %s6964_s24  ;;  %850 = vrot.lane.b32.xlu2 %v7134_v8, %s6964_s24 }
  0x8a   :  { %846 = vrot.lane.b32.xlu1 %v7118_v6, %s6964_s24 }
  0x8b   :  { %v140_v13 = vpop.permute.xlu0 %139  ;;  %v7216_v15 = vpop.permute.xlu2 %99 }
  0x8c   :  { %v138_v14 = vpop.permute.xlu1 %137 }
  0x91   :  { %838 = vrot.lane.b32.xlu0 %v7092_v2, %s6964_s24  ;;  %842 = vrot.lane.b32.xlu2 %v7113_v5, %s6964_s24 }
  0x92   :  { %844 = vrot.lane.b32.xlu1 %v7108_v4, %s6964_s24 }
  0x93   :  { %v144_v20 = vpop.permute.xlu0 %143  ;;  %v7245_v25 = vpop.permute.xlu2 %93 }
  0x94   :  { %v142_v21 = vpop.permute.xlu1 %141  ;;  %v159_v23 = vsel %vm153_vm0, %v140_v13, %v144_v20  ;;  %v157_v29 = vsel %vm153_vm0, %v144_v20, %v148_v9  ;;  %v115_v31 = vsel %vm109_vm1, %v7245_v25, %v7208_v11  ;;  %v7351_v20 = vperm.slane %v6515_v57, 2 }
  0x95   :  { %v158_v24 = vsel %vm153_vm0, %v138_v14, %v142_v21  ;;  %v178_v26 = vmul.f32 %v7233_v19, %v159_v23  ;;  %v156_v30 = vsel %vm153_vm0, %v142_v21, %v146_v10  ;;  %v133_v32 = vmul.f32 %v7239_v22, %v115_v31 }
  0x96   :  { %v174_v28 = vmul.f32 %v7233_v19, %v158_v24  ;;  %v179_v34 = vmul.f32 %v7248_v27, %v157_v29  ;;  %v175_v35 = vmul.f32 %v7248_v27, %v156_v30  ;;  %10308 = vst [vmem:[#allocation16_spill] sm:$0xff] %v7351_v20 }
  0x97   :  { %221 = vmatpush.msra.mxu2 %v178_v26  ;;  %304 = vmatpush.msra.mxu1 %v133_v32 }
  0x99   :  { %981 = vrot.lane.b32.xlu0 %v7101_v3, %s6965_s28  ;;  %222 = vmatpush.msra.mxu2 %v174_v28 }
  0x9a   :  { %985 = vrot.lane.b32.xlu1 %v7129_v7, %s6965_s28  ;;  %973 = vrot.lane.b32.xlu2 %v7087_v1, %s6965_s28 }
  0x9b   :  { %241 = vmatpush.msrb.mxu2 %v179_v34  ;;  %v152_v38 = vpop.permute.xlu0 %151  ;;  %v361_v42 = vpop.permute.xlu2 %360 }
  0x9c   :  { %v150_v39 = vpop.permute.xlu1 %149  ;;  %v161_v40 = vsel %vm153_vm0, %v152_v38, %v140_v13  ;;  %v155_v41 = vsel %vm153_vm0, %v148_v9, %v152_v38  ;;  %6508 = vmatmul.msk.f32.vlgmr.msra.gmra.mxu2 %vm183_vm2, %v6506_v37  ;;  %v6516_v38 = vld [vmem:[%s10303_s4 + $0x10] sm:$0xff] }
  0x9d   :  { %242 = vmatpush.msrb.mxu2 %v175_v35  ;;  %v177_v43 = vmul.f32 %v7260_v33, %v161_v40  ;;  %v180_v44 = vmul.f32 %v7268_v36, %v155_v41  ;;  %v160_v45 = vsel %vm153_vm0, %v150_v39, %v138_v14  ;;  %v154_v46 = vsel %vm153_vm0, %v146_v10, %v150_v39  ;;  %v136_v14 = vld [vmem:[%s10303_s4] sm:$0xff] }
  0x9e   :  { %v173_v47 = vmul.f32 %v7260_v33, %v160_v45  ;;  %v176_v48 = vmul.f32 %v7268_v36, %v154_v46  ;;  %v7386_v39 = vperm.slane %v6515_v57, 0 }
  0x9f   :  { %201 = vmatpush.msra.mxu0 %v177_v43  ;;  %261 = vmatpush.msra.mxu3 %v180_v44 }
  0xa0   :  { %10309 = vst [vmem:[#allocation17_spill] sm:$0xff] %v7386_v39 }
  0xa1   :  { %979 = vrot.lane.b32.xlu0 %v7118_v6, %s6965_s28  ;;  %202 = vmatpush.msra.mxu0 %v173_v47 }
  0xa2   :  { %983 = vrot.lane.b32.xlu1 %v7134_v8, %s6965_s28  ;;  %262 = vmatpush.msra.mxu3 %v176_v48 }
  0xa3   :  { %v102_v50 = vpop.permute.xlu0 %101  ;;  %971 = vrot.lane.b32.xlu2 %v7092_v2, %s6965_s28  ;;  %6510 = vmatmul.msk.f32.vlgmr.msra.gmra.mxu3 %vm183_vm2, %v6506_v37  ;;  %v7304_v54 = vpop.permute.xlu2 %364 }
  0xa4   :  { %v96_v51 = vpop.permute.xlu1 %95  ;;  %v113_v52 = vsel %vm109_vm1, %v7208_v11, %v102_v50  ;;  %6509 = vmatmul.msk.f32.vlgmr.msrb.gmra.mxu2 %vm183_vm2, %v6506_v37  ;;  %6507 = vmatmul.msk.f32.vlgmr.msra.gmra.mxu0 %vm183_vm2, %v6506_v37  ;;  %v368_v9 = vsel %vm366_vm3, %v361_v42, %v7304_v54 }
  0xa5   :  { %v112_v53 = vsel %vm109_vm1, %v96_v51, %v7216_v15  ;;  %v134_v55 = vmul.f32 %v7293_v49, %v113_v52  ;;  %v393_v17 = vmul.f32 %v7324_v62, %v368_v9 }
  0xa6   :  { %v130_v56 = vmul.f32 %v7293_v49, %v112_v53  ;;  %v6521_v53 = vld [vmem:[%s10297_s26 + $0x3] ss:$8 sm:$0xf] }
  0xa7   :  { %324 = vmatpush.msra.mxu2 %v134_v55  ;;  %v7422_v9 = vperm.slane %v6521_v53, 3 }
  0xa9   :  { %977 = vrot.lane.b32.xlu0 %v7108_v4, %s6965_s28  ;;  %325 = vmatpush.msra.mxu2 %v130_v56  ;;  %v7412_v56 = vperm.slane %v6521_v53, 2  ;;  %10312 = vst [vmem:[#allocation20_spill] sm:$0xff] %v7422_v9 }
  0xaa   :  { %975 = vrot.lane.b32.xlu1 %v7113_v5, %s6965_s28 }
  0xab   :  { %v106_v60 = vpop.permute.xlu0 %105  ;;  %1114 = vrot.lane.b32.xlu2 %v7101_v3, %s10171_s27  ;;  %v351_v10 = vpop.permute.xlu2 %350  ;;  %10311 = vst [vmem:[#allocation19_spill] sm:$0xff] %v7412_v56 }
  0xac   :  { %v104_v61 = vpop.permute.xlu1 %103  ;;  %v117_v63 = vsel %vm109_vm1, %v106_v60, %v7245_v25  ;;  %v111_v0 = vsel %vm109_vm1, %v102_v50, %v106_v60  ;;  %6513 = vmatmul.msk.f32.vlgmr.msra.gmra.mxu2 %vm183_vm2, %v136_v14 }
  0xad   :  { %v132_v11 = vmul.f32 %v7318_v58, %v117_v63  ;;  %v135_v12 = vmul.f32 %v7321_v59, %v111_v0  ;;  %v110_v13 = vsel %vm109_vm1, %v7216_v15, %v104_v61 }
  0xae   :  { %v131_v18 = vmul.f32 %v7321_v59, %v110_v13 }
  0xaf   :  { %284 = vmatpush.msrb.mxu0 %v132_v11  ;;  %344 = vmatpush.msrb.mxu3 %v135_v12 }
  0xb1   :  { %1118 = vrot.lane.b32.xlu0 %v7129_v7, %s10171_s27  ;;  %345 = vmatpush.msrb.mxu3 %v131_v18 }
  0xb2   :  { %1106 = vrot.lane.b32.xlu1 %v7087_v1, %s10171_s27  ;;  %6514 = vmatmul.msk.f32.vlgmr.msrb.gmra.mxu3 %vm183_vm2, %v136_v14 }
  0xb3   :  { %v92_v15 = vpop.permute.xlu0 %91  ;;  %473 = vmatpush.msra.mxu3 %v393_v17  ;;  %1112 = vrot.lane.b32.xlu2 %v7118_v6, %s10171_s27  ;;  %v7361_v26 = vpop.permute.xlu2 %487 }
  0xb4   :  { %v357_v21 = vpop.permute.xlu1 %356  ;;  %v116_v24 = vsel %vm109_vm1, %v104_v61, %v92_v15  ;;  %v114_v25 = vsel %vm109_vm1, %v92_v15, %v96_v51 }
  0xb5   :  { %v370_v23 = vsel %vm366_vm3, %v357_v21, %v361_v42  ;;  %v128_v29 = vmul.f32 %v7318_v58, %v116_v24  ;;  %v129_v30 = vmul.f32 %v7239_v22, %v114_v25  ;;  %v7388_v42 = vperm.slane %v6515_v57, 1 }
  0xb6   :  { %v392_v28 = vmul.f32 %v7351_v20, %v370_v23  ;;  %v6522_v23 = vld [vmem:[%s10303_s4 + $0x18] sm:$0xff]  ;;  %v7439_v24 = vperm.slane %v6521_v53, 0  ;;  %v7441_v25 = vperm.slane %v6521_v53, 1 }
  0xb7   :  { %285 = vmatpush.msrb.mxu0 %v128_v29  ;;  %305 = vmatpush.msra.mxu1 %v129_v30  ;;  %10310 = vst [vmem:[#allocation18_spill] sm:$0xff] %v7388_v42 }
  0xb8   :  { %453 = vmatpush.msrb.mxu2 %v392_v28  ;;  %6512 = vmatmul.msk.f32.vlgmr.msra.gmra.mxu1 %vm183_vm2, %v136_v14  ;;  %10313 = vst [vmem:[#allocation21_spill] sm:$0xff] %v7439_v24  ;;  %v6532_v28 = vld [vmem:[%s10297_s26 + $0x5] ss:$8 sm:$0xf] }
  0xb9   :  { %1116 = vrot.lane.b32.xlu0 %v7134_v8, %s10171_s27  ;;  %6511 = vmatmul.msk.f32.vlgmr.msrb.gmra.mxu0 %vm183_vm2, %v136_v14  ;;  %10314 = vst [vmem:[#allocation22_spill] sm:$0xff] %v7441_v25 }
  0xba   :  { %1104 = vrot.lane.b32.xlu1 %v7092_v2, %s10171_s27 }
  0xbb   :  { %v355_v31 = vpop.permute.xlu0 %354  ;;  %1110 = vrot.lane.b32.xlu2 %v7108_v4, %s10171_s27  ;;  %v7377_v35 = vpop.permute.xlu2 %495 }
  0xbc   :  { %v359_v32 = vpop.permute.xlu1 %358  ;;  %v371_v43 = vsel %vm366_vm3, %v351_v10, %v355_v31 }
  0xbd   :  { %v369_v34 = vsel %vm366_vm3, %v355_v31, %v359_v32 }
  0xbe   :  { %v388_v37 = vmul.f32 %v7351_v20, %v369_v34 }
  0xc0   :  { %454 = vmatpush.msrb.mxu2 %v388_v37 }
  0xc1   :  { %6519 = vmatmul.msk.f32.vlgmr.msrb.gmra.mxu2 %vm183_vm2, %v6516_v38  ;;  %1108 = vrot.lane.b32.xlu0 %v7113_v5, %s10171_s27 }
  0xc3   :  { %v363_v40 = vpop.permute.xlu0 %362  ;;  %v7401_v48 = vpop.permute.xlu2 %715 }
  0xc4   :  { %v353_v41 = vpop.permute.xlu1 %352  ;;  %v367_v44 = vsel %vm366_vm3, %v359_v32, %v363_v40  ;;  %v373_v45 = vsel %vm366_vm3, %v363_v40, %v351_v10 }
  0xc5   :  { %v374_v46 = vsel %vm366_vm3, %v7304_v54, %v353_v41  ;;  %v372_v47 = vsel %vm366_vm3, %v353_v41, %v357_v21  ;;  %v389_v52 = vmul.f32 %v7324_v62, %v367_v44  ;;  %v386_v55 = vmul.f32 %v7386_v39, %v373_v45  ;;  %v6527_v45 = vld [vmem:[%s10303_s4 + $0x20] sm:$0xff] }
  0xc6   :  { %v390_v50 = vmul.f32 %v7386_v39, %v374_v46  ;;  %v391_v51 = vmul.f32 %v7388_v42, %v372_v47  ;;  %v387_v54 = vmul.f32 %v7388_v42, %v371_v43  ;;  %v7474_v41 = vperm.slane %v6532_v28, 2 }
  0xc7   :  { %474 = vmatpush.msra.mxu3 %v389_v52  ;;  %v7476_v43 = vperm.slane %v6532_v28, 0  ;;  %v7478_v44 = vperm.slane %v6532_v28, 3 }
  0xc8   :  { %413 = vmatpush.msra.mxu0 %v390_v50  ;;  %433 = vmatpush.msrb.mxu1 %v391_v51  ;;  %10316 = vst [vmem:[#allocation24_spill] sm:$0xff] %v7474_v41 }
  0xc9   :  { %6520 = vmatmul.msk.f32.vlgmr.msra.gmra.mxu3 %vm183_vm2, %v6516_v38  ;;  %10317 = vst [vmem:[#allocation25_spill] sm:$0xff] %v7476_v43 }
  0xca   :  { %414 = vmatpush.msra.mxu0 %v386_v55  ;;  %434 = vmatpush.msrb.mxu1 %v387_v54  ;;  %10318 = vst [vmem:[#allocation26_spill] sm:$0xff] %v7478_v44 }
  0xcb   :  { %6518 = vmatmul.msk.f32.vlgmr.msrb.gmra.mxu1 %vm183_vm2, %v6516_v38  ;;  %v490_v57 = vpop.permute.xlu0 %489  ;;  %6517 = vmatmul.msk.f32.vlgmr.msra.gmra.mxu0 %vm183_vm2, %v6516_v38  ;;  %v7419_v63 = vpop.permute.xlu2 %713  ;;  %v7466_v38 = vperm.slane %v6532_v28, 1 }
  0xcc   :  { %v494_v60 = vpop.permute.xlu1 %493 }
  0xcd   :  { %v503_v61 = vsel %vm499_vm4, %v490_v57, %v494_v60  ;;  %10315 = vst [vmem:[#allocation23_spill] sm:$0xff] %v7466_v38 }
  0xce   :  { %v525_v0 = vmul.f32 %v7412_v56, %v503_v61 }
  0xd0   :  { %586 = vmatpush.msra.mxu2 %v525_v0  ;;  %v6533_v0 = vld [vmem:[%s10303_s4 + $0x28] sm:$0xff] }
  0xd3   :  { %v492_v10 = vpop.permute.xlu0 %491  ;;  %v712_v17 = vpop.permute.xlu2 %711 }
  0xd4   :  { %v498_v11 = vpop.permute.xlu1 %497  ;;  %v500_v12 = vsel %vm499_vm4, %v492_v10, %v7377_v35  ;;  %v502_v13 = vsel %vm499_vm4, %v7361_v26, %v492_v10  ;;  %v725_v40 = vsel %vm721_vm5, %v712_v17, %v7401_v48  ;;  %v6538_v10 = vld [vmem:[%s10297_s26 + $0x6] ss:$8 sm:$0xf] }
  0xd5   :  { %v501_v14 = vsel %vm499_vm4, %v494_v60, %v498_v11  ;;  %v521_v15 = vmul.f32 %v7412_v56, %v502_v13  ;;  %v522_v21 = vmul.f32 %v7422_v9, %v500_v12 }
  0xd6   :  { %v526_v18 = vmul.f32 %v7422_v9, %v501_v14 }
  0xd7   :  { %587 = vmatpush.msra.mxu2 %v521_v15 }
  0xd8   :  { %606 = vmatpush.msrb.mxu3 %v526_v18  ;;  %6525 = vmatmul.msk.f32.vlgmr.msra.gmra.mxu2 %vm183_vm2, %v6522_v23 }
  0xd9   :  { %675 = vmatpush.msrb.mxu2 %v7101_v3 }
  0xda   :  { %607 = vmatpush.msrb.mxu3 %v522_v21 }
  0xdb   :  { %676 = vmatpush.msrb.mxu2 %v7118_v6  ;;  %v486_v3 = vpop.permute.xlu0 %485  ;;  %6526 = vmatmul.msk.f32.vlgmr.msrb.gmra.mxu3 %vm183_vm2, %v6522_v23 }
  0xdc   :  { %695 = vmatpush.msra.mxu3 %v7129_v7  ;;  %v484_v29 = vpop.permute.xlu1 %483  ;;  %v505_v30 = vsel %vm499_vm4, %v486_v3, %v490_v57  ;;  %v507_v31 = vsel %vm499_vm4, %v498_v11, %v486_v3  ;;  %v7462_v7 = vpop.permute.xlu2 %852  ;;  %v7519_v11 = vperm.slane %v6538_v10, 2 }
  0xdd   :  { %v504_v32 = vsel %vm499_vm4, %v484_v29, %v7361_v26  ;;  %v506_v6 = vsel %vm499_vm4, %v7377_v35, %v484_v29  ;;  %v523_v34 = vmul.f32 %v7439_v24, %v507_v31  ;;  %v524_v37 = vmul.f32 %v7441_v25, %v505_v30 }
  0xde   :  { %696 = vmatpush.msra.mxu3 %v7134_v8  ;;  %v519_v26 = vmul.f32 %v7439_v24, %v506_v6  ;;  %v520_v35 = vmul.f32 %v7441_v25, %v504_v32  ;;  %v746_v8 = vmul.f32 %v7466_v38, %v725_v40  ;;  %10319 = vst [vmem:[#allocation27_spill] sm:$0xff] %v7519_v11  ;;  %v7551_v40 = vperm.slane %v6538_v10, 0 }
  0xdf   :  { %546 = vmatpush.msrb.mxu0 %v523_v34  ;;  %566 = vmatpush.msra.mxu1 %v524_v37  ;;  %v6539_v34 = vld [vmem:[%s10303_s4 + $0x30] sm:$0xff] }
  0xe0   :  { %6530 = vmatmul.msk.f32.vlgmr.msrb.gmra.mxu2 %vm183_vm2, %v6527_v45  ;;  %10321 = vst [vmem:[#allocation29_spill] sm:$0xff] %v7551_v40 }
  0xe1   :  { %547 = vmatpush.msrb.mxu0 %v519_v26  ;;  %567 = vmatpush.msra.mxu1 %v520_v35 }
  0xe2   :  { %6523 = vmatmul.msk.f32.vlgmr.msrb.gmra.mxu0 %vm183_vm2, %v6522_v23  ;;  %6524 = vmatmul.msk.f32.vlgmr.msra.gmra.mxu1 %vm183_vm2, %v6522_v23 }
  0xe3   :  { %655 = vmatpush.msrb.mxu1 %v7108_v4  ;;  %v720_v46 = vpop.permute.xlu0 %719  ;;  %635 = vmatpush.msra.mxu0 %v7087_v1 }
  0xe4   :  { %v708_v47 = vpop.permute.xlu1 %707  ;;  %v723_v50 = vsel %vm721_vm5, %v7401_v48, %v720_v46  ;;  %v851_v4 = vpop.permute.xlu2 %850  ;;  %6531 = vmatmul.msk.f32.vlgmr.msra.gmra.mxu3 %vm183_vm2, %v6527_v45 }
  0xe5   :  { %v727_v51 = vsel %vm721_vm5, %v708_v47, %v712_v17  ;;  %v729_v52 = vsel %vm721_vm5, %v720_v46, %v708_v47  ;;  %656 = vmatpush.msrb.mxu1 %v7113_v5  ;;  %v747_v53 = vmul.f32 %v7474_v41, %v723_v50  ;;  %636 = vmatpush.msra.mxu0 %v7092_v2 }
  0xe6   :  { %v745_v55 = vmul.f32 %v7476_v43, %v727_v51  ;;  %v748_v1 = vmul.f32 %v7478_v44, %v729_v52 }
  0xe7   :  { %788 = vmatpush.msra.mxu1 %v746_v8  ;;  %808 = vmatpush.msra.mxu2 %v747_v53 }
  0xe8   :  { %828 = vmatpush.msrb.mxu3 %v748_v1  ;;  %768 = vmatpush.msrb.mxu0 %v745_v55 }
  0xea   :  { %6528 = vmatmul.msk.f32.vlgmr.msra.gmra.mxu0 %vm183_vm2, %v6527_v45  ;;  %6529 = vmatmul.msk.f32.vlgmr.msrb.gmra.mxu1 %vm183_vm2, %v6527_v45 }
  0xeb   :  { %v718_v5 = vpop.permute.xlu0 %717 }
  0xec   :  { %v706_v48 = vpop.permute.xlu1 %705  ;;  %v722_v54 = vsel %vm721_vm5, %v7419_v63, %v718_v5  ;;  %v843_v60 = vpop.permute.xlu2 %842 }
  0xed   :  { %v728_v57 = vsel %vm721_vm5, %v718_v5, %v706_v48  ;;  %v743_v2 = vmul.f32 %v7474_v41, %v722_v54 }
  0xee   :  { %v744_v61 = vmul.f32 %v7478_v44, %v728_v57 }
  0xef   :  { %809 = vmatpush.msra.mxu2 %v743_v2 }
  0xf0   :  { %829 = vmatpush.msrb.mxu3 %v744_v61  ;;  %6536 = vmatmul.msk.f32.vlgmr.msra.gmra.mxu2 %vm183_vm2, %v6533_v0 }
  0xf1   :  { %6537 = vmatmul.msk.f32.vlgmr.msrb.gmra.mxu3 %vm183_vm2, %v6533_v0 }
  0xf3   :  { %v710_v12 = vpop.permute.xlu0 %709 }
  0xf4   :  { %v849_v13 = vpop.permute.xlu1 %848  ;;  %v724_v14 = vsel %vm721_vm5, %v710_v12, %v7419_v63  ;;  %v726_v17 = vsel %vm721_vm5, %v706_v48, %v710_v12  ;;  %v7532_v28 = vpop.permute.xlu2 %973  ;;  %v7535_v63 = vperm.slane %v6538_v10, 3 }
  0xf5   :  { %v856_v18 = vsel %vm854_vm6, %v849_v13, %v7462_v7  ;;  %v741_v21 = vmul.f32 %v7476_v43, %v726_v17  ;;  %v742_v23 = vmul.f32 %v7466_v38, %v724_v14 }
  0xf6   :  { %v880_v15 = vmul.f32 %v7519_v11, %v856_v18  ;;  %10320 = vst [vmem:[#allocation28_spill] sm:$0xff] %v7535_v63 }
  0xf7   :  { %769 = vmatpush.msrb.mxu0 %v741_v21  ;;  %789 = vmatpush.msra.mxu1 %v742_v23  ;;  %v6545_v21 = vld [vmem:[%s10303_s4 + $0x38] sm:$0xff] }
  0xf8   :  { %941 = vmatpush.msrb.mxu2 %v880_v15  ;;  %6535 = vmatmul.msk.f32.vlgmr.msra.gmra.mxu1 %vm183_vm2, %v6533_v0 }
  0xf9   :  { %6534 = vmatmul.msk.f32.vlgmr.msrb.gmra.mxu0 %vm183_vm2, %v6533_v0 }
  0xfb   :  { %v841_v3 = vpop.permute.xlu0 %840 }
  0xfc   :  { %v847_v29 = vpop.permute.xlu1 %846  ;;  %v862_v30 = vsel %vm854_vm6, %v7462_v7, %v841_v3  ;;  %v7553_v7 = vperm.slane %v6538_v10, 1 }
  0xfd   :  { %v855_v31 = vsel %vm854_vm6, %v847_v29, %v851_v4  ;;  %v881_v32 = vmul.f32 %v7535_v63, %v862_v30  ;;  %v7548_v37 = vpop.permute.xlu2 %971  ;;  %v857_v26 = vsel %vm854_vm6, %v843_v60, %v847_v29  ;;  %v1237_v30 = vld [vmem:[%s10151_s6] sm:$0xff] }
  0xfe   :  { %v876_v6 = vmul.f32 %v7519_v11, %v855_v31  ;;  %10322 = vst [vmem:[#allocation30_spill] sm:$0xff] %v7553_v7  ;;  %v875_v55 = vmul.f32 %v7553_v7, %v857_v26  ;;  %v1251_v31 = vld [vmem:[%s10152_s7] sm:$0xff] }
  0xff   :  { %961 = vmatpush.msra.mxu3 %v881_v32 }
 0x100   :  { %942 = vmatpush.msrb.mxu2 %v876_v6 }
 0x101   :  { %6542 = vmatmul.msk.f32.vlgmr.msrb.gmra.mxu2 %vm183_vm2, %v6539_v34 }
 0x103   :  { %v839_v35 = vpop.permute.xlu0 %838 }
 0x104   :  { %v845_v8 = vpop.permute.xlu1 %844  ;;  %v859_v45 = vsel %vm854_vm6, %v839_v35, %v843_v60  ;;  %v861_v46 = vsel %vm854_vm6, %v851_v4, %v839_v35  ;;  %v6544_v4 = vld [vmem:[%s10297_s26 + $0x7] ss:$8 sm:$0xf] }
 0x105   :  { %v858_v47 = vsel %vm854_vm6, %v845_v8, %v849_v13  ;;  %v860_v50 = vsel %vm854_vm6, %v841_v3, %v845_v8  ;;  %v877_v53 = vmul.f32 %v7535_v63, %v861_v46  ;;  %v7569_v1 = vpop.permute.xlu2 %1114  ;;  %v874_v5 = vmul.f32 %v7551_v40, %v859_v45  ;;  %v6550_v3 = vld [vmem:[%s10297_s26 + $0x20] ss:$8 sm:$0xf]  ;;  %s10331_s26 = smov 111  }
 0x106   :  { %v878_v51 = vmul.f32 %v7551_v40, %v860_v50  ;;  %v879_v52 = vmul.f32 %v7553_v7, %v858_v47  ;;  %v7576_v48 = vperm.slane %v6544_v4, 2  ;;  %v7578_v54 = vperm.slane %v6544_v4, 3 }
 0x107   :  { %962 = vmatpush.msra.mxu3 %v877_v53  ;;  %v7614_v32 = vperm.slane %v6544_v4, 0  ;;  %v7616_v6 = vperm.slane %v6544_v4, 1  ;;  %v7618_v8 = vperm.slane %v6550_v3, 1 }
 0x108   :  { %901 = vmatpush.msra.mxu0 %v878_v51  ;;  %921 = vmatpush.msrb.mxu1 %v879_v52  ;;  %10323 = vst [vmem:[#allocation31_spill] sm:$0xff] %v7576_v48 }
 0x109   :  { %10324 = vst [vmem:[#allocation32_spill] sm:$0xff] %v7578_v54  ;;  %6543 = vmatmul.msk.f32.vlgmr.msra.gmra.mxu3 %vm183_vm2, %v6539_v34 }
 0x10a   :  { %902 = vmatpush.msra.mxu0 %v874_v5  ;;  %922 = vmatpush.msrb.mxu1 %v875_v55  ;;  %10325 = vst [vmem:[#allocation33_spill] sm:$0xff] %v7614_v32 }
 0x10b   :  { %6540 = vmatmul.msk.f32.vlgmr.msra.gmra.mxu0 %vm183_vm2, %v6539_v34  ;;  %6541 = vmatmul.msk.f32.vlgmr.msrb.gmra.mxu1 %vm183_vm2, %v6539_v34  ;;  %v982_v57 = vpop.permute.xlu0 %981  ;;  %10326 = vst [vmem:[#allocation34_spill] sm:$0xff] %v7616_v6  ;;  %v6967_v34 = vmov 0  }
 0x10c   :  { %v986_v60 = vpop.permute.xlu1 %985  ;;  %6917 = vset.pattern.permute.xlu1 %v6967_v34  ;;  %6918 = vset.pattern.permute.xlu2 %v6967_v34  ;;  %10327 = vst [vmem:[#allocation35_spill] sm:$0xff] %v7618_v8 }
 0x10d   :  { %v989_v2 = vsel %vm987_vm7, %v982_v57, %v986_v60  ;;  %v995_v61 = vsel %vm987_vm7, %v986_v60, %v7532_v28  ;;  %v7590_v12 = vpop.permute.xlu2 %1112  ;;  %1240 = vperm.xlu1 %6917, %v1237_v30   ;;  %1254 = vperm.xlu2 %6918, %v1251_v31   ;;  %v7642_v60 = vperm.slane %v6550_v3, 3 }
 0x10e   :  { %v1013_v0 = vmul.f32 %v7576_v48, %v989_v2  ;;  %v1014_v10 = vmul.f32 %v7578_v54, %v995_v61  ;;  %6919 = vset.pattern.permute.xlu0 %v6967_v34 }
 0x10f   :  { %10330 = vst [vmem:[#allocation38_spill] sm:$0xff] %v7642_v60 }
 0x110   :  { %1074 = vmatpush.msra.mxu2 %v1013_v0  ;;  %1094 = vmatpush.msrb.mxu3 %v1014_v10 }
 0x113   :  { %v980_v13 = vpop.permute.xlu0 %979 }
 0x114   :  { %v984_v14 = vpop.permute.xlu1 %983 }
 0x115   :  { %v988_v17 = vsel %vm987_vm7, %v980_v13, %v984_v14  ;;  %v994_v18 = vsel %vm987_vm7, %v984_v14, %v7548_v37  ;;  %v1111_v29 = vpop.permute.xlu2 %1110 }
 0x116   :  { %v1009_v15 = vmul.f32 %v7576_v48, %v988_v17  ;;  %v1010_v23 = vmul.f32 %v7578_v54, %v994_v18  ;;  %v1124_v45 = vsel %vm1120_vm8, %v1111_v29, %v7569_v1 }
 0x117   :  { %v1145_v55 = vmul.f32 %v7618_v8, %v1124_v45 }
 0x118   :  { %1075 = vmatpush.msra.mxu2 %v1009_v15  ;;  %1095 = vmatpush.msrb.mxu3 %v1010_v23 }
 0x119   :  { %6548 = vmatmul.msk.f32.vlgmr.msra.gmra.mxu2 %vm183_vm2, %v6545_v21  ;;  %6549 = vmatmul.msk.f32.vlgmr.msrb.gmra.mxu3 %vm183_vm2, %v6545_v21 }
 0x11b   :  { %v978_v26 = vpop.permute.xlu0 %977 }
 0x11c   :  { %v976_v35 = vpop.permute.xlu1 %975  ;;  %v991_v46 = vsel %vm987_vm7, %v978_v26, %v982_v57  ;;  %v993_v47 = vsel %vm987_vm7, %v7532_v28, %v978_v26  ;;  %v7638_v28 = vperm.slane %v6550_v3, 2  ;;  %v7640_v57 = vperm.slane %v6550_v3, 0 }
 0x11d   :  { %v990_v50 = vsel %vm987_vm7, %v976_v35, %v980_v13  ;;  %v992_v51 = vsel %vm987_vm7, %v7548_v37, %v976_v35  ;;  %v1011_v52 = vmul.f32 %v7614_v32, %v993_v47  ;;  %v1012_v53 = vmul.f32 %v7616_v6, %v991_v46 }
 0x11e   :  { %v1007_v4 = vmul.f32 %v7614_v32, %v992_v51  ;;  %v1008_v5 = vmul.f32 %v7616_v6, %v990_v50  ;;  %10328 = vst [vmem:[#allocation36_spill] sm:$0xff] %v7638_v28 }
 0x11f   :  { %1034 = vmatpush.msrb.mxu0 %v1011_v52  ;;  %1054 = vmatpush.msra.mxu1 %v1012_v53  ;;  %10329 = vst [vmem:[#allocation37_spill] sm:$0xff] %v7640_v57  ;;  %v224_v45 = vpop.f32.mrf.mxu2 }
 0x121   :  { %1035 = vmatpush.msrb.mxu0 %v1007_v4  ;;  %1055 = vmatpush.msra.mxu1 %v1008_v5  ;;  %v204_v50 = vpop.f32.mrf.mxu0 }
 0x122   :  { %6546 = vmatmul.msk.f32.vlgmr.msrb.gmra.mxu0 %vm183_vm2, %v6545_v21  ;;  %6547 = vmatmul.msk.f32.vlgmr.msra.gmra.mxu1 %vm183_vm2, %v6545_v21 }
 0x123   :  { %v1119_v37 = vpop.permute.xlu0 %1118  ;;  %1187 = vmatpush.msrb.mxu1 %v1145_v55 }
 0x124   :  { %v1107_v2 = vpop.permute.xlu1 %1106  ;;  %v1122_v61 = vsel %vm1120_vm8, %v7569_v1, %v1119_v37 }
 0x125   :  { %v1126_v0 = vsel %vm1120_vm8, %v1107_v2, %v1111_v29  ;;  %v1128_v10 = vsel %vm1120_vm8, %v1119_v37, %v1107_v2  ;;  %v1146_v13 = vmul.f32 %v7638_v28, %v1122_v61  ;;  %v6551_v29 = vld [vmem:[%s10303_s4 + $0x40] sm:$0xff]  ;;  %s10453_s4 = sld [smem:[#allocation60_spill]] }
 0x126   :  { %v1144_v14 = vmul.f32 %v7640_v57, %v1126_v0  ;;  %v1147_v17 = vmul.f32 %v7642_v60, %v1128_v10  ;;  %v264_v46 = vpop.f32.mrf.mxu3 }
 0x127   :  { %1207 = vmatpush.msrb.mxu2 %v1146_v13  ;;  %v244_v47 = vpop.f32.mrf.mxu2 }
 0x128   :  { %1227 = vmatpush.msra.mxu3 %v1147_v17  ;;  %1167 = vmatpush.msra.mxu0 %v1144_v14 }
 0x12b   :  { %v1117_v18 = vpop.permute.xlu0 %1116 }
 0x12c   :  { %v1105_v15 = vpop.permute.xlu1 %1104  ;;  %v1121_v1 = vsel %vm1120_vm8, %v7590_v12, %v1117_v18 }
 0x12d   :  { %v1127_v21 = vsel %vm1120_vm8, %v1117_v18, %v1105_v15  ;;  %v1142_v23 = vmul.f32 %v7638_v28, %v1121_v1 }
 0x12e   :  { %v1143_v3 = vmul.f32 %v7642_v60, %v1127_v21 }
 0x12f   :  { %1208 = vmatpush.msrb.mxu2 %v1142_v23  ;;  %v327_v52 = vpop.f32.mrf.mxu2 }
 0x130   :  { %1228 = vmatpush.msra.mxu3 %v1143_v3  ;;  %6554 = vmatmul.msk.f32.vlgmr.msrb.gmra.mxu2 %vm183_vm2, %v6551_v29  ;;  %v328_v3 = vadd.f32 %v327_v52, %v244_v47 }
 0x131   :  { %6555 = vmatmul.msk.f32.vlgmr.msra.gmra.mxu3 %vm183_vm2, %v6551_v29 }
 0x133   :  { %v1109_v30 = vpop.permute.xlu0 %1108 }
 0x134   :  { %v1123_v31 = vsel %vm1120_vm8, %v1109_v30, %v7590_v12  ;;  %v1125_v34 = vsel %vm1120_vm8, %v1105_v15, %v1109_v30 }
 0x135   :  { %v1140_v26 = vmul.f32 %v7640_v57, %v1125_v34  ;;  %v1141_v35 = vmul.f32 %v7618_v8, %v1123_v31  ;;  %v347_v51 = vpop.f32.mrf.mxu3  ;;  %v307_v53 = vpop.f32.mrf.mxu1 }
 0x136   :  { %v287_v12 = vpop.f32.mrf.mxu0  ;;  %v348_v21 = vadd.f32 %v347_v51, %v264_v46  ;;  %v308_v31 = vadd.f32 %v307_v53, %v224_v45 }
 0x137   :  { %1168 = vmatpush.msra.mxu0 %v1140_v26  ;;  %1188 = vmatpush.msrb.mxu1 %v1141_v35  ;;  %v288_v34 = vadd.f32 %v287_v12, %v204_v50 }
 0x138   :  { %6552 = vmatmul.msk.f32.vlgmr.msra.gmra.mxu0 %vm183_vm2, %v6551_v29  ;;  %6553 = vmatmul.msk.f32.vlgmr.msrb.gmra.mxu1 %vm183_vm2, %v6551_v29 }
 0x144   :  { %v456_v4 = vpop.f32.mrf.mxu2 }
 0x145   :  { %v481_v26 = vadd.f32 %v456_v4, %v328_v3 }
 0x148   :  { %v416_v5 = vpop.f32.mrf.mxu0  ;;  %v436_v37 = vpop.f32.mrf.mxu1 }
 0x149   :  { %v480_v60 = vadd.f32 %v436_v37, %v308_v31  ;;  %v479_v28 = vadd.f32 %v416_v5, %v288_v34 }
 0x14c   :  { %v476_v55 = vpop.f32.mrf.mxu3 }
 0x14d   :  { %v482_v30 = vadd.f32 %v476_v55, %v348_v21 }
 0x15b   :  { %v589_v61 = vpop.f32.mrf.mxu2 }
 0x15c   :  { %v614_v6 = vadd.f32 %v589_v61, %v481_v26  ;;  %v2359_v26 = vld [vmem:[%s10154_s9 + $0x8] sm:$0xff] }
 0x15e   :  { %v609_v2 = vpop.f32.mrf.mxu3 }
 0x15f   :  { %v549_v0 = vpop.f32.mrf.mxu0  ;;  %v569_v10 = vpop.f32.mrf.mxu1  ;;  %v615_v8 = vadd.f32 %v609_v2, %v482_v30 }
 0x160   :  { %v613_v7 = vadd.f32 %v569_v10, %v480_v60  ;;  %v612_v40 = vadd.f32 %v549_v0, %v479_v28 }
 0x163   :  { %v678_v14 = vpop.f32.mrf.mxu2 }
 0x164   :  { %v703_v63 = vadd.f32 %v678_v14, %v614_v6 }
 0x167   :  { %v698_v13 = vpop.f32.mrf.mxu3  ;;  %v638_v17 = vpop.f32.mrf.mxu0 }
 0x168   :  { %v658_v18 = vpop.f32.mrf.mxu1  ;;  %v704_v48 = vadd.f32 %v698_v13, %v615_v8  ;;  %v701_v55 = vadd.f32 %v638_v17, %v612_v40  ;;  %v1255_v17 = vpop.permute.xlu2 %1254 }
 0x169   :  { %v702_v52 = vadd.f32 %v658_v18, %v613_v7 }
 0x173   :  { %v811_v1 = vpop.f32.mrf.mxu2 }
 0x174   :  { %v831_v15 = vpop.f32.mrf.mxu3  ;;  %v836_v45 = vadd.f32 %v811_v1, %v703_v63 }
 0x175   :  { %v791_v29 = vpop.f32.mrf.mxu1  ;;  %v837_v46 = vadd.f32 %v831_v15, %v704_v48 }
 0x176   :  { %v771_v23 = vpop.f32.mrf.mxu0  ;;  %v835_v4 = vadd.f32 %v791_v29, %v702_v52 }
 0x177   :  { %v834_v2 = vadd.f32 %v771_v23, %v701_v55 }
 0x17f   :  { %v1241_v3 = vpop.permute.xlu1 %1240 }
 0x184   :  { %v944_v57 = vpop.f32.mrf.mxu2 }
 0x185   :  { %v969_v37 = vadd.f32 %v944_v57, %v836_v45 }
 0x188   :  { %v904_v32 = vpop.f32.mrf.mxu0  ;;  %v924_v54 = vpop.f32.mrf.mxu1 }
 0x189   :  { %v968_v5 = vadd.f32 %v924_v54, %v835_v4  ;;  %v967_v28 = vadd.f32 %v904_v32, %v834_v2 }
 0x18c   :  { %v964_v35 = vpop.f32.mrf.mxu3 }
 0x18d   :  { %v970_v53 = vadd.f32 %v964_v35, %v837_v46 }
 0x19c   :  { %v1077_v51 = vpop.f32.mrf.mxu2  ;;  %v1097_v47 = vpop.f32.mrf.mxu3 }
 0x19d   :  { %v1102_v61 = vadd.f32 %v1077_v51, %v969_v37  ;;  %v1103_v21 = vadd.f32 %v1097_v47, %v970_v53 }
 0x19f   :  { %v1037_v50 = vpop.f32.mrf.mxu0  ;;  %v1057_v12 = vpop.f32.mrf.mxu1 }
 0x1a0   :  { %v1101_v6 = vadd.f32 %v1057_v12, %v968_v5  ;;  %v1100_v40 = vadd.f32 %v1037_v50, %v967_v28  ;;  %v6556_v50 = vld [vmem:[%s10153_s8 + $0x10] sm:$0xff] }
 0x1b3   :  { %v1210_v8 = vpop.f32.mrf.mxu2 }
 0x1b4   :  { %v1230_v60 = vpop.f32.mrf.mxu3  ;;  %v1235_v48 = vadd.f32 %v1210_v8, %v1102_v61 }
 0x1b5   :  { %v1236_v0 = vadd.f32 %v1230_v60, %v1103_v21  ;;  %v1170_v10 = vpop.f32.mrf.mxu0  ;;  %v1190_v7 = vpop.f32.mrf.mxu1  ;;  %v6557_v60 = vld [vmem:[%s10153_s8 + $0x18] sm:$0xff] }
 0x1b6   :  { %v1234_v63 = vadd.f32 %v1190_v7, %v1101_v6  ;;  %v1245_v13 = vadd.f32 %v1241_v3, %v1235_v48  ;;  %v1233_v18 = vadd.f32 %v1170_v10, %v1100_v40 }
 0x1b7   :  { %v1246_v14 = vadd.f32 %v1241_v3, %v1236_v0 }
 0x1b8   :  { %v1244_v15 = vadd.f32 %v1241_v3, %v1234_v63  ;;  %vm1249_vm9 = vcmp.gt.f32.partialorder %v1245_v13, 0.0  ;;  %v1259_v54 = vmul.f32 %v1255_v17, %v1245_v13  ;;  %v1243_v29 = vadd.f32 %v1241_v3, %v1233_v18  ;;  %v1281_v18 = vld [vmem:[%s10153_s8] sm:$0xff] }
 0x1b9   :  { %vm1250_vm10 = vcmp.gt.f32.partialorder %v1246_v14, 0.0  ;;  %v1260_v57 = vmul.f32 %v1255_v17, %v1246_v14 }
 0x1ba   :  { %vm1248_vm11 = vcmp.gt.f32.partialorder %v1244_v15, 0.0  ;;  %v1258_v1 = vmul.f32 %v1255_v17, %v1244_v15  ;;  %v7677_v23 = vsel %vm1249_vm9, %v1245_v13, %v1259_v54  ;;  %v1257_v31 = vmul.f32 %v1255_v17, %v1243_v29 }
 0x1bb   :  { %v7679_v32 = vsel %vm1250_vm10, %v1246_v14, %v1260_v57  ;;  %1287 = vrot.lane.b32.xlu1 %v7677_v23, %s6959_s17  ;;  %vm1247_vm12 = vcmp.gt.f32.partialorder %v1243_v29, 0.0 }
 0x1bc   :  { %v7681_v30 = vsel %vm1248_vm11, %v1244_v15, %v1258_v1  ;;  %1289 = vrot.lane.b32.xlu2 %v7679_v32, %s6959_s17  ;;  %v7689_v34 = vsel %vm1247_vm12, %v1243_v29, %v1257_v31  ;;  %vm5048_vm11 = vcmask 1040384   ;;  %vm5041_vm12 = vcmask 7168  }
 0x1bd   :  { %1285 = vrot.lane.b32.xlu0 %v7681_v30, %s6959_s17 }
 0x1c3   :  { %1267 = vrot.lane.b32.xlu1 %v7681_v30, %s6960_s5 }
 0x1c4   :  { %1269 = vrot.lane.b32.xlu2 %v7677_v23, %s6960_s5 }
 0x1c5   :  { %1283 = vrot.lane.b32.xlu0 %v7689_v34, %s6959_s17 }
 0x1cb   :  { %1265 = vrot.lane.b32.xlu1 %v7689_v34, %s6960_s5 }
 0x1cc   :  { %1501 = vrot.lane.b32.xlu2 %v7681_v30, %s6961_s22 }
 0x1cd   :  { %1271 = vrot.lane.b32.xlu0 %v7679_v32, %s6960_s5 }
 0x1d3   :  { %1505 = vrot.lane.b32.xlu1 %v7679_v32, %s6961_s22 }
 0x1d4   :  { %1499 = vrot.lane.b32.xlu2 %v7689_v34, %s6961_s22 }
 0x1d5   :  { %1503 = vrot.lane.b32.xlu0 %v7677_v23, %s6961_s22 }
 0x1db   :  { %1628 = vrot.lane.b32.xlu1 %v7677_v23, %s6962_s23 }
 0x1dc   :  { %1630 = vrot.lane.b32.xlu2 %v7679_v32, %s6962_s23 }
 0x1dd   :  { %1626 = vrot.lane.b32.xlu0 %v7681_v30, %s6962_s23 }
 0x1e3   :  { %1862 = vrot.lane.b32.xlu1 %v7677_v23, %s6963_s1 }
 0x1e4   :  { %1864 = vrot.lane.b32.xlu2 %v7679_v32, %s6963_s1 }
 0x1e5   :  { %1624 = vrot.lane.b32.xlu0 %v7689_v34, %s6962_s23 }
 0x1eb   :  { %1860 = vrot.lane.b32.xlu1 %v7681_v30, %s6963_s1 }
 0x1ec   :  { %1987 = vrot.lane.b32.xlu2 %v7677_v23, %s6964_s24 }
 0x1ed   :  { %1858 = vrot.lane.b32.xlu0 %v7689_v34, %s6963_s1 }
 0x1f3   :  { %1983 = vrot.lane.b32.xlu1 %v7689_v34, %s6964_s24 }
 0x1f4   :  { %1985 = vrot.lane.b32.xlu2 %v7681_v30, %s6964_s24 }
 0x1f5   :  { %1989 = vrot.lane.b32.xlu0 %v7679_v32, %s6964_s24 }
 0x1fb   :  { %2114 = vrot.lane.b32.xlu1 %v7679_v32, %s6965_s28 }
 0x1fc   :  { %2108 = vrot.lane.b32.xlu2 %v7689_v34, %s6965_s28 }
 0x1fd   :  { %2112 = vrot.lane.b32.xlu0 %v7677_v23, %s6965_s28 }
 0x203   :  { %2237 = vrot.lane.b32.xlu1 %v7677_v23, %s10331_s26 }
 0x204   :  { %2239 = vrot.lane.b32.xlu2 %v7679_v32, %s10331_s26 }
 0x205   :  { %2110 = vrot.lane.b32.xlu0 %v7681_v30, %s6965_s28 }
 0x20b   :  { %2235 = vrot.lane.b32.xlu1 %v7681_v30, %s10331_s26 }
 0x20c   :  { %2367 = vperm.xlu2 %6918, %v2359_v26  }
 0x20d   :  { %2233 = vrot.lane.b32.xlu0 %v7689_v34, %s10331_s26 }
 0x216   :  { %v1290_v35 = vpop.permute.xlu2 %1289 }
 0x21e   :  { %v1270_v46 = vpop.permute.xlu2 %1269 }
 0x226   :  { %v1502_v12 = vpop.permute.xlu2 %1501 }
 0x22d   :  { %v1288_v51 = vpop.permute.xlu1 %1287 }
 0x22e   :  { %v1291_v47 = vsel %vm153_vm0, %v1288_v51, %v1290_v35  ;;  %v1500_v28 = vpop.permute.xlu2 %1499 }
 0x22f   :  { %v1286_v52 = vpop.permute.xlu0 %1285  ;;  %v1298_v55 = vmul.f32 %v1291_v47, %v7268_v36  ;;  %v1509_v6 = vsel %vm366_vm3, %v1500_v28, %v1502_v12 }
 0x230   :  { %v1292_v45 = vsel %vm153_vm0, %v1286_v52, %v1288_v51  ;;  %v1512_v13 = vmul.f32 %v1509_v6, %v7388_v42 }
 0x231   :  { %v1297_v53 = vmul.f32 %v1292_v45, %v7248_v27  ;;  %1393 = vmatpush.msrb.mxu3 %v1298_v55 }
 0x232   :  { %6564 = vmatmul.msk.f32.vlgmr.msrb.gmra.mxu3 %vm1302_vm13, %v6556_v50 }
 0x233   :  { %1370 = vmatpush.msra.mxu2 %v1297_v53  ;;  %v6574_v53 = vld [vmem:[%s10153_s8 + $0x20] sm:$0xff] }
 0x234   :  { %6562 = vmatmul.msk.f32.vlgmr.msra.gmra.mxu2 %vm1302_vm13, %v6556_v50 }
 0x235   :  { %v1268_v4 = vpop.permute.xlu1 %1267 }
 0x236   :  { %v1274_v2 = vsel %vm109_vm1, %v1268_v4, %v1270_v46  ;;  %v1631_v51 = vpop.permute.xlu2 %1630 }
 0x237   :  { %v1284_v37 = vpop.permute.xlu0 %1283  ;;  %v1279_v5 = vmul.f32 %v1274_v2, %v7293_v49 }
 0x238   :  { %v1293_v61 = vsel %vm153_vm0, %v1284_v37, %v1286_v52  ;;  %v1294_v21 = vsel %vm153_vm0, %v1290_v35, %v1284_v37 }
 0x239   :  { %v1295_v3 = vmul.f32 %v1294_v21, %v7260_v33  ;;  %v1296_v8 = vmul.f32 %v1293_v61, %v7233_v19  ;;  %1468 = vmatpush.msrb.mxu2 %v1279_v5  ;;  %v6575_v21 = vld [vmem:[%s10153_s8 + $0x28] sm:$0xff] }
 0x23a   :  { %6565 = vmatmul.msk.f32.gmra.mxu3 %vm1302_vm13, %v6557_v60 }
 0x23b   :  { %1324 = vmatpush.msrb.mxu0 %v1295_v3  ;;  %1347 = vmatpush.msra.mxu1 %v1296_v8 }
 0x23c   :  { %6558 = vmatmul.msk.f32.vlgmr.msrb.gmra.mxu0 %vm1302_vm13, %v6556_v50  ;;  %6560 = vmatmul.msk.f32.vlgmr.msra.gmra.mxu1 %vm1302_vm13, %v6556_v50 }
 0x23d   :  { %6563 = vmatmul.msk.f32.gmra.mxu2 %vm1302_vm13, %v6557_v60  ;;  %v1266_v48 = vpop.permute.xlu1 %1265 }
 0x23e   :  { %v1275_v0 = vsel %vm109_vm1, %v1266_v48, %v1268_v4 }
 0x23f   :  { %v1272_v10 = vpop.permute.xlu0 %1271  ;;  %v1278_v7 = vmul.f32 %v1275_v0, %v7239_v22 }
 0x240   :  { %v1273_v40 = vsel %vm109_vm1, %v1270_v46, %v1272_v10  ;;  %v1276_v63 = vsel %vm109_vm1, %v1272_v10, %v1266_v48  ;;  %v1282_v46 = vld [vmem:[%s10153_s8 + $0x8] sm:$0xff]  ;;  %v6585_v10 = vld [vmem:[%s10153_s8 + $0x38] sm:$0xff] }
 0x241   :  { %v1277_v14 = vmul.f32 %v1276_v63, %v7318_v58  ;;  %v1280_v17 = vmul.f32 %v1273_v40, %v7321_v59  ;;  %1445 = vmatpush.msrb.mxu1 %v1278_v7 }
 0x243   :  { %1562 = vmatpush.msra.mxu1 %v1512_v13  ;;  %1422 = vmatpush.msra.mxu0 %v1277_v14 }
 0x244   :  { %1491 = vmatpush.msra.mxu3 %v1280_v17  ;;  %6559 = vmatmul.msk.f32.gmra.mxu0 %vm1302_vm13, %v6557_v60 }
 0x245   :  { %6561 = vmatmul.msk.f32.gmra.mxu1 %vm1302_vm13, %v6557_v60  ;;  %6570 = vmatmul.msk.f32.vlgmr.msrb.gmra.mxu2 %vm1302_vm13, %v1281_v18  ;;  %v1506_v15 = vpop.permute.xlu1 %1505 }
 0x246   :  { %6572 = vmatmul.msk.f32.vlgmr.msra.gmra.mxu3 %vm1302_vm13, %v1281_v18  ;;  %v1510_v54 = vsel %vm366_vm3, %v1506_v15, %v1500_v28  ;;  %v6584_v28 = vld [vmem:[%s10153_s8 + $0x30] sm:$0xff] }
 0x247   :  { %v1504_v57 = vpop.permute.xlu0 %1503  ;;  %v1511_v1 = vmul.f32 %v1510_v54, %v7386_v39 }
 0x248   :  { %v1507_v29 = vsel %vm366_vm3, %v1504_v57, %v1506_v15  ;;  %v1508_v31 = vsel %vm366_vm3, %v1502_v12, %v1504_v57  ;;  %v6594_v15 = vld [vmem:[%s10153_s8 + $0x40] sm:$0xff] }
 0x249   :  { %v1513_v26 = vmul.f32 %v1508_v31, %v7351_v20  ;;  %v1514_v35 = vmul.f32 %v1507_v29, %v7324_v62  ;;  %1539 = vmatpush.msrb.mxu0 %v1511_v1  ;;  %v10332_v57 = vld [vmem:[#allocation28_spill] sm:$0xff] }
 0x24b   :  { %1585 = vmatpush.msra.mxu2 %v1513_v26  ;;  %1608 = vmatpush.msrb.mxu3 %v1514_v35  ;;  %v6595_v35 = vld [vmem:[%s10153_s8 + $0x48] sm:$0xff] }
 0x24c   :  { %6566 = vmatmul.msk.f32.vlgmr.msra.gmra.mxu0 %vm1302_vm13, %v1281_v18 }
 0x24d   :  { %6568 = vmatmul.msk.f32.vlgmr.msrb.gmra.mxu1 %vm1302_vm13, %v1281_v18  ;;  %6571 = vmatmul.msk.f32.gmra.mxu2 %vm1302_vm13, %v1282_v46  ;;  %v1629_v47 = vpop.permute.xlu1 %1628 }
 0x24e   :  { %6573 = vmatmul.msk.f32.gmra.mxu3 %vm1302_vm13, %v1282_v46  ;;  %v1632_v52 = vsel %vm499_vm4, %v1629_v47, %v1631_v51 }
 0x24f   :  { %v1627_v55 = vpop.permute.xlu0 %1626  ;;  %v1639_v45 = vmul.f32 %v1632_v52, %v7422_v9  ;;  %v10334_v52 = vld [vmem:[#allocation30_spill] sm:$0xff] }
 0x250   :  { %v1633_v50 = vsel %vm499_vm4, %v1627_v55, %v1629_v47 }
 0x251   :  { %v1638_v12 = vmul.f32 %v1633_v50, %v7412_v56  ;;  %1733 = vmatpush.msra.mxu3 %v1639_v45 }
 0x253   :  { %1710 = vmatpush.msrb.mxu2 %v1638_v12 }
 0x254   :  { %6567 = vmatmul.msk.f32.gmra.mxu0 %vm1302_vm13, %v1282_v46 }
 0x255   :  { %6569 = vmatmul.msk.f32.gmra.mxu1 %vm1302_vm13, %v1282_v46  ;;  %6580 = vmatmul.msk.f32.vlgmr.msra.gmra.mxu2 %vm1302_vm13, %v6574_v53 }
 0x256   :  { %6582 = vmatmul.msk.f32.vlgmr.msrb.gmra.mxu3 %vm1302_vm13, %v6574_v53  ;;  %1819 = vmatpush.msra.mxu2 %v7677_v23  ;;  %v1863_v23 = vpop.permute.xlu1 %1862 }
 0x257   :  { %1842 = vmatpush.msrb.mxu3 %v7679_v32  ;;  %v1625_v4 = vpop.permute.xlu0 %1624  ;;  %v1865_v32 = vpop.permute.xlu2 %1864 }
 0x258   :  { %v1634_v2 = vsel %vm499_vm4, %v1625_v4, %v1627_v55  ;;  %v1635_v37 = vsel %vm499_vm4, %v1631_v51, %v1625_v4  ;;  %v1866_v60 = vsel %vm721_vm5, %v1863_v23, %v1865_v32  ;;  %v10333_v51 = vld [vmem:[#allocation29_spill] sm:$0xff]  ;;  %v6604_v4 = vld [vmem:[%s10153_s8 + $0x50] sm:$0xff] }
 0x259   :  { %v1636_v5 = vmul.f32 %v1635_v37, %v7439_v24  ;;  %v1637_v61 = vmul.f32 %v1634_v2, %v7441_v25  ;;  %v1872_v48 = vmul.f32 %v1866_v60, %v7474_v41  ;;  %v10335_v2 = vld [vmem:[#allocation31_spill] sm:$0xff] }
 0x25b   :  { %1664 = vmatpush.msra.mxu0 %v1636_v5  ;;  %1687 = vmatpush.msrb.mxu1 %v1637_v61  ;;  %v10336_v5 = vld [vmem:[#allocation32_spill] sm:$0xff] }
 0x25c   :  { %6576 = vmatmul.msk.f32.vlgmr.msrb.gmra.mxu0 %vm1302_vm13, %v6574_v53 }
 0x25d   :  { %6578 = vmatmul.msk.f32.vlgmr.msra.gmra.mxu1 %vm1302_vm13, %v6574_v53  ;;  %6581 = vmatmul.msk.f32.gmra.mxu2 %vm1302_vm13, %v6575_v21 }
 0x25e   :  { %6583 = vmatmul.msk.f32.gmra.mxu3 %vm1302_vm13, %v6575_v21  ;;  %1773 = vmatpush.msrb.mxu0 %v7689_v34 }
 0x25f   :  { %1796 = vmatpush.msra.mxu1 %v7681_v30  ;;  %v1859_v3 = vpop.permute.xlu0 %1858  ;;  %v1861_v30 = vpop.permute.xlu1 %1860 }
 0x260   :  { %v1869_v8 = vsel %vm721_vm5, %v1865_v32, %v1859_v3  ;;  %v1868_v34 = vsel %vm721_vm5, %v1859_v3, %v1861_v30  ;;  %v1867_v0 = vsel %vm721_vm5, %v1861_v30, %v1863_v23  ;;  %v1988_v40 = vpop.permute.xlu2 %1987  ;;  %v6605_v3 = vld [vmem:[%s10153_s8 + $0x58] sm:$0xff] }
 0x261   :  { %v1873_v6 = vmul.f32 %v1869_v8, %v7478_v44  ;;  %v1870_v7 = vmul.f32 %v1868_v34, %v7476_v43  ;;  %v1871_v63 = vmul.f32 %v1867_v0, %v7466_v38  ;;  %v10337_v8 = vld [vmem:[#allocation33_spill] sm:$0xff] }
 0x264   :  { %6577 = vmatmul.msk.f32.gmra.mxu0 %vm1302_vm13, %v6575_v21 }
 0x265   :  { %6579 = vmatmul.msk.f32.gmra.mxu1 %vm1302_vm13, %v6575_v21  ;;  %6590 = vmatmul.msk.f32.vlgmr.msrb.gmra.mxu2 %vm1302_vm13, %v6584_v28 }
 0x266   :  { %6592 = vmatmul.msk.f32.vlgmr.msra.gmra.mxu3 %vm1302_vm13, %v6584_v28  ;;  %1944 = vmatpush.msrb.mxu2 %v1872_v48 }
 0x267   :  { %1967 = vmatpush.msra.mxu3 %v1873_v6  ;;  %v1990_v13 = vpop.permute.xlu0 %1989  ;;  %v1984_v14 = vpop.permute.xlu1 %1983  ;;  %v10338_v6 = vld [vmem:[#allocation34_spill] sm:$0xff] }
 0x268   :  { %v1991_v17 = vsel %vm854_vm6, %v1988_v40, %v1990_v13  ;;  %v1994_v18 = vsel %vm854_vm6, %v1990_v13, %v1984_v14  ;;  %v1986_v29 = vpop.permute.xlu2 %1985  ;;  %v10340_v13 = vld [vmem:[#allocation38_spill] sm:$0xff] }
 0x269   :  { %v1997_v54 = vmul.f32 %v1991_v17, %v7519_v11  ;;  %v1998_v1 = vmul.f32 %v1994_v18, %v10332_v57  ;;  %v1993_v31 = vsel %vm854_vm6, %v1984_v14, %v1986_v29  ;;  %v1992_v26 = vsel %vm854_vm6, %v1986_v29, %v1988_v40  ;;  %v10339_v40 = vld [vmem:[#allocation36_spill] sm:$0xff] }
 0x26a   :  { %v1995_v47 = vmul.f32 %v1993_v31, %v10333_v51  ;;  %v1996_v55 = vmul.f32 %v1992_v26, %v10334_v52  ;;  %v10342_v31 = vld [vmem:[#allocation35_spill] sm:$0xff] }
 0x26c   :  { %6586 = vmatmul.msk.f32.vlgmr.msra.gmra.mxu0 %vm1302_vm13, %v6584_v28 }
 0x26d   :  { %6588 = vmatmul.msk.f32.vlgmr.msrb.gmra.mxu1 %vm1302_vm13, %v6584_v28  ;;  %6591 = vmatmul.msk.f32.gmra.mxu2 %vm1302_vm13, %v6585_v10 }
 0x26e   :  { %6593 = vmatmul.msk.f32.gmra.mxu3 %vm1302_vm13, %v6585_v10  ;;  %1898 = vmatpush.msra.mxu0 %v1870_v7  ;;  %v6614_v7 = vld [vmem:[%s10153_s8 + $0x60] sm:$0xff] }
 0x26f   :  { %1921 = vmatpush.msrb.mxu1 %v1871_v63  ;;  %v2113_v46 = vpop.permute.xlu0 %2112  ;;  %v2115_v45 = vpop.permute.xlu1 %2114 }
 0x270   :  { %v2109_v50 = vpop.permute.xlu2 %2108  ;;  %v2116_v12 = vsel %vm987_vm7, %v2113_v46, %v2115_v45 }
 0x271   :  { %v2119_v53 = vsel %vm987_vm7, %v2115_v45, %v2109_v50  ;;  %v2122_v37 = vmul.f32 %v2116_v12, %v10335_v2 }
 0x272   :  { %v2123_v61 = vmul.f32 %v2119_v53, %v10336_v5 }
 0x274   :  { %6587 = vmatmul.msk.f32.gmra.mxu0 %vm1302_vm13, %v6585_v10 }
 0x275   :  { %6589 = vmatmul.msk.f32.gmra.mxu1 %vm1302_vm13, %v6585_v10  ;;  %6600 = vmatmul.msk.f32.vlgmr.msra.gmra.mxu2 %vm1302_vm13, %v6594_v15 }
 0x276   :  { %6602 = vmatmul.msk.f32.vlgmr.msrb.gmra.mxu3 %vm1302_vm13, %v6594_v15  ;;  %2069 = vmatpush.msra.mxu2 %v1997_v54  ;;  %v6615_v54 = vld [vmem:[%s10153_s8 + $0x68] sm:$0xff] }
 0x277   :  { %2092 = vmatpush.msrb.mxu3 %v1998_v1  ;;  %v2111_v21 = vpop.permute.xlu0 %2110  ;;  %v2238_v28 = vpop.permute.xlu1 %2237  ;;  %v10341_v1 = vld [vmem:[#allocation37_spill] sm:$0xff] }
 0x278   :  { %v2118_v23 = vsel %vm987_vm7, %v2109_v50, %v2111_v21  ;;  %v2117_v32 = vsel %vm987_vm7, %v2111_v21, %v2113_v46  ;;  %v2240_v34 = vpop.permute.xlu2 %2239  ;;  %v2358_v46 = vld [vmem:[%s10154_s9] sm:$0xff]  ;;  %s10452_s9 = sld [smem:[#allocation59_spill]] }
 0x279   :  { %v2120_v60 = vmul.f32 %v2118_v23, %v10337_v8  ;;  %v2121_v48 = vmul.f32 %v2117_v32, %v10338_v6  ;;  %v2241_v0 = vsel %vm1120_vm8, %v2238_v28, %v2240_v34  ;;  %2362 = vperm.xlu0 %6919, %v2358_v46  }
 0x27a   :  { %v2247_v63 = vmul.f32 %v2241_v0, %v10339_v40 }
 0x27c   :  { %6596 = vmatmul.msk.f32.vlgmr.msrb.gmra.mxu0 %vm1302_vm13, %v6594_v15 }
 0x27d   :  { %6598 = vmatmul.msk.f32.vlgmr.msra.gmra.mxu1 %vm1302_vm13, %v6594_v15  ;;  %6601 = vmatmul.msk.f32.gmra.mxu2 %vm1302_vm13, %v6595_v35 }
 0x27e   :  { %6603 = vmatmul.msk.f32.gmra.mxu3 %vm1302_vm13, %v6595_v35  ;;  %2023 = vmatpush.msrb.mxu0 %v1995_v47  ;;  %v6625_v47 = vld [vmem:[%s10153_s8 + $0x78] sm:$0xff] }
 0x27f   :  { %2046 = vmatpush.msra.mxu1 %v1996_v55  ;;  %v2234_v30 = vpop.permute.xlu0 %2233  ;;  %v2236_v17 = vpop.permute.xlu1 %2235  ;;  %v6634_v55 = vld [vmem:[%s10153_s8 + $0x80] sm:$0xff] }
 0x280   :  { %v2244_v10 = vsel %vm1120_vm8, %v2240_v34, %v2234_v30  ;;  %v2243_v18 = vsel %vm1120_vm8, %v2234_v30, %v2236_v17  ;;  %v2242_v15 = vsel %vm1120_vm8, %v2236_v17, %v2238_v28 }
 0x281   :  { %v2248_v14 = vmul.f32 %v2244_v10, %v10340_v13  ;;  %v2245_v29 = vmul.f32 %v2243_v18, %v10341_v1  ;;  %v2246_v26 = vmul.f32 %v2242_v15, %v10342_v31 }
 0x284   :  { %6597 = vmatmul.msk.f32.gmra.mxu0 %vm1302_vm13, %v6595_v35 }
 0x285   :  { %6599 = vmatmul.msk.f32.gmra.mxu1 %vm1302_vm13, %v6595_v35  ;;  %6610 = vmatmul.msk.f32.vlgmr.msrb.gmra.mxu2 %vm1302_vm13, %v6604_v4  ;;  %v6624_v35 = vld [vmem:[%s10153_s8 + $0x70] sm:$0xff] }
 0x286   :  { %6612 = vmatmul.msk.f32.vlgmr.msra.gmra.mxu3 %vm1302_vm13, %v6604_v4  ;;  %2194 = vmatpush.msrb.mxu2 %v2122_v37 }
 0x287   :  { %2217 = vmatpush.msra.mxu3 %v2123_v61 }
 0x28c   :  { %6606 = vmatmul.msk.f32.vlgmr.msra.gmra.mxu0 %vm1302_vm13, %v6604_v4 }
 0x28d   :  { %6608 = vmatmul.msk.f32.vlgmr.msrb.gmra.mxu1 %vm1302_vm13, %v6604_v4  ;;  %6611 = vmatmul.msk.f32.gmra.mxu2 %vm1302_vm13, %v6605_v3  ;;  %v6635_v4 = vld [vmem:[%s10153_s8 + $0x88] sm:$0xff]  ;;  %s2378_s8 = sld [smem:[#allocation3]] }
 0x28e   :  { %6613 = vmatmul.msk.f32.gmra.mxu3 %vm1302_vm13, %v6605_v3  ;;  %2148 = vmatpush.msra.mxu0 %v2120_v60 }
 0x28f   :  { %2171 = vmatpush.msrb.mxu1 %v2121_v48 }
 0x294   :  { %6607 = vmatmul.msk.f32.gmra.mxu0 %vm1302_vm13, %v6605_v3 }
 0x295   :  { %6609 = vmatmul.msk.f32.gmra.mxu1 %vm1302_vm13, %v6605_v3  ;;  %6620 = vmatmul.msk.f32.vlgmr.msra.gmra.mxu2 %vm1302_vm13, %v6614_v7 }
 0x296   :  { %6622 = vmatmul.msk.f32.vlgmr.msrb.gmra.mxu3 %vm1302_vm13, %v6614_v7  ;;  %2319 = vmatpush.msra.mxu2 %v2247_v63 }
 0x297   :  { %2342 = vmatpush.msrb.mxu3 %v2248_v14 }
 0x29c   :  { %6616 = vmatmul.msk.f32.vlgmr.msrb.gmra.mxu0 %vm1302_vm13, %v6614_v7 }
 0x29d   :  { %6618 = vmatmul.msk.f32.vlgmr.msra.gmra.mxu1 %vm1302_vm13, %v6614_v7  ;;  %6621 = vmatmul.msk.f32.gmra.mxu2 %vm1302_vm13, %v6615_v54 }
 0x29e   :  { %6623 = vmatmul.msk.f32.gmra.mxu3 %vm1302_vm13, %v6615_v54  ;;  %2273 = vmatpush.msrb.mxu0 %v2245_v29 }
 0x29f   :  { %2296 = vmatpush.msra.mxu1 %v2246_v26 }
 0x2a4   :  { %6617 = vmatmul.msk.f32.gmra.mxu0 %vm1302_vm13, %v6615_v54 }
 0x2a5   :  { %6619 = vmatmul.msk.f32.gmra.mxu1 %vm1302_vm13, %v6615_v54  ;;  %6630 = vmatmul.msk.f32.vlgmr.msrb.gmra.mxu2 %vm1302_vm13, %v6624_v35 }
 0x2a6   :  { %6632 = vmatmul.msk.f32.vlgmr.msra.gmra.mxu3 %vm1302_vm13, %v6624_v35 }
 0x2ac   :  { %6626 = vmatmul.msk.f32.vlgmr.msra.gmra.mxu0 %vm1302_vm13, %v6624_v35 }
 0x2ad   :  { %6628 = vmatmul.msk.f32.vlgmr.msrb.gmra.mxu1 %vm1302_vm13, %v6624_v35  ;;  %6631 = vmatmul.msk.f32.gmra.mxu2 %vm1302_vm13, %v6625_v47 }
 0x2ae   :  { %6633 = vmatmul.msk.f32.gmra.mxu3 %vm1302_vm13, %v6625_v47 }
 0x2b4   :  { %6627 = vmatmul.msk.f32.gmra.mxu0 %vm1302_vm13, %v6625_v47 }
 0x2b5   :  { %6629 = vmatmul.msk.f32.gmra.mxu1 %vm1302_vm13, %v6625_v47  ;;  %6640 = vmatmul.msk.f32.vlgmr.msra.gmra.mxu2 %vm1302_vm13, %v6634_v55  ;;  %v7972_v45 = vpop.f32.mrf.mxu3 }
 0x2b6   :  { %6642 = vmatmul.msk.f32.vlgmr.msrb.gmra.mxu3 %vm1302_vm13, %v6634_v55 }
 0x2b7   :  { %v7974_v50 = vpop.f32.mrf.mxu2 }
 0x2b9   :  { %v7976_v12 = vpop.f32.mrf.mxu0  ;;  %v7978_v53 = vpop.f32.mrf.mxu1 }
 0x2bc   :  { %6636 = vmatmul.msk.f32.vlgmr.msrb.gmra.mxu0 %vm1302_vm13, %v6634_v55 }
 0x2bd   :  { %6638 = vmatmul.msk.f32.vlgmr.msra.gmra.mxu1 %vm1302_vm13, %v6634_v55  ;;  %6641 = vmatmul.msk.f32.gmra.mxu2 %vm1302_vm13, %v6635_v4  ;;  %v1398_v61 = vpop.f32.mrf.mxu3 }
 0x2be   :  { %6643 = vmatmul.msk.f32.gmra.mxu3 %vm1302_vm13, %v6635_v4 }
 0x2c0   :  { %v1375_v37 = vpop.f32.mrf.mxu2 }
 0x2c1   :  { %v7987_v21 = vpop.f32.mrf.mxu0 }
 0x2c2   :  { %v7989_v23 = vpop.f32.mrf.mxu1 }
 0x2c4   :  { %6637 = vmatmul.msk.f32.gmra.mxu0 %vm1302_vm13, %v6635_v4 }
 0x2c5   :  { %6639 = vmatmul.msk.f32.gmra.mxu1 %vm1302_vm13, %v6635_v4 }
 0x2c8   :  { %v7993_v32 = vpop.f32.mrf.mxu2 }
 0x2c9   :  { %10343 = vst [vmem:[#allocation39_spill] sm:$0xff] %v7993_v32  ;;  %v7995_v3 = vpop.f32.mrf.mxu3  ;;  %v1424_v60 = vpop.f32.mrf.mxu0 }
 0x2ca   :  { %v1447_v28 = vpop.f32.mrf.mxu1  ;;  %v1425_v19 = vadd.f32 %v1424_v60, %v7976_v12 }
 0x2cb   :  { %v1448_v42 = vadd.f32 %v1447_v28, %v7978_v53 }
 0x2d0   :  { %v1473_v48 = vpop.f32.mrf.mxu2 }
 0x2d1   :  { %v1496_v30 = vpop.f32.mrf.mxu3  ;;  %v7997_v34 = vpop.f32.mrf.mxu0  ;;  %v1474_v22 = vadd.f32 %v1473_v48, %v1375_v37 }
 0x2d2   :  { %v7999_v0 = vpop.f32.mrf.mxu1 }
 0x2d8   :  { %v8001_v10 = vpop.f32.mrf.mxu2 }
 0x2d9   :  { %10344 = vst [vmem:[#allocation40_spill] sm:$0xff] %v8001_v10  ;;  %v8003_v7 = vpop.f32.mrf.mxu3  ;;  %v1541_v63 = vpop.f32.mrf.mxu0 }
 0x2da   :  { %v1564_v14 = vpop.f32.mrf.mxu1 }
 0x2db   :  { %v1617_v16 = vadd.f32 %v1564_v14, %v1448_v42 }
 0x2e0   :  { %v1590_v17 = vpop.f32.mrf.mxu2 }
 0x2e1   :  { %v1613_v18 = vpop.f32.mrf.mxu3  ;;  %v8005_v15 = vpop.f32.mrf.mxu0 }
 0x2e2   :  { %v8007_v54 = vpop.f32.mrf.mxu1 }
 0x2e8   :  { %v8009_v29 = vpop.f32.mrf.mxu2 }
 0x2e9   :  { %10345 = vst [vmem:[#allocation41_spill] sm:$0xff] %v8009_v29  ;;  %v8011_v26 = vpop.f32.mrf.mxu3  ;;  %v1666_v35 = vpop.f32.mrf.mxu0 }
 0x2ea   :  { %10346 = vst [vmem:[#allocation42_spill] sm:$0xff] %v8011_v26  ;;  %v1689_v46 = vpop.f32.mrf.mxu1 }
 0x2eb   :  { %v1742_v29 = vadd.f32 %v1689_v46, %v1617_v16 }
 0x2f0   :  { %v1715_v47 = vpop.f32.mrf.mxu2 }
 0x2f1   :  { %v1738_v55 = vpop.f32.mrf.mxu3  ;;  %v8013_v4 = vpop.f32.mrf.mxu0 }
 0x2f2   :  { %v8015_v31 = vpop.f32.mrf.mxu1 }
 0x2f8   :  { %v8017_v1 = vpop.f32.mrf.mxu2 }
 0x2f9   :  { %10347 = vst [vmem:[#allocation43_spill] sm:$0xff] %v8017_v1  ;;  %v8019_v40 = vpop.f32.mrf.mxu3  ;;  %v1775_v13 = vpop.f32.mrf.mxu0  ;;  %v1616_v1 = vadd.f32 %v1541_v63, %v1425_v19 }
 0x2fa   :  { %10348 = vst [vmem:[#allocation44_spill] sm:$0xff] %v8019_v40  ;;  %v1798_v5 = vpop.f32.mrf.mxu1 }
 0x300   :  { %v1824_v2 = vpop.f32.mrf.mxu2 }
 0x301   :  { %v1847_v57 = vpop.f32.mrf.mxu3  ;;  %v8021_v11 = vpop.f32.mrf.mxu0 }
 0x302   :  { %v8023_v6 = vpop.f32.mrf.mxu1 }
 0x308   :  { %v8025_v52 = vpop.f32.mrf.mxu2 }
 0x309   :  { %10349 = vst [vmem:[#allocation45_spill] sm:$0xff] %v8025_v52  ;;  %v8027_v8 = vpop.f32.mrf.mxu3  ;;  %v1900_v41 = vpop.f32.mrf.mxu0 }
 0x30a   :  { %10350 = vst [vmem:[#allocation46_spill] sm:$0xff] %v8027_v8  ;;  %v1923_v38 = vpop.f32.mrf.mxu1 }
 0x310   :  { %v1949_v51 = vpop.f32.mrf.mxu2 }
 0x311   :  { %v1972_v44 = vpop.f32.mrf.mxu3  ;;  %v8029_v43 = vpop.f32.mrf.mxu0 }
 0x312   :  { %v8031_v9 = vpop.f32.mrf.mxu1 }
 0x318   :  { %v8033_v24 = vpop.f32.mrf.mxu2 }
 0x319   :  { %10351 = vst [vmem:[#allocation47_spill] sm:$0xff] %v8033_v24  ;;  %v8035_v62 = vpop.f32.mrf.mxu3  ;;  %v2025_v39 = vpop.f32.mrf.mxu0  ;;  %v1497_v24 = vadd.f32 %v1496_v30, %v1398_v61 }
 0x31a   :  { %10352 = vst [vmem:[#allocation48_spill] sm:$0xff] %v8035_v62  ;;  %v2048_v56 = vpop.f32.mrf.mxu1  ;;  %v1622_v62 = vadd.f32 %v1590_v17, %v1474_v22 }
 0x31b   :  { %v1623_v26 = vadd.f32 %v1613_v18, %v1497_v24 }
 0x31c   :  { %v1747_v32 = vadd.f32 %v1715_v47, %v1622_v62  ;;  %v6931_v47 = vld [vmem:[%s10295_s30] sm:$0xff] }
 0x31d   :  { %v1748_v61 = vadd.f32 %v1738_v55, %v1623_v26  ;;  %v2368_v26 = vpop.permute.xlu2 %2367 }
 0x31e   :  { %v1856_v19 = vadd.f32 %v1824_v2, %v1747_v32  ;;  %v8064_v2 = vstv %s6644_s2 }
 0x31f   :  { %v1857_v48 = vadd.f32 %v1847_v57, %v1748_v61 }
 0x320   :  { %v2074_v20 = vpop.f32.mrf.mxu2 }
 0x321   :  { %v2097_v59 = vpop.f32.mrf.mxu3  ;;  %v8037_v49 = vpop.f32.mrf.mxu0  ;;  %v1982_v62 = vadd.f32 %v1972_v44, %v1857_v48 }
 0x322   :  { %v8039_v58 = vpop.f32.mrf.mxu1 }
 0x323   :  { %v2107_v57 = vadd.f32 %v2097_v59, %v1982_v62 }
 0x328   :  { %v8041_v36 = vpop.f32.mrf.mxu2 }
 0x329   :  { %10353 = vst [vmem:[#allocation49_spill] sm:$0xff] %v8041_v36  ;;  %v8043_v33 = vpop.f32.mrf.mxu3  ;;  %v2150_v27 = vpop.f32.mrf.mxu0  ;;  %v1741_v36 = vadd.f32 %v1666_v35, %v1616_v1 }
 0x32a   :  { %10354 = vst [vmem:[#allocation50_spill] sm:$0xff] %v8043_v33  ;;  %v2173_v25 = vpop.f32.mrf.mxu1  ;;  %v1851_v33 = vadd.f32 %v1798_v5, %v1742_v29  ;;  %v1981_v5 = vadd.f32 %v1949_v51, %v1856_v19 }
 0x32b   :  { %v1850_v53 = vadd.f32 %v1775_v13, %v1741_v36  ;;  %v8055_v36 = vstv %s2378_s8 }
 0x32c   :  { %v1976_v37 = vadd.f32 %v1923_v38, %v1851_v33  ;;  %v8057_v33 = vpop.permute.xlu0 %2362  ;;  %v2380_v55 = vmul.f32 %v6931_v47, %v8055_v36 }
 0x32d   :  { %v1975_v12 = vadd.f32 %v1900_v41, %v1850_v53 }
 0x32e   :  { %v2101_v42 = vadd.f32 %v2048_v56, %v1976_v37  ;;  %v2106_v56 = vadd.f32 %v2074_v20, %v1981_v5 }
 0x32f   :  { %v2100_v16 = vadd.f32 %v2025_v39, %v1975_v12  ;;  %v6928_v39 = vld [vmem:[%s10295_s30 + $0x8] sm:$0xff] }
 0x330   :  { %v2199_v52 = vpop.f32.mrf.mxu2  ;;  %v2226_v22 = vadd.f32 %v2173_v25, %v2101_v42  ;;  %v2381_v25 = vmul.f32 %v6928_v39, %v8055_v36  ;;  %v10361_v39 = vld [vmem:[#allocation42_spill] sm:$0xff]  ;;  %v10372_v47 = vld [vmem:[#allocation49_spill] sm:$0xff] }
 0x331   :  { %v2222_v8 = vpop.f32.mrf.mxu3  ;;  %v8047_v40 = vpop.f32.mrf.mxu0  ;;  %v2225_v24 = vadd.f32 %v2150_v27, %v2100_v16  ;;  %v1451_v27 = vadd.f32 %v7999_v0, %v7989_v23  ;;  %v2231_v44 = vadd.f32 %v2199_v52, %v2106_v56  ;;  %v6929_v52 = vld [vmem:[%s10295_s30 + $0x30] sm:$0xff]  ;;  %v6930_v0 = vld [vmem:[%s10295_s30 + $0x38] sm:$0xff] }
 0x332   :  { %v8049_v10 = vpop.f32.mrf.mxu1  ;;  %v2232_v13 = vadd.f32 %v2222_v8, %v2107_v57  ;;  %v2386_v8 = vmul.f32 %v6929_v52, %v8055_v36  ;;  %v10369_v52 = vld [vmem:[#allocation45_spill] sm:$0xff] }
 0x333   :  { %v1621_v32 = vadd.f32 %v8007_v54, %v1451_v27 }
 0x335   :  { %v1746_v35 = vadd.f32 %v8015_v31, %v1621_v32  ;;  %v2387_v31 = vmul.f32 %v6930_v0, %v8055_v36  ;;  %v10367_v32 = vld [vmem:[#allocation50_spill] sm:$0xff]  ;;  %v10371_v0 = vld [vmem:[#allocation47_spill] sm:$0xff] }
 0x337   :  { %v1855_v54 = vadd.f32 %v8023_v6, %v1746_v35 }
 0x338   :  { %v8051_v60 = vpop.f32.mrf.mxu2 }
 0x339   :  { %v8053_v28 = vpop.f32.mrf.mxu3  ;;  %v2275_v30 = vpop.f32.mrf.mxu0  ;;  %v1980_v42 = vadd.f32 %v8031_v9, %v1855_v54 }
 0x33a   :  { %v2298_v1 = vpop.f32.mrf.mxu1  ;;  %v2350_v38 = vadd.f32 %v2275_v30, %v2225_v24  ;;  %v1428_v30 = vadd.f32 %v7997_v34, %v7987_v21  ;;  %v6932_v21 = vld [vmem:[%s10295_s30 + $0x28] sm:$0xff] }
 0x33b   :  { %v2351_v63 = vadd.f32 %v2298_v1, %v2226_v22  ;;  %v2105_v6 = vadd.f32 %v8039_v58, %v1980_v42  ;;  %v2385_v34 = vmul.f32 %v6932_v21, %v8055_v36 }
 0x33c   :  { %v2370_v14 = vadd.f32 %v8057_v33, %v2350_v38  ;;  %v1620_v58 = vadd.f32 %v8005_v15, %v1428_v30 }
 0x33d   :  { %v2371_v41 = vadd.f32 %v8057_v33, %v2351_v63  ;;  %v2230_v48 = vadd.f32 %v8049_v10, %v2105_v6  ;;  %v1494_v10 = vadd.f32 %v7995_v3, %v7972_v45  ;;  %v10360_v3 = vld [vmem:[#allocation39_spill] sm:$0xff] }
 0x33e   :  { %v2390_v53 = vmul.f32 %v8064_v2, %v2370_v14  ;;  %v1745_v5 = vadd.f32 %v8013_v4, %v1620_v58  ;;  %v1471_v56 = vadd.f32 %v10360_v3, %v7974_v50  ;;  %v10364_v50 = vld [vmem:[#allocation46_spill] sm:$0xff] }
 0x33f   :  { %v2391_v51 = vmul.f32 %v8064_v2, %v2371_v41  ;;  %v1619_v63 = vadd.f32 %v8003_v7, %v1494_v10  ;;  %v10362_v7 = vld [vmem:[#allocation40_spill] sm:$0xff] }
 0x340   :  { %v2324_v20 = vpop.f32.mrf.mxu2  ;;  %v8102_v16 = vadd.f32 %v2390_v53, %v2380_v55  ;;  %v1854_v24 = vadd.f32 %v8021_v11, %v1745_v5  ;;  %v10363_v41 = vld [vmem:[#allocation44_spill] sm:$0xff] }
 0x341   :  { %v8071_v17 = vadd.f32 %v2391_v51, %v2381_v25  ;;  %v2356_v18 = vadd.f32 %v2324_v20, %v2231_v44  ;;  %v2347_v29 = vpop.f32.mrf.mxu3  ;;  %v2278_v11 = vpop.f32.mrf.mxu0  ;;  %v1618_v25 = vadd.f32 %v10362_v7, %v1471_v56  ;;  %v6934_v53 = vld [vmem:[%s10295_s30 + $0x18] sm:$0xff] }
 0x342   :  { %v2357_v59 = vadd.f32 %v2347_v29, %v2232_v13  ;;  %10358 = vst [vmem:[#allocation54_spill] sm:$0xff] %v8102_v16  ;;  %v2301_v22 = vpop.f32.mrf.mxu1  ;;  %v1979_v4 = vadd.f32 %v8029_v43, %v1854_v24  ;;  %v1744_v43 = vadd.f32 %v10361_v39, %v1619_v63  ;;  %v10366_v13 = vld [vmem:[#allocation48_spill] sm:$0xff] }
 0x343   :  { %10355 = vst [vmem:[#allocation51_spill] sm:$0xff] %v8071_v17  ;;  %v2376_v46 = vadd.f32 %v2368_v26, %v2356_v18  ;;  %2643 = vrot.lane.b32.xlu2 %v8071_v17, %s6961_s22  ;;  %2410 = vrot.lane.b32.xlu0 %v8071_v17, %s6960_s5  ;;  %v2355_v9 = vadd.f32 %v2301_v22, %v2230_v48  ;;  %v6933_v18 = vld [vmem:[%s10295_s30 + $0x20] sm:$0xff] }
 0x344   :  { %v2377_v23 = vadd.f32 %v2368_v26, %v2357_v59  ;;  %2443 = vrot.lane.b32.xlu1 %v8071_v17, %s6959_s17  ;;  %v2104_v62 = vadd.f32 %v8037_v49, %v1979_v4  ;;  %v1853_v57 = vadd.f32 %v10363_v41, %v1744_v43  ;;  %v2384_v29 = vmul.f32 %v6933_v18, %v8055_v36  ;;  %v10368_v59 = vld [vmem:[#allocation43_spill] sm:$0xff]  ;;  %v8352_v18 = vld [vmem:[%s10155_s10] sm:$0xff] }
 0x345   :  { %v2396_v37 = vmul.f32 %v8064_v2, %v2376_v46  ;;  %v2375_v1 = vadd.f32 %v2368_v26, %v2355_v9 }
 0x346   :  { %v2397_v12 = vmul.f32 %v8064_v2, %v2377_v23  ;;  %v2229_v38 = vadd.f32 %v8047_v40, %v2104_v62  ;;  %v1978_v27 = vadd.f32 %v10364_v50, %v1853_v57  ;;  %v10365_v40 = vld [vmem:[#allocation41_spill] sm:$0xff] }
 0x347   :  { %v8097_v61 = vadd.f32 %v2396_v37, %v2386_v8  ;;  %v2395_v15 = vmul.f32 %v8064_v2, %v2375_v1  ;;  %v1743_v51 = vadd.f32 %v10365_v40, %v1618_v25  ;;  %v2383_v37 = vmul.f32 %v6934_v53, %v8055_v36 }
 0x348   :  { %v8099_v19 = vadd.f32 %v2397_v12, %v2387_v31  ;;  %v2354_v49 = vadd.f32 %v2278_v11, %v2229_v38  ;;  %v2103_v20 = vadd.f32 %v10366_v13, %v1978_v27  ;;  %v10376_v38 = vld [vmem:[#allocation7_spill] sm:$0xff] }
 0x349   :  { %10356 = vst [vmem:[#allocation52_spill] sm:$0xff] %v8097_v61  ;;  %v8132_v45 = vadd.f32 %v2395_v15, %v2385_v34  ;;  %v1852_v35 = vadd.f32 %v10368_v59, %v1743_v51  ;;  %v10377_v51 = vld [vmem:[#allocation8_spill] sm:$0xff]  ;;  %v10378_v59 = vld [vmem:[#allocation18_spill] sm:$0xff] }
 0x34a   :  { %10357 = vst [vmem:[#allocation53_spill] sm:$0xff] %v8099_v19  ;;  %v2374_v44 = vadd.f32 %v2368_v26, %v2354_v49  ;;  %v2228_v14 = vadd.f32 %v10367_v32, %v2103_v20  ;;  %v8306_v49 = vld [vmem:[%s10155_s10 + $0x8] sm:$0xff]  ;;  %v3454_v20 = vld [vmem:[%s10156_s11] sm:$0xff] }
 0x34b   :  { %2974 = vrot.lane.b32.xlu2 %v8071_v17, %s6963_s1  ;;  %2760 = vrot.lane.b32.xlu0 %v8102_v16, %s6962_s23  ;;  %10359 = vst [vmem:[#allocation55_spill] sm:$0xff] %v8132_v45  ;;  %v1977_v8 = vadd.f32 %v10369_v52, %v1852_v35 }
 0x34c   :  { %2764 = vrot.lane.b32.xlu1 %v8071_v17, %s6962_s23  ;;  %v2394_v26 = vmul.f32 %v8064_v2, %v2374_v44  ;;  %v2353_v46 = vadd.f32 %v8053_v28, %v2228_v14 }
 0x34d   :  { %v2102_v31 = vadd.f32 %v10371_v0, %v1977_v8 }
 0x34e   :  { %v8164_v23 = vadd.f32 %v2394_v26, %v2384_v29  ;;  %v2373_v54 = vadd.f32 %v8057_v33, %v2353_v46 }
 0x34f   :  { %v2227_v55 = vadd.f32 %v10372_v47, %v2102_v31 }
 0x350   :  { %10370 = vst [vmem:[#allocation39_spill] sm:$0xff] %v8164_v23  ;;  %v2393_v12 = vmul.f32 %v8064_v2, %v2373_v54  ;;  %v10379_v54 = vld [vmem:[#allocation22_spill] sm:$0xff] }
 0x351   :  { %v2352_v28 = vadd.f32 %v8051_v60, %v2227_v55  ;;  %v6935_v60 = vld [vmem:[%s10295_s30 + $0x10] sm:$0xff] }
 0x352   :  { %v8182_v6 = vadd.f32 %v2393_v12, %v2383_v37  ;;  %v2382_v22 = vmul.f32 %v6935_v60, %v8055_v36 }
 0x353   :  { %2970 = vrot.lane.b32.xlu0 %v8102_v16, %s6963_s1  ;;  %2439 = vrot.lane.b32.xlu2 %v8102_v16, %s6959_s17  ;;  %v2372_v42 = vadd.f32 %v8057_v33, %v2352_v28  ;;  %v8383_v28 = vld [vmem:[%s10155_s10 + $0x10] sm:$0xff] }
 0x354   :  { %2639 = vrot.lane.b32.xlu1 %v8102_v16, %s6961_s22  ;;  %10373 = vst [vmem:[#allocation42_spill] sm:$0xff] %v8182_v6 }
 0x355   :  { %v2392_v48 = vmul.f32 %v8064_v2, %v2372_v42  ;;  %v3468_v42 = vld [vmem:[%s10157_s12] sm:$0xff]  ;;  %s9254_s12 = sld [smem:[#allocation3 + $0x4]] }
 0x357   :  { %v8195_v33 = vadd.f32 %v2392_v48, %v2382_v22 }
 0x359   :  { %10374 = vst [vmem:[#allocation40_spill] sm:$0xff] %v8195_v33 }
 0x35b   :  { %2412 = vrot.lane.b32.xlu0 %v8132_v45, %s6960_s5  ;;  %2406 = vrot.lane.b32.xlu2 %v8102_v16, %s6960_s5 }
 0x35c   :  { %2445 = vrot.lane.b32.xlu1 %v8132_v45, %s6959_s17 }
 0x363   :  { %2645 = vrot.lane.b32.xlu0 %v8132_v45, %s6961_s22  ;;  %2766 = vrot.lane.b32.xlu2 %v8132_v45, %s6962_s23 }
 0x364   :  { %2976 = vrot.lane.b32.xlu1 %v8132_v45, %s6963_s1 }
 0x36b   :  { %2641 = vrot.lane.b32.xlu0 %v8164_v23, %s6961_s22  ;;  %2441 = vrot.lane.b32.xlu2 %v8164_v23, %s6959_s17 }
 0x36c   :  { %2408 = vrot.lane.b32.xlu1 %v8164_v23, %s6960_s5 }
 0x373   :  { %2972 = vrot.lane.b32.xlu0 %v8164_v23, %s6963_s1  ;;  %2762 = vrot.lane.b32.xlu2 %v8164_v23, %s6962_s23 }
 0x374   :  { %2451 = vrot.lane.b32.xlu1 %v8182_v6, %s6959_s17 }
 0x37b   :  { %2418 = vrot.lane.b32.xlu0 %v8182_v6, %s6960_s5  ;;  %3093 = vrot.lane.b32.xlu2 %v8164_v23, %s6964_s24 }
 0x37c   :  { %2414 = vrot.lane.b32.xlu1 %v8195_v33, %s6960_s5 }
 0x383   :  { %2647 = vrot.lane.b32.xlu0 %v8195_v33, %s6961_s22  ;;  %2447 = vrot.lane.b32.xlu2 %v8195_v33, %s6959_s17 }
 0x384   :  { %2772 = vrot.lane.b32.xlu1 %v8182_v6, %s6962_s23 }
 0x38b   :  { %3099 = vrot.lane.b32.xlu0 %v8195_v33, %s6964_s24  ;;  %2651 = vrot.lane.b32.xlu2 %v8182_v6, %s6961_s22 }
 0x38c   :  { %2978 = vrot.lane.b32.xlu1 %v8195_v33, %s6963_s1 }
 0x393   :  { %2453 = vrot.lane.b32.xlu0 %v8099_v19, %s6959_s17  ;;  %2768 = vrot.lane.b32.xlu2 %v8195_v33, %s6962_s23 }
 0x394   :  { %3103 = vrot.lane.b32.xlu1 %v8182_v6, %s6964_s24 }
 0x39b   :  { %3097 = vrot.lane.b32.xlu0 %v8132_v45, %s6964_s24  ;;  %2982 = vrot.lane.b32.xlu2 %v8182_v6, %s6963_s1 }
 0x39c   :  { %2416 = vrot.lane.b32.xlu1 %v8097_v61, %s6960_s5 }
 0x39d   :  { %v8227_v36 = vpop.permute.xlu2 %2643 }
 0x3a3   :  { %2770 = vrot.lane.b32.xlu0 %v8097_v61, %s6962_s23  ;;  %2449 = vrot.lane.b32.xlu2 %v8097_v61, %s6959_s17 }
 0x3a4   :  { %3095 = vrot.lane.b32.xlu1 %v8071_v17, %s6964_s24 }
 0x3a5   :  { %v8235_v2 = vpop.permute.xlu2 %2974 }
 0x3ab   :  { %2774 = vrot.lane.b32.xlu0 %v8099_v19, %s6962_s23  ;;  %2420 = vrot.lane.b32.xlu2 %v8099_v19, %s6960_s5 }
 0x3ac   :  { %2649 = vrot.lane.b32.xlu1 %v8097_v61, %s6961_s22 }
 0x3ad   :  { %v8243_v9 = vpop.permute.xlu2 %2439 }
 0x3b3   :  { %3224 = vrot.lane.b32.xlu0 %v8182_v6, %s6965_s28  ;;  %3091 = vrot.lane.b32.xlu2 %v8102_v16, %s6964_s24 }
 0x3b4   :  { %2653 = vrot.lane.b32.xlu1 %v8099_v19, %s6961_s22 }
 0x3b5   :  { %v8251_v30 = vpop.permute.xlu0 %2410  ;;  %v8253_v58 = vpop.permute.xlu2 %2406 }
 0x3b6   :  { %v8255_v1 = vpop.permute.xlu1 %2443  ;;  %v2426_v44 = vsel %vm109_vm1, %v8253_v58, %v8251_v30 }
 0x3b7   :  { %v2459_v56 = vsel %vm153_vm0, %v8243_v9, %v8255_v1  ;;  %v2431_v14 = vmul.f32 %v2426_v44, %v10377_v51 }
 0x3b8   :  { %v2464_v43 = vmul.f32 %v2459_v56, %v10376_v38 }
 0x3bb   :  { %3216 = vrot.lane.b32.xlu0 %v8071_v17, %s6965_s28  ;;  %3220 = vrot.lane.b32.xlu2 %v8195_v33, %s6965_s28 }
 0x3bc   :  { %3214 = vrot.lane.b32.xlu1 %v8164_v23, %s6965_s28 }
 0x3bd   :  { %v8263_v5 = vpop.permute.xlu0 %2760  ;;  %v8265_v10 = vpop.permute.xlu2 %2766 }
 0x3be   :  { %v8267_v24 = vpop.permute.xlu1 %2764 }
 0x3bf   :  { %v2780_v8 = vsel %vm499_vm4, %v8263_v5, %v8267_v24 }
 0x3c0   :  { %v2785_v55 = vmul.f32 %v2780_v8, %v10379_v54 }
 0x3c3   :  { %3101 = vrot.lane.b32.xlu0 %v8097_v61, %s6964_s24  ;;  %3218 = vrot.lane.b32.xlu2 %v8132_v45, %s6965_s28 }
 0x3c4   :  { %3212 = vrot.lane.b32.xlu1 %v8102_v16, %s6965_s28 }
 0x3c5   :  { %v8275_v21 = vpop.permute.xlu0 %2970  ;;  %v8277_v34 = vpop.permute.xlu2 %2441 }
 0x3c6   :  { %v8279_v15 = vpop.permute.xlu1 %2639 }
 0x3c7   :  { %v2659_v29 = vsel %vm366_vm3, %v8279_v15, %v8227_v36 }
 0x3c8   :  { %v2664_v31 = vmul.f32 %v2659_v29, %v10378_v59 }
 0x3cb   :  { %3226 = vrot.lane.b32.xlu0 %v8099_v19, %s6965_s28  ;;  %2984 = vrot.lane.b32.xlu2 %v8099_v19, %s6963_s1 }
 0x3cc   :  { %2980 = vrot.lane.b32.xlu1 %v8097_v61, %s6963_s1 }
 0x3cd   :  { %v8287_v4 = vpop.permute.xlu0 %2412  ;;  %v8289_v63 = vpop.permute.xlu2 %2762 }
 0x3ce   :  { %v8291_v62 = vpop.permute.xlu1 %2445  ;;  %v2781_v26 = vsel %vm499_vm4, %v8289_v63, %v8265_v10 }
 0x3cf   :  { %v2460_v11 = vsel %vm153_vm0, %v8277_v34, %v8291_v62  ;;  %v2789_v47 = vmul.f32 %v2781_v26, %v10379_v54 }
 0x3d0   :  { %v2468_v39 = vmul.f32 %v2460_v11, %v10376_v38 }
 0x3d2   :  { %2510 = vmatpush.msrb.mxu1 %v2468_v39 }
 0x3d3   :  { %3335 = vrot.lane.b32.xlu0 %v8164_v23, %s10331_s26  ;;  %3222 = vrot.lane.b32.xlu2 %v8097_v61, %s6965_s28 }
 0x3d4   :  { %3105 = vrot.lane.b32.xlu1 %v8099_v19, %s6964_s24  ;;  %2511 = vmatpush.msrb.mxu1 %v2464_v43 }
 0x3d5   :  { %v8314_v7 = vpop.permute.xlu0 %2645  ;;  %v8316_v25 = vpop.permute.xlu2 %3093  ;;  %6647 = vmatmul.msk.f32.vlgmr.msrb.gmra.mxu1 %vm183_vm2, %v8306_v49 }
 0x3d6   :  { %v8320_v41 = vpop.permute.xlu1 %2976 }
 0x3db   :  { %3333 = vrot.lane.b32.xlu0 %v8102_v16, %s10331_s26  ;;  %3345 = vrot.lane.b32.xlu2 %v8182_v6, %s10331_s26 }
 0x3dc   :  { %3341 = vrot.lane.b32.xlu1 %v8195_v33, %s10331_s26 }
 0x3dd   :  { %v8328_v57 = vpop.permute.xlu0 %2641  ;;  %v2448_v50 = vpop.permute.xlu2 %2447 }
 0x3de   :  { %v8330_v27 = vpop.permute.xlu1 %2408  ;;  %v2660_v32 = vsel %vm366_vm3, %v8328_v57, %v8314_v7  ;;  %v2457_v39 = vsel %vm153_vm0, %v8255_v1, %v2448_v50 }
 0x3df   :  { %v2427_v40 = vsel %vm109_vm1, %v8330_v27, %v8287_v4  ;;  %v2668_v35 = vmul.f32 %v2660_v32, %v10378_v59 }
 0x3e0   :  { %v2435_v13 = vmul.f32 %v2427_v40, %v10377_v51 }
 0x3e2   :  { %2593 = vmatpush.msra.mxu1 %v2435_v13  ;;  %v10380_v13 = vld [vmem:[#allocation9_spill] sm:$0xff] }
 0x3e3   :  { %3457 = vperm.xlu0 %6919, %v3454_v20   ;;  %3347 = vrot.lane.b32.xlu2 %v8099_v19, %s10331_s26  ;;  %v2465_v32 = vmul.f32 %v2457_v39, %v10380_v13  ;;  %v10383_v39 = vld [vmem:[#allocation13_spill] sm:$0xff] }
 0x3e4   :  { %3343 = vrot.lane.b32.xlu1 %v8097_v61, %s10331_s26  ;;  %2594 = vmatpush.msra.mxu1 %v2431_v14 }
 0x3e5   :  { %6651 = vmatmul.msk.f32.vlgmr.msra.gmra.mxu1 %vm183_vm2, %v8352_v18  ;;  %v8369_v46 = vpop.permute.xlu0 %2972  ;;  %v8371_v52 = vpop.permute.xlu2 %2651 }
 0x3e6   :  { %2710 = vmatpush.msrb.mxu1 %v2668_v35  ;;  %v2452_v0 = vpop.permute.xlu1 %2451 }
 0x3e7   :  { %v2461_v29 = vsel %vm153_vm0, %v2452_v0, %v8243_v9 }
 0x3e8   :  { %2711 = vmatpush.msrb.mxu1 %v2664_v31  ;;  %v10381_v31 = vld [vmem:[#allocation10_spill] sm:$0xff] }
 0x3ea   :  { %2831 = vmatpush.msra.mxu1 %v2789_v47 }
 0x3eb   :  { %3337 = vrot.lane.b32.xlu2 %v8071_v17, %s10331_s26 }
 0x3ec   :  { %2832 = vmatpush.msra.mxu1 %v2785_v55  ;;  %3339 = vrot.lane.b32.xlu1 %v8132_v45, %s10331_s26  ;;  %v10382_v55 = vld [vmem:[#allocation11_spill] sm:$0xff] }
 0x3ed   :  { %6656 = vmatmul.msk.f32.vlgmr.msrb.gmra.mxu1 %vm183_vm2, %v8383_v28  ;;  %v2419_v53 = vpop.permute.xlu0 %2418  ;;  %v8391_v37 = vpop.permute.xlu2 %2768 }
 0x3ee   :  { %2920 = vmatpush.msrb.mxu1 %v8132_v45  ;;  %v2415_v12 = vpop.permute.xlu1 %2414 }
 0x3f0   :  { %2921 = vmatpush.msrb.mxu1 %v8071_v17 }
 0x3f4   :  { %3471 = vperm.xlu1 %6917, %v3468_v42  }
 0x3f5   :  { %v8398_v60 = vpop.permute.xlu0 %2647  ;;  %v8400_v22 = vpop.permute.xlu2 %2982 }
 0x3f6   :  { %v8402_v48 = vpop.permute.xlu1 %2772 }
 0x3fd   :  { %v8404_v56 = vpop.permute.xlu0 %3099  ;;  %v2450_v11 = vpop.permute.xlu2 %2449 }
 0x3fe   :  { %v8409_v43 = vpop.permute.xlu1 %2978  ;;  %v2458_v44 = vsel %vm153_vm0, %v8291_v62, %v2450_v11  ;;  %v2455_v62 = vsel %vm153_vm0, %v2448_v50, %v2452_v0  ;;  %v2463_v0 = vmul.f32 %v2461_v29, %v10381_v31 }
 0x3ff   :  { %v8418_v40 = vsel %vm721_vm5, %v8409_v43, %v8400_v22  ;;  %v2469_v20 = vmul.f32 %v2458_v44, %v10380_v13 }
 0x401   :  { %2530 = vmatpush.msrb.mxu2 %v2469_v20 }
 0x403   :  { %2531 = vmatpush.msrb.mxu2 %v2465_v32 }
 0x404   :  { %6648 = vmatmul.msk.f32.vlgmr.msrb.gmra.mxu2 %vm183_vm2, %v8306_v49 }
 0x405   :  { %v2454_v1 = vpop.permute.xlu0 %2453  ;;  %v2421_v14 = vpop.permute.xlu2 %2420 }
 0x406   :  { %v2456_v26 = vsel %vm153_vm0, %v2450_v11, %v2454_v1  ;;  %v2462_v35 = vsel %vm153_vm0, %v2454_v1, %v8277_v34  ;;  %v8434_v8 = vpop.permute.xlu1 %3103  ;;  %v2429_v9 = vsel %vm109_vm1, %v2421_v14, %v8330_v27  ;;  %v2428_v34 = vsel %vm109_vm1, %v2419_v53, %v8253_v58  ;;  %v8463_v58 = vld [vmem:[%s10155_s10 + $0x18] sm:$0xff] }
 0x407   :  { %v2467_v47 = vmul.f32 %v2462_v35, %v10381_v31  ;;  %v2470_v42 = vmul.f32 %v2456_v26, %v10382_v55  ;;  %v8442_v50 = vsel %vm854_vm6, %v8404_v56, %v8434_v8  ;;  %v2466_v11 = vmul.f32 %v2455_v62, %v10382_v55  ;;  %6661 = vmatmul.msk.f32.vlgmr.msra.gmra.mxu1 %vm183_vm2, %v8463_v58  ;;  %v10384_v26 = vld [vmem:[#allocation12_spill] sm:$0xff] }
 0x408   :  { %v2434_v44 = vmul.f32 %v2429_v9, %v10383_v39  ;;  %v2430_v20 = vmul.f32 %v2428_v34, %v10383_v39  ;;  %v2422_v1 = vsel %vm109_vm1, %v2415_v12, %v2419_v53  ;;  %v2424_v62 = vsel %vm109_vm1, %v8251_v30, %v2415_v12 }
 0x409   :  { %2490 = vmatpush.msra.mxu0 %v2467_v47  ;;  %2550 = vmatpush.msra.mxu3 %v2470_v42  ;;  %v10385_v47 = vld [vmem:[#allocation14_spill] sm:$0xff]  ;;  %v2432_v34 = vmul.f32 %v2424_v62, %v10384_v26 }
 0x40a   :  { %v2433_v53 = vmul.f32 %v2422_v1, %v10385_v47 }
 0x40b   :  { %2491 = vmatpush.msra.mxu0 %v2463_v0  ;;  %2551 = vmatpush.msra.mxu3 %v2466_v11 }
 0x40c   :  { %6649 = vmatmul.msk.f32.vlgmr.msra.gmra.mxu3 %vm183_vm2, %v8306_v49  ;;  %6646 = vmatmul.msk.f32.vlgmr.msra.gmra.mxu0 %vm183_vm2, %v8306_v49 }
 0x40d   :  { %2573 = vmatpush.msrb.mxu0 %v2434_v44  ;;  %v8456_v27 = vpop.permute.xlu0 %3097  ;;  %v8479_v9 = vpop.permute.xlu2 %3091  ;;  %v2657_v44 = vsel %vm366_vm3, %v8227_v36, %v8398_v60 }
 0x40e   :  { %v2417_v32 = vpop.permute.xlu1 %2416 }
 0x40f   :  { %2574 = vmatpush.msrb.mxu0 %v2430_v20  ;;  %v2423_v49 = vsel %vm109_vm1, %v2417_v32, %v2421_v14  ;;  %v2425_v29 = vsel %vm109_vm1, %v8287_v4, %v2417_v32  ;;  %v8490_v4 = vld [vmem:[%s10155_s10 + $0x20] sm:$0xff] }
 0x410   :  { %v2436_v35 = vmul.f32 %v2425_v29, %v10384_v26  ;;  %v2437_v42 = vmul.f32 %v2423_v49, %v10385_v47  ;;  %6666 = vmatmul.msk.f32.vlgmr.msrb.gmra.mxu1 %vm183_vm2, %v8490_v4  ;;  %v10386_v32 = vld [vmem:[#allocation16_spill] sm:$0xff]  ;;  %v2778_v49 = vsel %vm499_vm4, %v8267_v24, %v8391_v37  ;;  %v10387_v29 = vld [vmem:[#allocation19_spill] sm:$0xff]  ;;  %v2655_v24 = vsel %vm366_vm3, %v8398_v60, %v8371_v52 }
 0x411   :  { %v2665_v62 = vmul.f32 %v2657_v44, %v10386_v32 }
 0x412   :  { %2613 = vmatpush.msra.mxu2 %v2436_v35  ;;  %2633 = vmatpush.msrb.mxu3 %v2437_v42 }
 0x414   :  { %2614 = vmatpush.msra.mxu2 %v2432_v34  ;;  %2634 = vmatpush.msrb.mxu3 %v2433_v53  ;;  %v2661_v34 = vsel %vm366_vm3, %v8371_v52, %v8279_v15 }
 0x415   :  { %v2771_v30 = vpop.permute.xlu0 %2770  ;;  %6652 = vmatmul.msk.f32.vlgmr.msra.gmra.mxu2 %vm183_vm2, %v8352_v18  ;;  %6653 = vmatmul.msk.f32.vlgmr.msrb.gmra.mxu3 %vm183_vm2, %v8352_v18  ;;  %v8498_v14 = vpop.permute.xlu2 %3220 }
 0x416   :  { %v8492_v12 = vpop.permute.xlu1 %3095  ;;  %6650 = vmatmul.msk.f32.vlgmr.msrb.gmra.mxu0 %vm183_vm2, %v8352_v18  ;;  %v2779_v18 = vsel %vm499_vm4, %v8265_v10, %v2771_v30  ;;  %v2786_v10 = vmul.f32 %v2778_v49, %v10387_v29  ;;  %v10390_v49 = vld [vmem:[#allocation21_spill] sm:$0xff] }
 0x417   :  { %v2790_v36 = vmul.f32 %v2779_v18, %v10387_v29  ;;  %v10389_v18 = vld [vmem:[#allocation15_spill] sm:$0xff] }
 0x418   :  { %v2666_v60 = vmul.f32 %v2655_v24, %v10389_v18  ;;  %v2990_v24 = vsel %vm721_vm5, %v8275_v21, %v8235_v2 }
 0x41d   :  { %v2775_v0 = vpop.permute.xlu0 %2774  ;;  %v8517_v35 = vpop.permute.xlu2 %3218 }
 0x41e   :  { %v2650_v11 = vpop.permute.xlu1 %2649  ;;  %v2783_v15 = vsel %vm499_vm4, %v2775_v0, %v8289_v63  ;;  %v2776_v63 = vsel %vm499_vm4, %v8391_v37, %v8402_v48 }
 0x41f   :  { %v2658_v20 = vsel %vm366_vm3, %v8314_v7, %v2650_v11 }
 0x420   :  { %v2669_v1 = vmul.f32 %v2658_v20, %v10386_v32  ;;  %v10388_v20 = vld [vmem:[#allocation17_spill] sm:$0xff] }
 0x421   :  { %v2663_v52 = vmul.f32 %v2661_v34, %v10388_v20 }
 0x422   :  { %2730 = vmatpush.msrb.mxu2 %v2669_v1 }
 0x424   :  { %2731 = vmatpush.msrb.mxu2 %v2665_v62 }
 0x425   :  { %6657 = vmatmul.msk.f32.vlgmr.msrb.gmra.mxu2 %vm183_vm2, %v8383_v28  ;;  %v8521_v7 = vpop.permute.xlu0 %3224 }
 0x426   :  { %2851 = vmatpush.msra.mxu2 %v2790_v36  ;;  %v2654_v42 = vpop.permute.xlu1 %2653  ;;  %v2788_v36 = vmul.f32 %v2783_v15, %v10390_v49 }
 0x427   :  { %v2656_v53 = vsel %vm366_vm3, %v2650_v11, %v2654_v42  ;;  %v2662_v44 = vsel %vm366_vm3, %v2654_v42, %v8328_v57  ;;  %v2777_v11 = vsel %vm499_vm4, %v2771_v30, %v2775_v0  ;;  %v2782_v57 = vsel %vm499_vm4, %v8402_v48, %v8263_v5  ;;  %v2985_v42 = vpop.permute.xlu2 %2984 }
 0x428   :  { %v2667_v1 = vmul.f32 %v2662_v44, %v10388_v20  ;;  %v2670_v62 = vmul.f32 %v2656_v53, %v10389_v18  ;;  %2852 = vmatpush.msra.mxu2 %v2786_v10  ;;  %v10391_v10 = vld [vmem:[#allocation20_spill] sm:$0xff]  ;;  %v2784_v0 = vmul.f32 %v2782_v57, %v10390_v49  ;;  %v2993_v34 = vsel %vm721_vm5, %v2985_v42, %v8369_v46  ;;  %v10392_v53 = vld [vmem:[#allocation25_spill] sm:$0xff] }
 0x429   :  { %v2791_v30 = vmul.f32 %v2777_v11, %v10391_v10  ;;  %v2787_v48 = vmul.f32 %v2776_v63, %v10391_v10  ;;  %v10394_v57 = vld [vmem:[#allocation29_spill] sm:$0xff] }
 0x42a   :  { %2940 = vmatpush.msrb.mxu2 %v8097_v61  ;;  %2690 = vmatpush.msra.mxu0 %v2667_v1  ;;  %v2992_v1 = vsel %vm721_vm5, %v8400_v22, %v8275_v21  ;;  %v3112_v22 = vsel %vm854_vm6, %v8316_v25, %v8456_v27 }
 0x42b   :  { %2750 = vmatpush.msra.mxu3 %v2670_v62  ;;  %v10393_v62 = vld [vmem:[#allocation26_spill] sm:$0xff]  ;;  %v3119_v63 = vmul.f32 %v3112_v22, %v10394_v57 }
 0x42c   :  { %2941 = vmatpush.msrb.mxu2 %v8195_v33  ;;  %2691 = vmatpush.msra.mxu0 %v2663_v52  ;;  %v2997_v21 = vmul.f32 %v2992_v1, %v10393_v62 }
 0x42d   :  { %2751 = vmatpush.msra.mxu3 %v2666_v60  ;;  %6655 = vmatmul.msk.f32.vlgmr.msra.gmra.mxu0 %vm183_vm2, %v8383_v28  ;;  %v8562_v5 = vpop.permute.xlu0 %3216  ;;  %v2994_v60 = vmul.f32 %v2990_v24, %v10392_v53  ;;  %v10395_v24 = vld [vmem:[#allocation23_spill] sm:$0xff] }
 0x42e   :  { %6658 = vmatmul.msk.f32.vlgmr.msra.gmra.mxu3 %vm183_vm2, %v8383_v28  ;;  %2811 = vmatpush.msrb.mxu0 %v2788_v36  ;;  %v8567_v37 = vpop.permute.xlu1 %3214  ;;  %v2991_v28 = vsel %vm721_vm5, %v8369_v46, %v8320_v41  ;;  %v3001_v46 = vmul.f32 %v2993_v34, %v10393_v62 }
 0x42f   :  { %6662 = vmatmul.msk.f32.vlgmr.msra.gmra.mxu2 %vm183_vm2, %v8463_v58  ;;  %2871 = vmatpush.msrb.mxu3 %v2791_v30  ;;  %v2998_v44 = vmul.f32 %v2991_v28, %v10392_v53  ;;  %v3223_v11 = vpop.permute.xlu2 %3222  ;;  %v2988_v30 = vsel %vm721_vm5, %v8235_v2, %v8409_v43  ;;  %v3233_v43 = vsel %vm987_vm7, %v8567_v37, %v8517_v35 }
 0x430   :  { %2812 = vmatpush.msrb.mxu0 %v2784_v0 }
 0x431   :  { %2872 = vmatpush.msrb.mxu3 %v2787_v48 }
 0x432   :  { %2900 = vmatpush.msra.mxu0 %v8164_v23 }
 0x433   :  { %2960 = vmatpush.msra.mxu3 %v8099_v19 }
 0x434   :  { %2901 = vmatpush.msra.mxu0 %v8102_v16 }
 0x435   :  { %2961 = vmatpush.msra.mxu3 %v8182_v6  ;;  %6660 = vmatmul.msk.f32.vlgmr.msrb.gmra.mxu0 %vm183_vm2, %v8463_v58  ;;  %v3102_v15 = vpop.permute.xlu0 %3101 }
 0x436   :  { %6663 = vmatmul.msk.f32.vlgmr.msrb.gmra.mxu3 %vm183_vm2, %v8463_v58  ;;  %3021 = vmatpush.msrb.mxu0 %v2998_v44  ;;  %v8597_v52 = vpop.permute.xlu1 %3212  ;;  %v3111_v58 = vsel %vm854_vm6, %v8479_v9, %v8492_v12 }
 0x437   :  { %6667 = vmatmul.msk.f32.vlgmr.msrb.gmra.mxu2 %vm183_vm2, %v8490_v4  ;;  %3081 = vmatpush.msrb.mxu3 %v3001_v46  ;;  %v3115_v0 = vmul.f32 %v3111_v58, %v10394_v57  ;;  %v2995_v46 = vmul.f32 %v2988_v30, %v10395_v24  ;;  %v3231_v58 = vsel %vm987_vm7, %v8517_v35, %v3223_v11 }
 0x438   :  { %3022 = vmatpush.msrb.mxu0 %v2994_v60  ;;  %v8643_v60 = vpop.permute.xlu2 %3345 }
 0x439   :  { %3082 = vmatpush.msrb.mxu3 %v2997_v21  ;;  %v3232_v21 = vsel %vm987_vm7, %v8597_v52, %v8562_v5 }
 0x43d   :  { %6665 = vmatmul.msk.f32.vlgmr.msra.gmra.mxu0 %vm183_vm2, %v8490_v4  ;;  %v3227_v36 = vpop.permute.xlu0 %3226 }
 0x43e   :  { %6668 = vmatmul.msk.f32.vlgmr.msra.gmra.mxu3 %vm183_vm2, %v8490_v4  ;;  %3142 = vmatpush.msra.mxu0 %v3119_v63  ;;  %v2981_v48 = vpop.permute.xlu1 %2980  ;;  %v10396_v4 = vld [vmem:[#allocation24_spill] sm:$0xff]  ;;  %v10398_v63 = vld [vmem:[#allocation30_spill] sm:$0xff] }
 0x43f   :  { %v2987_v28 = vsel %vm721_vm5, %v2981_v48, %v2985_v42  ;;  %v2989_v34 = vsel %vm721_vm5, %v8320_v41, %v2981_v48  ;;  %v2996_v2 = vmul.f32 %v8418_v40, %v10396_v4  ;;  %v3110_v42 = vsel %vm854_vm6, %v8456_v27, %v3102_v15  ;;  %v6669_v41 = vld [vmem:[%s10155_s10 + $0x28] sm:$0xff] }
 0x440   :  { %v2999_v44 = vmul.f32 %v2989_v34, %v10395_v24  ;;  %v3000_v1 = vmul.f32 %v2987_v28, %v10396_v4  ;;  %3143 = vmatpush.msra.mxu0 %v3115_v0  ;;  %v3109_v40 = vsel %vm854_vm6, %v8492_v12, %v8404_v56  ;;  %v10397_v27 = vld [vmem:[#allocation33_spill] sm:$0xff]  ;;  %v3120_v30 = vmul.f32 %v3110_v42, %v10398_v63 }
 0x441   :  { %v3240_v22 = vmul.f32 %v3233_v43, %v10397_v27  ;;  %v3116_v12 = vmul.f32 %v3109_v40, %v10398_v63  ;;  %v3230_v0 = vsel %vm987_vm7, %v8562_v5, %v8498_v14  ;;  %v3236_v48 = vmul.f32 %v3232_v21, %v10397_v27  ;;  %v10401_v43 = vld [vmem:[#allocation28_spill] sm:$0xff]  ;;  %v10402_v21 = vld [vmem:[#allocation31_spill] sm:$0xff] }
 0x442   :  { %3041 = vmatpush.msra.mxu1 %v2999_v44  ;;  %3061 = vmatpush.msra.mxu2 %v3000_v1  ;;  %v3113_v5 = vsel %vm854_vm6, %v8434_v8, %v8479_v9  ;;  %v10399_v44 = vld [vmem:[#allocation34_spill] sm:$0xff]  ;;  %v3235_v40 = vsel %vm987_vm7, %v3227_v36, %v8567_v37 }
 0x443   :  { %v3241_v1 = vmul.f32 %v3231_v58, %v10399_v44  ;;  %v6674_v8 = vld [vmem:[%s10155_s10 + $0x30] sm:$0xff]  ;;  %v3118_v9 = vmul.f32 %v3113_v5, %v10401_v43  ;;  %v3348_v58 = vpop.permute.xlu2 %3347 }
 0x444   :  { %3042 = vmatpush.msra.mxu1 %v2995_v46  ;;  %3062 = vmatpush.msra.mxu2 %v2996_v2  ;;  %v10400_v46 = vld [vmem:[#allocation27_spill] sm:$0xff] }
 0x445   :  { %6670 = vmatmul.msk.f32.vlgmr.msrb.gmra.mxu0 %vm183_vm2, %v6669_v41  ;;  %6671 = vmatmul.msk.f32.vlgmr.msra.gmra.mxu1 %vm183_vm2, %v6669_v41  ;;  %v8656_v56 = vpop.permute.xlu0 %3335 }
 0x446   :  { %6672 = vmatmul.msk.f32.vlgmr.msra.gmra.mxu2 %vm183_vm2, %v6669_v41  ;;  %6673 = vmatmul.msk.f32.vlgmr.msrb.gmra.mxu3 %vm183_vm2, %v6669_v41  ;;  %v3106_v35 = vpop.permute.xlu1 %3105  ;;  %v3237_v41 = vmul.f32 %v3230_v0, %v10399_v44 }
 0x447   :  { %3162 = vmatpush.msrb.mxu1 %v3120_v30  ;;  %3263 = vmatpush.msrb.mxu0 %v3240_v22  ;;  %v3108_v28 = vsel %vm854_vm6, %v3102_v15, %v3106_v35  ;;  %v3114_v34 = vsel %vm854_vm6, %v3106_v35, %v8316_v25  ;;  %v3117_v15 = vmul.f32 %v8442_v50, %v10400_v46  ;;  %v10404_v35 = vld [vmem:[#allocation38_spill] sm:$0xff] }
 0x448   :  { %v3121_v2 = vmul.f32 %v3108_v28, %v10400_v46  ;;  %v3122_v42 = vmul.f32 %v3114_v34, %v10401_v43  ;;  %v3229_v25 = vsel %vm987_vm7, %v3223_v11, %v3227_v36  ;;  %v3228_v50 = vsel %vm987_vm7, %v8498_v14, %v8521_v7  ;;  %v10403_v36 = vld [vmem:[#allocation32_spill] sm:$0xff] }
 0x449   :  { %3163 = vmatpush.msrb.mxu1 %v3116_v12  ;;  %3264 = vmatpush.msrb.mxu0 %v3236_v48  ;;  %v3234_v11 = vsel %vm987_vm7, %v8521_v7, %v8597_v52  ;;  %v3242_v22 = vmul.f32 %v3229_v25, %v10402_v21  ;;  %v3243_v30 = vmul.f32 %v3235_v40, %v10403_v36  ;;  %v6679_v34 = vld [vmem:[%s10155_s10 + $0x38] sm:$0xff]  ;;  %v6684_v25 = vld [vmem:[%s10155_s10 + $0x40] sm:$0xff]  ;;  %s6777_s10 = sld [smem:[#allocation3 + $0x2]] }
 0x44a   :  { %3182 = vmatpush.msrb.mxu2 %v3121_v2  ;;  %3202 = vmatpush.msra.mxu3 %v3122_v42  ;;  %v3356_v14 = vsel %vm1120_vm8, %v3348_v58, %v8656_v56  ;;  %v3238_v12 = vmul.f32 %v3228_v50, %v10402_v21  ;;  %v3239_v0 = vmul.f32 %v3234_v11, %v10403_v36  ;;  %v10405_v42 = vld [vmem:[#allocation36_spill] sm:$0xff] }
 0x44b   :  { %3283 = vmatpush.msra.mxu1 %v3241_v1  ;;  %v3364_v48 = vmul.f32 %v3356_v14, %v10404_v35 }
 0x44c   :  { %3183 = vmatpush.msrb.mxu2 %v3117_v15  ;;  %3203 = vmatpush.msra.mxu3 %v3118_v9 }
 0x44d   :  { %3284 = vmatpush.msra.mxu1 %v3237_v41  ;;  %6675 = vmatmul.msk.f32.vlgmr.msra.gmra.mxu0 %vm183_vm2, %v6674_v8  ;;  %v3334_v37 = vpop.permute.xlu0 %3333 }
 0x44e   :  { %6676 = vmatmul.msk.f32.vlgmr.msrb.gmra.mxu1 %vm183_vm2, %v6674_v8  ;;  %6677 = vmatmul.msk.f32.vlgmr.msrb.gmra.mxu2 %vm183_vm2, %v6674_v8  ;;  %v3355_v7 = vsel %vm1120_vm8, %v8643_v60, %v3334_v37  ;;  %v3342_v52 = vpop.permute.xlu1 %3341 }
 0x44f   :  { %6678 = vmatmul.msk.f32.vlgmr.msra.gmra.mxu3 %vm183_vm2, %v6674_v8  ;;  %3303 = vmatpush.msra.mxu2 %v3242_v22  ;;  %v3360_v28 = vmul.f32 %v3355_v7, %v10404_v35  ;;  %v3349_v1 = vsel %vm1120_vm8, %v3342_v52, %v8643_v60  ;;  %v3338_v8 = vpop.permute.xlu2 %3337  ;;  %v10406_v22 = vld [vmem:[#allocation37_spill] sm:$0xff] }
 0x450   :  { %3323 = vmatpush.msrb.mxu3 %v3243_v30  ;;  %v3359_v41 = vmul.f32 %v3349_v1, %v10405_v42  ;;  %v3353_v60 = vsel %vm1120_vm8, %v3334_v37, %v3338_v8  ;;  %v3351_v40 = vsel %vm1120_vm8, %v3338_v8, %v3342_v52  ;;  %v10407_v30 = vld [vmem:[#allocation35_spill] sm:$0xff] }
 0x451   :  { %3304 = vmatpush.msra.mxu2 %v3238_v12  ;;  %v3357_v7 = vmul.f32 %v3353_v60, %v10406_v22  ;;  %v3358_v37 = vmul.f32 %v3351_v40, %v10407_v30 }
 0x452   :  { %3324 = vmatpush.msrb.mxu3 %v3239_v0  ;;  %v2513_v52 = vpop.f32.mrf.mxu1 }
 0x454   :  { %3444 = vmatpush.msra.mxu3 %v3364_v48 }
 0x455   :  { %6680 = vmatmul.msk.f32.vlgmr.msrb.gmra.mxu0 %vm183_vm2, %v6679_v34 }
 0x456   :  { %3445 = vmatpush.msra.mxu3 %v3360_v28  ;;  %6681 = vmatmul.msk.f32.vlgmr.msra.gmra.mxu1 %vm183_vm2, %v6679_v34  ;;  %v3344_v5 = vpop.permute.xlu1 %3343 }
 0x457   :  { %6682 = vmatmul.msk.f32.vlgmr.msra.gmra.mxu2 %vm183_vm2, %v6679_v34  ;;  %6683 = vmatmul.msk.f32.vlgmr.msrb.gmra.mxu3 %vm183_vm2, %v6679_v34  ;;  %v3350_v2 = vsel %vm1120_vm8, %v3344_v5, %v3348_v58 }
 0x458   :  { %v3363_v15 = vmul.f32 %v3350_v2, %v10405_v42 }
 0x45a   :  { %3424 = vmatpush.msrb.mxu2 %v3363_v15 }
 0x45c   :  { %3425 = vmatpush.msrb.mxu2 %v3359_v41 }
 0x45e   :  { %v3340_v9 = vpop.permute.xlu1 %3339 }
 0x45f   :  { %6687 = vmatmul.msk.f32.vlgmr.msrb.gmra.mxu2 %vm183_vm2, %v6684_v25  ;;  %6688 = vmatmul.msk.f32.vlgmr.msra.gmra.mxu3 %vm183_vm2, %v6684_v25  ;;  %v3352_v50 = vsel %vm1120_vm8, %v3340_v9, %v3344_v5  ;;  %v3354_v11 = vsel %vm1120_vm8, %v8656_v56, %v3340_v9 }
 0x460   :  { %v3361_v58 = vmul.f32 %v3354_v11, %v10406_v22  ;;  %v3362_v14 = vmul.f32 %v3352_v50, %v10407_v30 }
 0x462   :  { %3384 = vmatpush.msra.mxu0 %v3361_v58  ;;  %3404 = vmatpush.msrb.mxu1 %v3362_v14  ;;  %v2596_v48 = vpop.f32.mrf.mxu1 }
 0x463   :  { %v2597_v16 = vadd.f32 %v2596_v48, %v2513_v52 }
 0x464   :  { %3385 = vmatpush.msra.mxu0 %v3357_v7  ;;  %3405 = vmatpush.msrb.mxu1 %v3358_v37 }
 0x465   :  { %6685 = vmatmul.msk.f32.vlgmr.msra.gmra.mxu0 %vm183_vm2, %v6684_v25  ;;  %6686 = vmatmul.msk.f32.vlgmr.msrb.gmra.mxu1 %vm183_vm2, %v6684_v25 }
 0x46a   :  { %v2713_v1 = vpop.f32.mrf.mxu1 }
 0x46b   :  { %v2757_v30 = vadd.f32 %v2713_v1, %v2597_v16 }
 0x484   :  { %v2834_v9 = vpop.f32.mrf.mxu1 }
 0x485   :  { %v2878_v36 = vadd.f32 %v2834_v9, %v2757_v30  ;;  %v5029_v9 = vld [vmem:[%s10164_s19] sm:$0xff] }
 0x487   :  { %v2533_v0 = vpop.f32.mrf.mxu2 }
 0x489   :  { %v2493_v12 = vpop.f32.mrf.mxu0 }
 0x48d   :  { %v2923_v11 = vpop.f32.mrf.mxu1 }
 0x48e   :  { %v2967_v53 = vadd.f32 %v2923_v11, %v2878_v36 }
 0x48f   :  { %v2553_v56 = vpop.f32.mrf.mxu3 }
 0x493   :  { %v2576_v28 = vpop.f32.mrf.mxu0 }
 0x494   :  { %v2577_v19 = vadd.f32 %v2576_v28, %v2493_v12 }
 0x498   :  { %v2616_v34 = vpop.f32.mrf.mxu2  ;;  %v2636_v5 = vpop.f32.mrf.mxu3 }
 0x499   :  { %v2617_v61 = vadd.f32 %v2616_v34, %v2533_v0  ;;  %v2637_v22 = vadd.f32 %v2636_v5, %v2553_v56 }
 0x4a8   :  { %v2733_v15 = vpop.f32.mrf.mxu2 }
 0x4a9   :  { %v2758_v35 = vadd.f32 %v2733_v15, %v2617_v61 }
 0x4aa   :  { %v2693_v2 = vpop.f32.mrf.mxu0 }
 0x4ab   :  { %v2756_v42 = vadd.f32 %v2693_v2, %v2577_v19 }
 0x4b1   :  { %v2753_v41 = vpop.f32.mrf.mxu3 }
 0x4b2   :  { %v2814_v8 = vpop.f32.mrf.mxu0  ;;  %v2854_v60 = vpop.f32.mrf.mxu2  ;;  %v2759_v27 = vadd.f32 %v2753_v41, %v2637_v22  ;;  %v4575_v41 = vld [vmem:[%s10159_s14 + $0x8] sm:$0xff] }
 0x4b3   :  { %v2879_v44 = vadd.f32 %v2854_v60, %v2758_v35  ;;  %v2877_v24 = vadd.f32 %v2814_v8, %v2756_v42  ;;  %v3458_v42 = vpop.permute.xlu0 %3457  ;;  %v4996_v8 = vld [vmem:[#allocation2] sm:$0x1]  ;;  %v4574_v60 = vld [vmem:[%s10159_s14] sm:$0xff] }
 0x4b9   :  { %v2874_v40 = vpop.f32.mrf.mxu3 }
 0x4ba   :  { %v2903_v50 = vpop.f32.mrf.mxu0  ;;  %v2943_v25 = vpop.f32.mrf.mxu2  ;;  %v2880_v21 = vadd.f32 %v2874_v40, %v2759_v27 }
 0x4bb   :  { %v2968_v57 = vadd.f32 %v2943_v25, %v2879_v44  ;;  %v2966_v4 = vadd.f32 %v2903_v50, %v2877_v24  ;;  %v5030_v50 = vld [vmem:[%s10164_s19 + $0x8] sm:$0xff] }
 0x4c1   :  { %v2963_v58 = vpop.f32.mrf.mxu3 }
 0x4c2   :  { %v3024_v14 = vpop.f32.mrf.mxu0  ;;  %v3044_v7 = vpop.f32.mrf.mxu1  ;;  %v2969_v52 = vadd.f32 %v2963_v58, %v2880_v21 }
 0x4c3   :  { %v3088_v0 = vadd.f32 %v3044_v7, %v2967_v53  ;;  %v3087_v56 = vadd.f32 %v3024_v14, %v2966_v4 }
 0x4c9   :  { %v3064_v37 = vpop.f32.mrf.mxu2  ;;  %v3084_v17 = vpop.f32.mrf.mxu3 }
 0x4ca   :  { %v3145_v45 = vpop.f32.mrf.mxu0  ;;  %v3089_v62 = vadd.f32 %v3064_v37, %v2968_v57  ;;  %v3090_v12 = vadd.f32 %v3084_v17, %v2969_v52  ;;  %v3472_v17 = vpop.permute.xlu1 %3471 }
 0x4cb   :  { %v3165_v23 = vpop.f32.mrf.mxu1  ;;  %v3208_v35 = vadd.f32 %v3145_v45, %v3087_v56 }
 0x4cc   :  { %v3209_v19 = vadd.f32 %v3165_v23, %v3088_v0 }
 0x4d1   :  { %v3185_v6 = vpop.f32.mrf.mxu2 }
 0x4d2   :  { %v3205_v33 = vpop.f32.mrf.mxu3  ;;  %v3266_v43 = vpop.f32.mrf.mxu0  ;;  %v3210_v16 = vadd.f32 %v3185_v6, %v3089_v62 }
 0x4d3   :  { %v3286_v48 = vpop.f32.mrf.mxu1  ;;  %v3211_v61 = vadd.f32 %v3205_v33, %v3090_v12  ;;  %v3329_v21 = vadd.f32 %v3266_v43, %v3208_v35 }
 0x4d4   :  { %v3330_v28 = vadd.f32 %v3286_v48, %v3209_v19  ;;  %v6689_v48 = vld [vmem:[%s10158_s13 + $0x10] sm:$0xff] }
 0x4da   :  { %v3306_v63 = vpop.f32.mrf.mxu2  ;;  %v3326_v46 = vpop.f32.mrf.mxu3 }
 0x4db   :  { %v3331_v22 = vadd.f32 %v3306_v63, %v3210_v16  ;;  %v3332_v30 = vadd.f32 %v3326_v46, %v3211_v61 }
 0x4e2   :  { %v3427_v27 = vpop.f32.mrf.mxu2  ;;  %v3447_v34 = vpop.f32.mrf.mxu3 }
 0x4e3   :  { %v3452_v44 = vadd.f32 %v3427_v27, %v3331_v22  ;;  %v3387_v5 = vpop.f32.mrf.mxu0  ;;  %v3453_v1 = vadd.f32 %v3447_v34, %v3332_v30  ;;  %v3407_v36 = vpop.f32.mrf.mxu1  ;;  %v6690_v34 = vld [vmem:[%s10158_s13 + $0x18] sm:$0xff] }
 0x4e4   :  { %v3451_v24 = vadd.f32 %v3407_v36, %v3330_v28  ;;  %v3450_v6 = vadd.f32 %v3387_v5, %v3329_v21 }
 0x4e5   :  { %v3462_v57 = vadd.f32 %v3458_v42, %v3452_v44  ;;  %v3463_v53 = vadd.f32 %v3458_v42, %v3453_v1 }
 0x4e6   :  { %v3461_v23 = vadd.f32 %v3458_v42, %v3451_v24  ;;  %v3460_v46 = vadd.f32 %v3458_v42, %v3450_v6  ;;  %v3498_v6 = vld [vmem:[%s10158_s13] sm:$0xff] }
 0x4e7   :  { %vm3466_vm14 = vcmp.gt.f32.partialorder %v3462_v57, 0.0  ;;  %v3476_v33 = vmul.f32 %v3472_v17, %v3462_v57  ;;  %vm3467_vm15 = vcmp.gt.f32.partialorder %v3463_v53, 0.0  ;;  %v3477_v45 = vmul.f32 %v3472_v17, %v3463_v53 }
 0x4e8   :  { %vm3465_vm9 = vcmp.gt.f32.partialorder %v3461_v23, 0.0  ;;  %v3475_v4 = vmul.f32 %v3472_v17, %v3461_v23  ;;  %v3474_v2 = vmul.f32 %v3472_v17, %v3460_v46  ;;  %vm3464_vm10 = vcmp.gt.f32.partialorder %v3460_v46, 0.0 }
 0x4e9   :  { %v8748_v62 = vsel %vm3466_vm14, %v3462_v57, %v3476_v33  ;;  %v8750_v63 = vsel %vm3467_vm15, %v3463_v53, %v3477_v45 }
 0x4ea   :  { %3504 = vrot.lane.b32.xlu0 %v8748_v62, %s6959_s17  ;;  %v8754_v43 = vsel %vm3465_vm9, %v3461_v23, %v3475_v4  ;;  %3506 = vrot.lane.b32.xlu1 %v8750_v63, %s6959_s17  ;;  %v8760_v15 = vsel %vm3464_vm10, %v3460_v46, %v3474_v2  ;;  %vm5120_vm10 = vcmask 15360  }
 0x4eb   :  { %3502 = vrot.lane.b32.xlu2 %v8754_v43, %s6959_s17 }
 0x4f2   :  { %3486 = vrot.lane.b32.xlu0 %v8748_v62, %s6960_s5  ;;  %3500 = vrot.lane.b32.xlu1 %v8760_v15, %s6959_s17 }
 0x4f3   :  { %3484 = vrot.lane.b32.xlu2 %v8754_v43, %s6960_s5 }
 0x4fa   :  { %3482 = vrot.lane.b32.xlu0 %v8760_v15, %s6960_s5  ;;  %3717 = vrot.lane.b32.xlu1 %v8754_v43, %s6961_s22 }
 0x4fb   :  { %3488 = vrot.lane.b32.xlu2 %v8750_v63, %s6960_s5 }
 0x502   :  { %3721 = vrot.lane.b32.xlu0 %v8750_v63, %s6961_s22  ;;  %3715 = vrot.lane.b32.xlu1 %v8760_v15, %s6961_s22 }
 0x503   :  { %3719 = vrot.lane.b32.xlu2 %v8748_v62, %s6961_s22 }
 0x50a   :  { %3844 = vrot.lane.b32.xlu0 %v8748_v62, %s6962_s23  ;;  %3846 = vrot.lane.b32.xlu1 %v8750_v63, %s6962_s23 }
 0x50b   :  { %3842 = vrot.lane.b32.xlu2 %v8754_v43, %s6962_s23 }
 0x512   :  { %4078 = vrot.lane.b32.xlu0 %v8748_v62, %s6963_s1  ;;  %4080 = vrot.lane.b32.xlu1 %v8750_v63, %s6963_s1 }
 0x513   :  { %3840 = vrot.lane.b32.xlu2 %v8760_v15, %s6962_s23 }
 0x51a   :  { %4076 = vrot.lane.b32.xlu0 %v8754_v43, %s6963_s1  ;;  %4203 = vrot.lane.b32.xlu1 %v8748_v62, %s6964_s24 }
 0x51b   :  { %4074 = vrot.lane.b32.xlu2 %v8760_v15, %s6963_s1 }
 0x522   :  { %4199 = vrot.lane.b32.xlu0 %v8760_v15, %s6964_s24  ;;  %4201 = vrot.lane.b32.xlu1 %v8754_v43, %s6964_s24 }
 0x523   :  { %4205 = vrot.lane.b32.xlu2 %v8750_v63, %s6964_s24 }
 0x52a   :  { %4330 = vrot.lane.b32.xlu0 %v8750_v63, %s6965_s28  ;;  %4324 = vrot.lane.b32.xlu1 %v8760_v15, %s6965_s28 }
 0x52b   :  { %4328 = vrot.lane.b32.xlu2 %v8748_v62, %s6965_s28 }
 0x532   :  { %4453 = vrot.lane.b32.xlu0 %v8748_v62, %s10331_s26  ;;  %4455 = vrot.lane.b32.xlu1 %v8750_v63, %s10331_s26 }
 0x533   :  { %4326 = vrot.lane.b32.xlu2 %v8754_v43, %s6965_s28 }
 0x53a   :  { %4451 = vrot.lane.b32.xlu0 %v8754_v43, %s10331_s26  ;;  %4583 = vperm.xlu1 %6917, %v4575_v41  }
 0x53b   :  { %4449 = vrot.lane.b32.xlu2 %v8760_v15, %s10331_s26 }
 0x542   :  { %4999 = vperm.xlu0 %6919, %v4996_v8   ;;  %5033 = vperm.xlu1 %6917, %v5029_v9  }
 0x543   :  { %4578 = vperm.xlu2 %6918, %v4574_v60  }
 0x545   :  { %v3503_v40 = vpop.permute.xlu2 %3502 }
 0x54b   :  { %5038 = vperm.xlu2 %6918, %v5030_v50  }
 0x54d   :  { %v3485_v11 = vpop.permute.xlu2 %3484 }
 0x555   :  { %v3489_v58 = vpop.permute.xlu2 %3488 }
 0x55c   :  { %v3505_v25 = vpop.permute.xlu0 %3504  ;;  %v3507_v14 = vpop.permute.xlu1 %3506 }
 0x55d   :  { %v3509_v7 = vsel %vm153_vm0, %v3503_v40, %v3505_v25  ;;  %v3508_v37 = vsel %vm153_vm0, %v3505_v25, %v3507_v14  ;;  %v3720_v0 = vpop.permute.xlu2 %3719 }
 0x55e   :  { %v3514_v52 = vmul.f32 %v3509_v7, %v10380_v13  ;;  %v3515_v12 = vmul.f32 %v3508_v37, %v10382_v55  ;;  %v6781_v13 = vld [vmem:[%s10160_s15 + $0x10] sm:$0xff] }
 0x560   :  { %3586 = vmatpush.msra.mxu2 %v3514_v52  ;;  %3609 = vmatpush.msrb.mxu3 %v3515_v12  ;;  %v6707_v12 = vld [vmem:[%s10158_s13 + $0x20] sm:$0xff] }
 0x561   :  { %6695 = vmatmul.msk.f32.vlgmr.msra.gmra.mxu2 %vm1302_vm13, %v6689_v48  ;;  %6697 = vmatmul.msk.f32.vlgmr.msrb.gmra.mxu3 %vm1302_vm13, %v6689_v48 }
 0x564   :  { %v3487_v16 = vpop.permute.xlu0 %3486  ;;  %v3501_v19 = vpop.permute.xlu1 %3500 }
 0x565   :  { %v3490_v56 = vsel %vm109_vm1, %v3487_v16, %v3489_v58  ;;  %v3491_v61 = vsel %vm109_vm1, %v3485_v11, %v3487_v16  ;;  %v3510_v30 = vsel %vm153_vm0, %v3501_v19, %v3503_v40  ;;  %v3511_v27 = vsel %vm153_vm0, %v3507_v14, %v3501_v19  ;;  %v3843_v5 = vpop.permute.xlu2 %3842  ;;  %v3499_v40 = vld [vmem:[%s10158_s13 + $0x8] sm:$0xff]  ;;  %v6717_v19 = vld [vmem:[%s10158_s13 + $0x30] sm:$0xff] }
 0x566   :  { %v3496_v22 = vmul.f32 %v3491_v61, %v10384_v26  ;;  %v3497_v35 = vmul.f32 %v3490_v56, %v10385_v47  ;;  %v3512_v28 = vmul.f32 %v3511_v27, %v10381_v31  ;;  %v3513_v44 = vmul.f32 %v3510_v30, %v10376_v38  ;;  %v6708_v16 = vld [vmem:[%s10158_s13 + $0x28] sm:$0xff] }
 0x567   :  { %v10409_v30 = vld [vmem:[#allocation26_spill] sm:$0xff] }
 0x568   :  { %3684 = vmatpush.msrb.mxu2 %v3496_v22  ;;  %3707 = vmatpush.msra.mxu3 %v3497_v35  ;;  %v10408_v22 = vld [vmem:[#allocation24_spill] sm:$0xff] }
 0x569   :  { %3540 = vmatpush.msrb.mxu0 %v3512_v28  ;;  %3563 = vmatpush.msra.mxu1 %v3513_v44 }
 0x56a   :  { %6691 = vmatmul.msk.f32.vlgmr.msrb.gmra.mxu0 %vm1302_vm13, %v6689_v48  ;;  %6693 = vmatmul.msk.f32.vlgmr.msra.gmra.mxu1 %vm1302_vm13, %v6689_v48 }
 0x56b   :  { %6696 = vmatmul.msk.f32.gmra.mxu2 %vm1302_vm13, %v6690_v34  ;;  %6698 = vmatmul.msk.f32.gmra.mxu3 %vm1302_vm13, %v6690_v34 }
 0x56c   :  { %v3483_v42 = vpop.permute.xlu0 %3482  ;;  %v3718_v36 = vpop.permute.xlu1 %3717 }
 0x56d   :  { %v3492_v21 = vsel %vm109_vm1, %v3483_v42, %v3485_v11  ;;  %v3493_v1 = vsel %vm109_vm1, %v3489_v58, %v3483_v42  ;;  %v3724_v17 = vsel %vm366_vm3, %v3718_v36, %v3720_v0  ;;  %v3841_v33 = vpop.permute.xlu2 %3840 }
 0x56e   :  { %v3494_v57 = vmul.f32 %v3493_v1, %v10383_v39  ;;  %v3495_v24 = vmul.f32 %v3492_v21, %v10377_v51  ;;  %v3729_v53 = vmul.f32 %v3724_v17, %v10386_v32  ;;  %v3850_v8 = vsel %vm499_vm4, %v3841_v33, %v3843_v5  ;;  %v10411_v21 = vld [vmem:[#allocation23_spill] sm:$0xff] }
 0x56f   :  { %v3853_v50 = vmul.f32 %v3850_v8, %v10379_v54 }
 0x570   :  { %3638 = vmatpush.msra.mxu0 %v3494_v57  ;;  %3661 = vmatpush.msrb.mxu1 %v3495_v24 }
 0x571   :  { %3801 = vmatpush.msra.mxu2 %v3729_v53  ;;  %v6727_v53 = vld [vmem:[%s10158_s13 + $0x40] sm:$0xff] }
 0x572   :  { %6692 = vmatmul.msk.f32.gmra.mxu0 %vm1302_vm13, %v6690_v34  ;;  %6694 = vmatmul.msk.f32.gmra.mxu1 %vm1302_vm13, %v6690_v34  ;;  %v6718_v34 = vld [vmem:[%s10158_s13 + $0x38] sm:$0xff] }
 0x573   :  { %6703 = vmatmul.msk.f32.vlgmr.msrb.gmra.mxu2 %vm1302_vm13, %v3498_v6  ;;  %6705 = vmatmul.msk.f32.vlgmr.msra.gmra.mxu3 %vm1302_vm13, %v3498_v6 }
 0x574   :  { %v3722_v23 = vpop.permute.xlu0 %3721  ;;  %v3716_v4 = vpop.permute.xlu1 %3715 }
 0x575   :  { %v3723_v45 = vsel %vm366_vm3, %v3720_v0, %v3722_v23  ;;  %v3725_v2 = vsel %vm366_vm3, %v3716_v4, %v3718_v36  ;;  %v3726_v41 = vsel %vm366_vm3, %v3722_v23, %v3716_v4  ;;  %v10413_v23 = vld [vmem:[#allocation28_spill] sm:$0xff] }
 0x576   :  { %v3730_v46 = vmul.f32 %v3723_v45, %v10389_v18  ;;  %v3727_v9 = vmul.f32 %v3726_v41, %v10388_v20  ;;  %v3728_v60 = vmul.f32 %v3725_v2, %v10378_v59  ;;  %v6728_v41 = vld [vmem:[%s10158_s13 + $0x48] sm:$0xff] }
 0x578   :  { %3824 = vmatpush.msrb.mxu3 %v3730_v46  ;;  %3755 = vmatpush.msrb.mxu0 %v3727_v9  ;;  %v10414_v9 = vld [vmem:[#allocation29_spill] sm:$0xff] }
 0x579   :  { %3778 = vmatpush.msra.mxu1 %v3728_v60 }
 0x57a   :  { %6699 = vmatmul.msk.f32.vlgmr.msra.gmra.mxu0 %vm1302_vm13, %v3498_v6  ;;  %6701 = vmatmul.msk.f32.vlgmr.msrb.gmra.mxu1 %vm1302_vm13, %v3498_v6  ;;  %v10412_v6 = vld [vmem:[#allocation27_spill] sm:$0xff] }
 0x57b   :  { %6704 = vmatmul.msk.f32.gmra.mxu2 %vm1302_vm13, %v3499_v40  ;;  %6706 = vmatmul.msk.f32.gmra.mxu3 %vm1302_vm13, %v3499_v40 }
 0x57c   :  { %3903 = vmatpush.msrb.mxu1 %v3853_v50  ;;  %v3845_v11 = vpop.permute.xlu0 %3844  ;;  %v3847_v25 = vpop.permute.xlu1 %3846 }
 0x57d   :  { %v3849_v58 = vsel %vm499_vm4, %v3843_v5, %v3845_v11  ;;  %v3848_v7 = vsel %vm499_vm4, %v3845_v11, %v3847_v25  ;;  %v3851_v37 = vsel %vm499_vm4, %v3847_v25, %v3841_v33  ;;  %v10410_v5 = vld [vmem:[#allocation25_spill] sm:$0xff] }
 0x57e   :  { %v3854_v14 = vmul.f32 %v3849_v58, %v10387_v29  ;;  %v3852_v52 = vmul.f32 %v3851_v37, %v10390_v49  ;;  %v3855_v48 = vmul.f32 %v3848_v7, %v10391_v10  ;;  %v6737_v7 = vld [vmem:[%s10158_s13 + $0x50] sm:$0xff] }
 0x57f   :  { %v10416_v37 = vld [vmem:[#allocation31_spill] sm:$0xff] }
 0x580   :  { %3926 = vmatpush.msrb.mxu2 %v3854_v14  ;;  %3880 = vmatpush.msra.mxu0 %v3852_v52 }
 0x581   :  { %3949 = vmatpush.msra.mxu3 %v3855_v48  ;;  %v10417_v48 = vld [vmem:[#allocation32_spill] sm:$0xff] }
 0x582   :  { %6700 = vmatmul.msk.f32.gmra.mxu0 %vm1302_vm13, %v3499_v40  ;;  %6702 = vmatmul.msk.f32.gmra.mxu1 %vm1302_vm13, %v3499_v40  ;;  %v10415_v40 = vld [vmem:[#allocation30_spill] sm:$0xff] }
 0x583   :  { %6713 = vmatmul.msk.f32.vlgmr.msra.gmra.mxu2 %vm1302_vm13, %v6707_v12  ;;  %6715 = vmatmul.msk.f32.vlgmr.msrb.gmra.mxu3 %vm1302_vm13, %v6707_v12 }
 0x584   :  { %4035 = vmatpush.msra.mxu2 %v8748_v62  ;;  %4058 = vmatpush.msrb.mxu3 %v8750_v63  ;;  %v4079_v0 = vpop.permute.xlu0 %4078  ;;  %v4081_v56 = vpop.permute.xlu1 %4080 }
 0x585   :  { %v4075_v62 = vpop.permute.xlu2 %4074  ;;  %v4082_v63 = vsel %vm721_vm5, %v4079_v0, %v4081_v56 }
 0x586   :  { %v4085_v61 = vsel %vm721_vm5, %v4081_v56, %v4075_v62  ;;  %v4088_v35 = vmul.f32 %v4082_v63, %v10408_v22  ;;  %v10418_v63 = vld [vmem:[#allocation34_spill] sm:$0xff] }
 0x587   :  { %v4089_v27 = vmul.f32 %v4085_v61, %v10409_v30 }
 0x58a   :  { %6709 = vmatmul.msk.f32.vlgmr.msrb.gmra.mxu0 %vm1302_vm13, %v6707_v12  ;;  %6711 = vmatmul.msk.f32.vlgmr.msra.gmra.mxu1 %vm1302_vm13, %v6707_v12 }
 0x58b   :  { %6714 = vmatmul.msk.f32.gmra.mxu2 %vm1302_vm13, %v6708_v16  ;;  %6716 = vmatmul.msk.f32.gmra.mxu3 %vm1302_vm13, %v6708_v16 }
 0x58c   :  { %3989 = vmatpush.msrb.mxu0 %v8760_v15  ;;  %4012 = vmatpush.msra.mxu1 %v8754_v43  ;;  %v4077_v28 = vpop.permute.xlu0 %4076  ;;  %v4204_v44 = vpop.permute.xlu1 %4203 }
 0x58d   :  { %v4083_v43 = vsel %vm721_vm5, %v4077_v28, %v4079_v0  ;;  %v4084_v15 = vsel %vm721_vm5, %v4075_v62, %v4077_v28  ;;  %v4206_v57 = vpop.permute.xlu2 %4205  ;;  %v6738_v62 = vld [vmem:[%s10158_s13 + $0x58] sm:$0xff] }
 0x58e   :  { %v4086_v42 = vmul.f32 %v4084_v15, %v10410_v5  ;;  %v4087_v1 = vmul.f32 %v4083_v43, %v10411_v21  ;;  %v4207_v24 = vsel %vm854_vm6, %v4204_v44, %v4206_v57 }
 0x58f   :  { %v4213_v33 = vmul.f32 %v4207_v24, %v10412_v6 }
 0x592   :  { %6710 = vmatmul.msk.f32.gmra.mxu0 %vm1302_vm13, %v6708_v16  ;;  %6712 = vmatmul.msk.f32.gmra.mxu1 %vm1302_vm13, %v6708_v16 }
 0x593   :  { %6723 = vmatmul.msk.f32.vlgmr.msrb.gmra.mxu2 %vm1302_vm13, %v6717_v19  ;;  %6725 = vmatmul.msk.f32.vlgmr.msra.gmra.mxu3 %vm1302_vm13, %v6717_v19 }
 0x594   :  { %4160 = vmatpush.msrb.mxu2 %v4088_v35  ;;  %4183 = vmatpush.msra.mxu3 %v4089_v27  ;;  %v4200_v36 = vpop.permute.xlu0 %4199  ;;  %v4202_v4 = vpop.permute.xlu1 %4201 }
 0x595   :  { %v4210_v17 = vsel %vm854_vm6, %v4206_v57, %v4200_v36  ;;  %v4208_v46 = vsel %vm854_vm6, %v4202_v4, %v4204_v44  ;;  %v4209_v2 = vsel %vm854_vm6, %v4200_v36, %v4202_v4  ;;  %v4329_v8 = vpop.permute.xlu2 %4328  ;;  %v10421_v36 = vld [vmem:[#allocation38_spill] sm:$0xff] }
 0x596   :  { %v4214_v45 = vmul.f32 %v4210_v17, %v10413_v23  ;;  %v4211_v60 = vmul.f32 %v4209_v2, %v10414_v9  ;;  %v4212_v50 = vmul.f32 %v4208_v46, %v10415_v40  ;;  %v10423_v46 = vld [vmem:[#allocation35_spill] sm:$0xff] }
 0x59a   :  { %6719 = vmatmul.msk.f32.vlgmr.msra.gmra.mxu0 %vm1302_vm13, %v6717_v19  ;;  %6721 = vmatmul.msk.f32.vlgmr.msrb.gmra.mxu1 %vm1302_vm13, %v6717_v19  ;;  %v10419_v19 = vld [vmem:[#allocation33_spill] sm:$0xff] }
 0x59b   :  { %6724 = vmatmul.msk.f32.gmra.mxu2 %vm1302_vm13, %v6718_v34  ;;  %6726 = vmatmul.msk.f32.gmra.mxu3 %vm1302_vm13, %v6718_v34 }
 0x59c   :  { %4114 = vmatpush.msra.mxu0 %v4086_v42  ;;  %4137 = vmatpush.msrb.mxu1 %v4087_v1  ;;  %v4331_v11 = vpop.permute.xlu0 %4330  ;;  %v4325_v58 = vpop.permute.xlu1 %4324  ;;  %v10420_v42 = vld [vmem:[#allocation36_spill] sm:$0xff] }
 0x59d   :  { %v4332_v25 = vsel %vm987_vm7, %v4329_v8, %v4331_v11  ;;  %v4335_v14 = vsel %vm987_vm7, %v4331_v11, %v4325_v58  ;;  %v4327_v0 = vpop.permute.xlu2 %4326  ;;  %v10427_v11 = vld [vmem:[#allocation42_spill] sm:$0xff] }
 0x59e   :  { %v4338_v52 = vmul.f32 %v4332_v25, %v10416_v37  ;;  %v4339_v12 = vmul.f32 %v4335_v14, %v10417_v48  ;;  %v4333_v16 = vsel %vm987_vm7, %v4327_v0, %v4329_v8  ;;  %v4334_v56 = vsel %vm987_vm7, %v4325_v58, %v4327_v0  ;;  %v10424_v8 = vld [vmem:[#allocation52_spill] sm:$0xff]  ;;  %v10428_v25 = vld [vmem:[#allocation39_spill] sm:$0xff] }
 0x59f   :  { %v4337_v61 = vmul.f32 %v4333_v16, %v10418_v63  ;;  %v4336_v35 = vmul.f32 %v4334_v56, %v10419_v19  ;;  %v6758_v58 = vld [vmem:[%s10158_s13 + $0x78] sm:$0xff] }
 0x5a0   :  { %v10429_v14 = vld [vmem:[#allocation55_spill] sm:$0xff] }
 0x5a2   :  { %6720 = vmatmul.msk.f32.gmra.mxu0 %vm1302_vm13, %v6718_v34  ;;  %6722 = vmatmul.msk.f32.gmra.mxu1 %vm1302_vm13, %v6718_v34  ;;  %v6747_v34 = vld [vmem:[%s10158_s13 + $0x60] sm:$0xff] }
 0x5a3   :  { %6733 = vmatmul.msk.f32.vlgmr.msra.gmra.mxu2 %vm1302_vm13, %v6727_v53  ;;  %6735 = vmatmul.msk.f32.vlgmr.msrb.gmra.mxu3 %vm1302_vm13, %v6727_v53 }
 0x5a4   :  { %4285 = vmatpush.msra.mxu2 %v4213_v33  ;;  %4308 = vmatpush.msrb.mxu3 %v4214_v45  ;;  %v4454_v27 = vpop.permute.xlu0 %4453  ;;  %v4456_v28 = vpop.permute.xlu1 %4455  ;;  %v6748_v33 = vld [vmem:[%s10158_s13 + $0x68] sm:$0xff] }
 0x5a5   :  { %v4450_v43 = vpop.permute.xlu2 %4449  ;;  %v4457_v15 = vsel %vm1120_vm8, %v4454_v27, %v4456_v28  ;;  %v10422_v45 = vld [vmem:[#allocation37_spill] sm:$0xff] }
 0x5a6   :  { %v4460_v44 = vsel %vm1120_vm8, %v4456_v28, %v4450_v43  ;;  %v4463_v1 = vmul.f32 %v4457_v15, %v10420_v42 }
 0x5a7   :  { %v4464_v57 = vmul.f32 %v4460_v44, %v10421_v36 }
 0x5aa   :  { %6729 = vmatmul.msk.f32.vlgmr.msrb.gmra.mxu0 %vm1302_vm13, %v6727_v53  ;;  %6731 = vmatmul.msk.f32.vlgmr.msra.gmra.mxu1 %vm1302_vm13, %v6727_v53 }
 0x5ab   :  { %6734 = vmatmul.msk.f32.gmra.mxu2 %vm1302_vm13, %v6728_v41  ;;  %6736 = vmatmul.msk.f32.gmra.mxu3 %vm1302_vm13, %v6728_v41 }
 0x5ac   :  { %4239 = vmatpush.msrb.mxu0 %v4211_v60  ;;  %4262 = vmatpush.msra.mxu1 %v4212_v50  ;;  %v4452_v24 = vpop.permute.xlu0 %4451  ;;  %v10425_v60 = vld [vmem:[#allocation53_spill] sm:$0xff]  ;;  %v10426_v50 = vld [vmem:[#allocation40_spill] sm:$0xff] }
 0x5ad   :  { %v4458_v17 = vsel %vm1120_vm8, %v4452_v24, %v4454_v27  ;;  %v4459_v53 = vsel %vm1120_vm8, %v4450_v43, %v4452_v24 }
 0x5ae   :  { %v4461_v4 = vmul.f32 %v4459_v53, %v10422_v45  ;;  %v4462_v2 = vmul.f32 %v4458_v17, %v10423_v46 }
 0x5b2   :  { %6730 = vmatmul.msk.f32.gmra.mxu0 %vm1302_vm13, %v6728_v41  ;;  %6732 = vmatmul.msk.f32.gmra.mxu1 %vm1302_vm13, %v6728_v41  ;;  %v6757_v41 = vld [vmem:[%s10158_s13 + $0x70] sm:$0xff] }
 0x5b3   :  { %6743 = vmatmul.msk.f32.vlgmr.msrb.gmra.mxu2 %vm1302_vm13, %v6737_v7  ;;  %6745 = vmatmul.msk.f32.vlgmr.msra.gmra.mxu3 %vm1302_vm13, %v6737_v7 }
 0x5b4   :  { %4410 = vmatpush.msrb.mxu2 %v4338_v52  ;;  %4433 = vmatpush.msra.mxu3 %v4339_v12  ;;  %v10431_v52 = vld [vmem:[#allocation51_spill] sm:$0xff]  ;;  %v6767_v12 = vld [vmem:[%s10158_s13 + $0x80] sm:$0xff] }
 0x5ba   :  { %6739 = vmatmul.msk.f32.vlgmr.msra.gmra.mxu0 %vm1302_vm13, %v6737_v7  ;;  %6741 = vmatmul.msk.f32.vlgmr.msrb.gmra.mxu1 %vm1302_vm13, %v6737_v7  ;;  %v10430_v7 = vld [vmem:[#allocation54_spill] sm:$0xff] }
 0x5bb   :  { %6744 = vmatmul.msk.f32.gmra.mxu2 %vm1302_vm13, %v6738_v62  ;;  %6746 = vmatmul.msk.f32.gmra.mxu3 %vm1302_vm13, %v6738_v62 }
 0x5bc   :  { %4364 = vmatpush.msra.mxu0 %v4336_v35  ;;  %4387 = vmatpush.msrb.mxu1 %v4337_v61  ;;  %v6768_v61 = vld [vmem:[%s10158_s13 + $0x88] sm:$0xff]  ;;  %s6780_s13 = sld [smem:[#allocation3 + $0x5]] }
 0x5c2   :  { %6740 = vmatmul.msk.f32.gmra.mxu0 %vm1302_vm13, %v6738_v62  ;;  %6742 = vmatmul.msk.f32.gmra.mxu1 %vm1302_vm13, %v6738_v62  ;;  %v4632_v47 = vstv %s6780_s13 }
 0x5c3   :  { %6753 = vmatmul.msk.f32.vlgmr.msra.gmra.mxu2 %vm1302_vm13, %v6747_v34  ;;  %6755 = vmatmul.msk.f32.vlgmr.msrb.gmra.mxu3 %vm1302_vm13, %v6747_v34  ;;  %v4633_v55 = vmul.f32 %v6781_v13, %v4632_v47  ;;  %v6782_v13 = vld [vmem:[%s10160_s15 + $0x18] sm:$0xff] }
 0x5c4   :  { %4535 = vmatpush.msra.mxu2 %v4463_v1  ;;  %4558 = vmatpush.msrb.mxu3 %v4464_v57 }
 0x5ca   :  { %6749 = vmatmul.msk.f32.vlgmr.msrb.gmra.mxu0 %vm1302_vm13, %v6747_v34  ;;  %6751 = vmatmul.msk.f32.vlgmr.msra.gmra.mxu1 %vm1302_vm13, %v6747_v34 }
 0x5cb   :  { %6754 = vmatmul.msk.f32.gmra.mxu2 %vm1302_vm13, %v6748_v33  ;;  %6756 = vmatmul.msk.f32.gmra.mxu3 %vm1302_vm13, %v6748_v33 }
 0x5cc   :  { %4489 = vmatpush.msrb.mxu0 %v4461_v4  ;;  %4512 = vmatpush.msra.mxu1 %v4462_v2 }
 0x5d2   :  { %6750 = vmatmul.msk.f32.gmra.mxu0 %vm1302_vm13, %v6748_v33  ;;  %6752 = vmatmul.msk.f32.gmra.mxu1 %vm1302_vm13, %v6748_v33 }
 0x5d3   :  { %6763 = vmatmul.msk.f32.vlgmr.msrb.gmra.mxu2 %vm1302_vm13, %v6757_v41  ;;  %6765 = vmatmul.msk.f32.vlgmr.msra.gmra.mxu3 %vm1302_vm13, %v6757_v41 }
 0x5d4   :  { %4701 = vmatpush.msrb.mxu2 %v10424_v8  ;;  %4724 = vmatpush.msra.mxu3 %v10425_v60 }
 0x5d6   :  { %4702 = vmatpush.msrb.mxu2 %v10426_v50  ;;  %4725 = vmatpush.msra.mxu3 %v10427_v11 }
 0x5da   :  { %6759 = vmatmul.msk.f32.vlgmr.msra.gmra.mxu0 %vm1302_vm13, %v6757_v41  ;;  %6761 = vmatmul.msk.f32.vlgmr.msrb.gmra.mxu1 %vm1302_vm13, %v6757_v41 }
 0x5db   :  { %6764 = vmatmul.msk.f32.gmra.mxu2 %vm1302_vm13, %v6758_v58  ;;  %6766 = vmatmul.msk.f32.gmra.mxu3 %vm1302_vm13, %v6758_v58 }
 0x5dc   :  { %4655 = vmatpush.msra.mxu0 %v10428_v25  ;;  %4678 = vmatpush.msrb.mxu1 %v10429_v14  ;;  %v4634_v25 = vmul.f32 %v6782_v13, %v4632_v47 }
 0x5de   :  { %4656 = vmatpush.msra.mxu0 %v10430_v7  ;;  %4679 = vmatpush.msrb.mxu1 %v10431_v52 }
 0x5e2   :  { %6760 = vmatmul.msk.f32.gmra.mxu0 %vm1302_vm13, %v6758_v58  ;;  %6762 = vmatmul.msk.f32.gmra.mxu1 %vm1302_vm13, %v6758_v58 }
 0x5e3   :  { %6773 = vmatmul.msk.f32.vlgmr.msra.gmra.mxu2 %vm1302_vm13, %v6767_v12  ;;  %6775 = vmatmul.msk.f32.vlgmr.msrb.gmra.mxu3 %vm1302_vm13, %v6767_v12 }
 0x5e4   :  { %v9057_v0 = vpop.f32.mrf.mxu2  ;;  %v9059_v16 = vpop.f32.mrf.mxu3 }
 0x5e7   :  { %v9061_v56 = vpop.f32.mrf.mxu0  ;;  %v9063_v62 = vpop.f32.mrf.mxu1 }
 0x5ea   :  { %6769 = vmatmul.msk.f32.vlgmr.msrb.gmra.mxu0 %vm1302_vm13, %v6767_v12  ;;  %6771 = vmatmul.msk.f32.vlgmr.msra.gmra.mxu1 %vm1302_vm13, %v6767_v12 }
 0x5eb   :  { %6774 = vmatmul.msk.f32.gmra.mxu2 %vm1302_vm13, %v6768_v61  ;;  %6776 = vmatmul.msk.f32.gmra.mxu3 %vm1302_vm13, %v6768_v61 }
 0x5ee   :  { %v9072_v35 = vpop.f32.mrf.mxu2  ;;  %v9074_v27 = vpop.f32.mrf.mxu3 }
 0x5ef   :  { %v9076_v28 = vpop.f32.mrf.mxu0  ;;  %v9078_v43 = vpop.f32.mrf.mxu1 }
 0x5f2   :  { %6770 = vmatmul.msk.f32.gmra.mxu0 %vm1302_vm13, %v6768_v61  ;;  %6772 = vmatmul.msk.f32.gmra.mxu1 %vm1302_vm13, %v6768_v61  ;;  %vm5127_vm13 = vcmask 1041408  }
 0x5f3   :  { %6787 = vmatmul.msk.f32.vlgmr.msrb.gmra.mxu2 %vm183_vm2, %v4633_v55  ;;  %6789 = vmatmul.msk.f32.vlgmr.msra.gmra.mxu3 %vm183_vm2, %v4633_v55 }
 0x5f6   :  { %v9082_v15 = vpop.f32.mrf.mxu2  ;;  %v9084_v44 = vpop.f32.mrf.mxu3 }
 0x5f7   :  { %v9086_v34 = vpop.f32.mrf.mxu0  ;;  %v9088_v1 = vpop.f32.mrf.mxu1  ;;  %v3687_v50 = vadd.f32 %v9082_v15, %v9057_v0  ;;  %v9210_v15 = vstv %s6777_s10 }
 0x5fa   :  { %6783 = vmatmul.msk.f32.vlgmr.msra.gmra.mxu0 %vm183_vm2, %v4633_v55  ;;  %6785 = vmatmul.msk.f32.vlgmr.msrb.gmra.mxu1 %vm183_vm2, %v4633_v55 }
 0x5fb   :  { %6788 = vmatmul.msk.f32.gmra.mxu2 %vm183_vm2, %v4634_v25  ;;  %6790 = vmatmul.msk.f32.gmra.mxu3 %vm183_vm2, %v4634_v25 }
 0x5fe   :  { %v9090_v57 = vpop.f32.mrf.mxu2  ;;  %v9092_v24 = vpop.f32.mrf.mxu3 }
 0x5ff   :  { %v9094_v17 = vpop.f32.mrf.mxu0  ;;  %v9096_v53 = vpop.f32.mrf.mxu1  ;;  %v3690_v0 = vadd.f32 %v9090_v57, %v9072_v35 }
 0x602   :  { %6784 = vmatmul.msk.f32.gmra.mxu0 %vm183_vm2, %v4634_v25  ;;  %6786 = vmatmul.msk.f32.gmra.mxu1 %vm183_vm2, %v4634_v25  ;;  %v3664_v25 = vadd.f32 %v9088_v1, %v9063_v62 }
 0x606   :  { %v9098_v33 = vpop.f32.mrf.mxu2  ;;  %v9100_v4 = vpop.f32.mrf.mxu3 }
 0x607   :  { %v9102_v2 = vpop.f32.mrf.mxu0  ;;  %v9104_v41 = vpop.f32.mrf.mxu1 }
 0x60e   :  { %v9106_v58 = vpop.f32.mrf.mxu2  ;;  %v9108_v12 = vpop.f32.mrf.mxu3 }
 0x60f   :  { %v9110_v61 = vpop.f32.mrf.mxu0  ;;  %v9112_v46 = vpop.f32.mrf.mxu1  ;;  %v3838_v35 = vadd.f32 %v9106_v58, %v3690_v0 }
 0x616   :  { %v9114_v45 = vpop.f32.mrf.mxu2  ;;  %v9116_v36 = vpop.f32.mrf.mxu3 }
 0x617   :  { %v9118_v42 = vpop.f32.mrf.mxu0  ;;  %v9120_v48 = vpop.f32.mrf.mxu1 }
 0x61e   :  { %v9122_v19 = vpop.f32.mrf.mxu2  ;;  %v9124_v37 = vpop.f32.mrf.mxu3 }
 0x61f   :  { %v9126_v63 = vpop.f32.mrf.mxu0  ;;  %v9128_v40 = vpop.f32.mrf.mxu1 }
 0x626   :  { %v9130_v23 = vpop.f32.mrf.mxu2  ;;  %v9132_v9 = vpop.f32.mrf.mxu3 }
 0x627   :  { %v9134_v21 = vpop.f32.mrf.mxu0  ;;  %v9136_v5 = vpop.f32.mrf.mxu1 }
 0x62e   :  { %v9138_v6 = vpop.f32.mrf.mxu2  ;;  %v9140_v22 = vpop.f32.mrf.mxu3 }
 0x62f   :  { %v9142_v54 = vpop.f32.mrf.mxu0  ;;  %v9144_v49 = vpop.f32.mrf.mxu1 }
 0x636   :  { %v9146_v30 = vpop.f32.mrf.mxu2  ;;  %v9148_v10 = vpop.f32.mrf.mxu3 }
 0x637   :  { %v9150_v29 = vpop.f32.mrf.mxu0  ;;  %v9152_v32 = vpop.f32.mrf.mxu1 }
 0x63e   :  { %v9154_v59 = vpop.f32.mrf.mxu2  ;;  %v9156_v20 = vpop.f32.mrf.mxu3 }
 0x63f   :  { %v9158_v26 = vpop.f32.mrf.mxu0  ;;  %v9160_v51 = vpop.f32.mrf.mxu1 }
 0x640   :  { %10432 = vst [vmem:[#allocation44_spill] sm:$0xff] %v9158_v26 }
 0x641   :  { %10433 = vst [vmem:[#allocation46_spill] sm:$0xff] %v9160_v51 }
 0x646   :  { %v9162_v18 = vpop.f32.mrf.mxu2  ;;  %v9164_v39 = vpop.f32.mrf.mxu3 }
 0x647   :  { %v9166_v38 = vpop.f32.mrf.mxu0  ;;  %v9168_v31 = vpop.f32.mrf.mxu1 }
 0x64e   :  { %v9177_v3 = vpop.f32.mrf.mxu2  ;;  %v9179_v52 = vpop.f32.mrf.mxu3 }
 0x64f   :  { %10434 = vst [vmem:[#allocation41_spill] sm:$0xff] %v9177_v3  ;;  %v9181_v7 = vpop.f32.mrf.mxu0  ;;  %v9183_v14 = vpop.f32.mrf.mxu1 }
 0x650   :  { %10435 = vst [vmem:[#allocation48_spill] sm:$0xff] %v9179_v52  ;;  %v3834_v52 = vadd.f32 %v9098_v33, %v3687_v50 }
 0x651   :  { %10436 = vst [vmem:[#allocation50_spill] sm:$0xff] %v9181_v7  ;;  %v3641_v7 = vadd.f32 %v9086_v34, %v9061_v56  ;;  %v3833_v56 = vadd.f32 %v9104_v41, %v3664_v25  ;;  %v3667_v34 = vadd.f32 %v9096_v53, %v9078_v43  ;;  %v10439_v41 = vld [vmem:[#allocation46_spill] sm:$0xff] }
 0x652   :  { %10437 = vst [vmem:[#allocation43_spill] sm:$0xff] %v9183_v14  ;;  %v3710_v14 = vadd.f32 %v9084_v44, %v9059_v16  ;;  %v3713_v16 = vadd.f32 %v9092_v24, %v9074_v27  ;;  %v3959_v62 = vadd.f32 %v9114_v45, %v3834_v52  ;;  %v3963_v52 = vadd.f32 %v9122_v19, %v3838_v35 }
 0x653   :  { %v3832_v44 = vadd.f32 %v9102_v2, %v3641_v7  ;;  %v3958_v7 = vadd.f32 %v9120_v48, %v3833_v56  ;;  %v10438_v2 = vld [vmem:[#allocation44_spill] sm:$0xff] }
 0x654   :  { %v3835_v3 = vadd.f32 %v9100_v4, %v3710_v14  ;;  %v3644_v14 = vadd.f32 %v9094_v17, %v9076_v28  ;;  %v3839_v27 = vadd.f32 %v9108_v12, %v3713_v16  ;;  %v4068_v57 = vadd.f32 %v9130_v23, %v3959_v62 }
 0x655   :  { %v3957_v1 = vadd.f32 %v9118_v42, %v3832_v44  ;;  %v4067_v24 = vadd.f32 %v9136_v5, %v3958_v7  ;;  %v4072_v17 = vadd.f32 %v9138_v6, %v3963_v52  ;;  %v4584_v52 = vpop.permute.xlu1 %4583 }
 0x656   :  { %v4412_v55 = vpop.f32.mrf.mxu2  ;;  %v4435_v60 = vpop.f32.mrf.mxu3  ;;  %v3960_v50 = vadd.f32 %v9116_v36, %v3835_v3  ;;  %v3836_v3 = vadd.f32 %v9110_v61, %v3644_v14  ;;  %v3837_v36 = vadd.f32 %v9112_v46, %v3667_v34  ;;  %v3964_v28 = vadd.f32 %v9124_v37, %v3839_v27  ;;  %v10440_v12 = vld [vmem:[#allocation41_spill] sm:$0xff] }
 0x657   :  { %v4366_v8 = vpop.f32.mrf.mxu0  ;;  %v4389_v11 = vpop.f32.mrf.mxu1  ;;  %v4066_v43 = vadd.f32 %v9134_v21, %v3957_v1  ;;  %v4193_v42 = vadd.f32 %v9146_v30, %v4068_v57  ;;  %v4192_v21 = vadd.f32 %v9152_v32, %v4067_v24  ;;  %v4197_v6 = vadd.f32 %v9154_v59, %v4072_v17  ;;  %v10441_v61 = vld [vmem:[#allocation48_spill] sm:$0xff]  ;;  %v10445_v1 = vld [vmem:[#allocation42_spill] sm:$0xff] }
 0x658   :  { %v4069_v45 = vadd.f32 %v9132_v9, %v3960_v50  ;;  %v3961_v23 = vadd.f32 %v9126_v63, %v3836_v3  ;;  %v3962_v9 = vadd.f32 %v9128_v40, %v3837_v36  ;;  %v4073_v46 = vadd.f32 %v9140_v22, %v3964_v28  ;;  %v10442_v16 = vld [vmem:[#allocation50_spill] sm:$0xff] }
 0x659   :  { %v4191_v37 = vadd.f32 %v9150_v29, %v4066_v43  ;;  %v4318_v5 = vadd.f32 %v9162_v18, %v4193_v42  ;;  %v4317_v32 = vadd.f32 %v9168_v31, %v4192_v21  ;;  %v10443_v44 = vld [vmem:[#allocation43_spill] sm:$0xff]  ;;  %v4599_v7 = vmul.f32 %v9210_v15, %v10445_v1 }
 0x65a   :  { %v4194_v48 = vadd.f32 %v9148_v10, %v4069_v45  ;;  %v4070_v63 = vadd.f32 %v9142_v54, %v3961_v23  ;;  %v4071_v40 = vadd.f32 %v9144_v49, %v3962_v9  ;;  %v4198_v22 = vadd.f32 %v9156_v20, %v4073_v46  ;;  %v4866_v1 = vld [vmem:[%s10452_s9 + $0xd8] sm:$0xff] }
 0x65b   :  { %v4316_v29 = vadd.f32 %v9166_v38, %v4191_v37  ;;  %v4443_v4 = vadd.f32 %v4412_v55, %v4318_v5  ;;  %v4322_v54 = vadd.f32 %v10440_v12, %v4197_v6  ;;  %v4442_v20 = vadd.f32 %v4389_v11, %v4317_v32  ;;  %v4579_v55 = vpop.permute.xlu2 %4578  ;;  %v10448_v6 = vld [vmem:[#allocation39_spill] sm:$0xff] }
 0x65c   :  { %v4319_v30 = vadd.f32 %v9164_v39, %v4194_v48  ;;  %v4195_v39 = vadd.f32 %v10438_v2, %v4070_v63  ;;  %v4196_v58 = vadd.f32 %v10439_v41, %v4071_v40  ;;  %v4323_v49 = vadd.f32 %v10441_v61, %v4198_v22 }
 0x65d   :  { %v4441_v59 = vadd.f32 %v4366_v8, %v4316_v29  ;;  %v10444_v8 = vld [vmem:[#allocation40_spill] sm:$0xff]  ;;  %v4605_v28 = vstv %s9246_s29  ;;  %v4625_v37 = vstv %s9254_s12  ;;  %v4600_v22 = vmul.f32 %v9210_v15, %v10448_v6  ;;  %v10449_v29 = vld [vmem:[#allocation55_spill] sm:$0xff] }
 0x65e   :  { %v9196_v47 = vpop.f32.mrf.mxu2  ;;  %v9198_v13 = vpop.f32.mrf.mxu3  ;;  %v4444_v18 = vadd.f32 %v4435_v60, %v4319_v30  ;;  %v4320_v38 = vadd.f32 %v10442_v16, %v4195_v39  ;;  %v4321_v31 = vadd.f32 %v10443_v44, %v4196_v58  ;;  %v4598_v11 = vmul.f32 %v9210_v15, %v10444_v8  ;;  %v4870_v44 = vld [vmem:[%s10452_s9 + $0xf8] sm:$0xff]  ;;  %v4867_v8 = vld [vmem:[%s10452_s9 + $0xe0] sm:$0xff]  ;;  %v4893_v6 = vld [vmem:[%s10452_s9 + $0x1b0] sm:$0xff] }
 0x65f   :  { %v4369_v51 = vpop.f32.mrf.mxu0  ;;  %v4392_v26 = vpop.f32.mrf.mxu1  ;;  %v4447_v60 = vadd.f32 %v9196_v47, %v4322_v54  ;;  %v4448_v56 = vadd.f32 %v9198_v13, %v4323_v49  ;;  %v4601_v32 = vmul.f32 %v9210_v15, %v10449_v29  ;;  %v10450_v54 = vld [vmem:[#allocation54_spill] sm:$0xff]  ;;  %v4858_v29 = vld [vmem:[%s10452_s9 + $0x98] sm:$0xff] }
 0x660   :  { %v4445_v14 = vadd.f32 %v4369_v51, %v4320_v38  ;;  %v4446_v34 = vadd.f32 %v4392_v26, %v4321_v31  ;;  %v10446_v26 = vld [vmem:[#allocation52_spill] sm:$0xff]  ;;  %v4596_v61 = vmul.f32 %v9210_v15, %v10450_v54 }
 0x661   :  { %v4602_v24 = vmul.f32 %v9210_v15, %v10446_v26  ;;  %v4854_v38 = vld [vmem:[%s10452_s9 + $0x78] sm:$0xff]  ;;  %v4863_v26 = vld [vmem:[%s10452_s9 + $0xc0] sm:$0xff] }
 0x662   :  { %v4886_v31 = vld [vmem:[%s10452_s9 + $0x178] sm:$0xff] }
 0x663   :  { %v4874_v54 = vld [vmem:[%s10452_s9 + $0x118] sm:$0xff] }
 0x666   :  { %v4537_v53 = vpop.f32.mrf.mxu2  ;;  %v4560_v19 = vpop.f32.mrf.mxu3 }
 0x667   :  { %v4491_v33 = vpop.f32.mrf.mxu0  ;;  %v4514_v10 = vpop.f32.mrf.mxu1  ;;  %v4568_v25 = vadd.f32 %v4537_v53, %v4443_v4  ;;  %v4569_v0 = vadd.f32 %v4560_v19, %v4444_v18  ;;  %v10447_v53 = vld [vmem:[#allocation53_spill] sm:$0xff] }
 0x668   :  { %v4566_v62 = vadd.f32 %v4491_v33, %v4441_v59  ;;  %v4567_v50 = vadd.f32 %v4514_v10, %v4442_v20  ;;  %v4603_v19 = vmul.f32 %v9210_v15, %v10447_v53  ;;  %v4623_v10 = vld [vmem:[%s10160_s15] sm:$0xff]  ;;  %v10451_v20 = vld [vmem:[#allocation51_spill] sm:$0xff] }
 0x669   :  { %v4588_v57 = vadd.f32 %v4579_v55, %v4568_v25  ;;  %v4589_v45 = vadd.f32 %v4579_v55, %v4569_v0  ;;  %v4626_v12 = vmul.f32 %v4625_v37, %v4623_v10  ;;  %v4597_v25 = vmul.f32 %v9210_v15, %v10451_v20  ;;  %v4624_v15 = vld [vmem:[%s10160_s15 + $0x8] sm:$0xff]  ;;  %v4861_v53 = vld [vmem:[%s10452_s9 + $0xb0] sm:$0xff]  ;;  %v4843_v10 = vld [vmem:[%s10452_s9 + $0x20] sm:$0xff] }
 0x66a   :  { %v4586_v42 = vadd.f32 %v4579_v55, %v4566_v62  ;;  %v4587_v48 = vadd.f32 %v4579_v55, %v4567_v50  ;;  %v4902_v55 = vld [vmem:[%s10452_s9 + $0x1f8] sm:$0xff]  ;;  %v4885_v62 = vld [vmem:[%s10452_s9 + $0x170] sm:$0xff] }
 0x66b   :  { %v4608_v21 = vmul.f32 %v4605_v28, %v4588_v57  ;;  %v4609_v5 = vmul.f32 %v4605_v28, %v4589_v45  ;;  %v4901_v50 = vld [vmem:[%s10452_s9 + $0x1f0] sm:$0xff]  ;;  %v4900_v57 = vld [vmem:[%s10452_s9 + $0x1e8] sm:$0xff] }
 0x66c   :  { %v4606_v4 = vmul.f32 %v4605_v28, %v4586_v42  ;;  %v4607_v18 = vmul.f32 %v4605_v28, %v4587_v48  ;;  %v4849_v45 = vld [vmem:[%s10452_s9 + $0x50] sm:$0xff]  ;;  %v4846_v48 = vld [vmem:[%s10452_s9 + $0x38] sm:$0xff] }
 0x66d   :  { %v4616_v49 = vadd.f32 %v4608_v21, %v4598_v11  ;;  %v4617_v59 = vadd.f32 %v4609_v5, %v4599_v7  ;;  %v4850_v11 = vld [vmem:[%s10452_s9 + $0x58] sm:$0xff]  ;;  %v4884_v7 = vld [vmem:[%s10452_s9 + $0x168] sm:$0xff]  ;;  %v4897_v42 = vld [vmem:[%s10452_s9 + $0x1d0] sm:$0xff] }
 0x66e   :  { %v4540_v35 = vpop.f32.mrf.mxu2  ;;  %v4563_v27 = vpop.f32.mrf.mxu3  ;;  %v4614_v0 = vadd.f32 %v4606_v4, %v4596_v61  ;;  %v4615_v16 = vadd.f32 %v4607_v18, %v4597_v25  ;;  %v4844_v21 = vld [vmem:[%s10452_s9 + $0x28] sm:$0xff]  ;;  %v4841_v18 = vld [vmem:[%s10452_s9 + $0x10] sm:$0xff]  ;;  %v4890_v61 = vld [vmem:[%s10452_s9 + $0x198] sm:$0xff] }
 0x66f   :  { %v4572_v3 = vadd.f32 %v4540_v35, %v4447_v60  ;;  %v4573_v47 = vadd.f32 %v4563_v27, %v4448_v56  ;;  %v4494_v36 = vpop.f32.mrf.mxu0  ;;  %v4517_v13 = vpop.f32.mrf.mxu1  ;;  %v4853_v60 = vld [vmem:[%s10452_s9 + $0x70] sm:$0xff]  ;;  %v4868_v35 = vld [vmem:[%s10452_s9 + $0xe8] sm:$0xff]  ;;  %v4851_v27 = vld [vmem:[%s10452_s9 + $0x60] sm:$0xff] }
 0x670   :  { %v4570_v43 = vadd.f32 %v4494_v36, %v4445_v14  ;;  %v4571_v51 = vadd.f32 %v4517_v13, %v4446_v34  ;;  %v4869_v56 = vld [vmem:[%s10452_s9 + $0xf0] sm:$0xff]  ;;  %v4627_v14 = vmul.f32 %v4625_v37, %v4624_v15  ;;  %v4852_v34 = vld [vmem:[%s10452_s9 + $0x68] sm:$0xff]  ;;  %v4899_v36 = vld [vmem:[%s10452_s9 + $0x1e0] sm:$0xff] }
 0x671   :  { %v4592_v23 = vadd.f32 %v4584_v52, %v4572_v3  ;;  %v4593_v9 = vadd.f32 %v4584_v52, %v4573_v47  ;;  %v4865_v3 = vld [vmem:[%s10452_s9 + $0xd0] sm:$0xff]  ;;  %v4883_v47 = vld [vmem:[%s10452_s9 + $0x160] sm:$0xff]  ;;  %v4848_v13 = vld [vmem:[%s10452_s9 + $0x48] sm:$0xff] }
 0x672   :  { %v4590_v17 = vadd.f32 %v4584_v52, %v4570_v43  ;;  %v4591_v46 = vadd.f32 %v4584_v52, %v4571_v51  ;;  %v4864_v52 = vld [vmem:[%s10452_s9 + $0xc8] sm:$0xff]  ;;  %v4898_v43 = vld [vmem:[%s10452_s9 + $0x1d8] sm:$0xff]  ;;  %v4847_v51 = vld [vmem:[%s10452_s9 + $0x40] sm:$0xff] }
 0x673   :  { %v4612_v30 = vmul.f32 %v4605_v28, %v4592_v23  ;;  %v4613_v33 = vmul.f32 %v4605_v28, %v4593_v9  ;;  %v4862_v23 = vld [vmem:[%s10452_s9 + $0xb8] sm:$0xff]  ;;  %v4880_v9 = vld [vmem:[%s10452_s9 + $0x148] sm:$0xff]  ;;  %v4895_v37 = vld [vmem:[%s10452_s9 + $0x1c0] sm:$0xff] }
 0x674   :  { %v4610_v63 = vmul.f32 %v4605_v28, %v4590_v17  ;;  %v4611_v40 = vmul.f32 %v4605_v28, %v4591_v46  ;;  %v4882_v28 = vld [vmem:[%s10452_s9 + $0x158] sm:$0xff]  ;;  %v4896_v17 = vld [vmem:[%s10452_s9 + $0x1c8] sm:$0xff]  ;;  %v4845_v46 = vld [vmem:[%s10452_s9 + $0x30] sm:$0xff] }
 0x675   :  { %v4620_v2 = vadd.f32 %v4612_v30, %v4602_v24  ;;  %v4621_v39 = vadd.f32 %v4613_v33, %v4603_v19  ;;  %v4881_v24 = vld [vmem:[%s10452_s9 + $0x150] sm:$0xff]  ;;  %v4879_v19 = vld [vmem:[%s10452_s9 + $0x140] sm:$0xff]  ;;  %v4860_v5 = vld [vmem:[%s10452_s9 + $0xa8] sm:$0xff] }
 0x676   :  { %v4618_v41 = vadd.f32 %v4610_v63, %v4600_v22  ;;  %v4619_v58 = vadd.f32 %v4611_v40, %v4601_v32  ;;  %v4878_v30 = vld [vmem:[%s10452_s9 + $0x138] sm:$0xff]  ;;  %v4859_v63 = vld [vmem:[%s10452_s9 + $0xa0] sm:$0xff]  ;;  %v4877_v40 = vld [vmem:[%s10452_s9 + $0x130] sm:$0xff] }
 0x677   :  { %4799 = vmatpush.msra.mxu2 %v4620_v2  ;;  %4822 = vmatpush.msrb.mxu3 %v4621_v39  ;;  %v4894_v33 = vld [vmem:[%s10452_s9 + $0x1b8] sm:$0xff]  ;;  %v4876_v32 = vld [vmem:[%s10452_s9 + $0x128] sm:$0xff]  ;;  %v4857_v2 = vld [vmem:[%s10452_s9 + $0x90] sm:$0xff]  ;;  %v4658_v15 = vpop.f32.mrf.mxu0 }
 0x678   :  { %4753 = vmatpush.msrb.mxu0 %v4618_v41  ;;  %4776 = vmatpush.msra.mxu1 %v4619_v58  ;;  %v4842_v22 = vld [vmem:[%s10452_s9 + $0x18] sm:$0xff]  ;;  %v4892_v4 = vld [vmem:[%s10452_s9 + $0x1a8] sm:$0xff]  ;;  %v4875_v39 = vld [vmem:[%s10452_s9 + $0x120] sm:$0xff] }
 0x679   :  { %4800 = vmatpush.msra.mxu2 %v4616_v49  ;;  %4823 = vmatpush.msrb.mxu3 %v4617_v59  ;;  %v4891_v41 = vld [vmem:[%s10452_s9 + $0x1a0] sm:$0xff]  ;;  %v4840_v58 = vld [vmem:[%s10452_s9 + $0x8] sm:$0xff]  ;;  %v4873_v20 = vld [vmem:[%s10452_s9 + $0x110] sm:$0xff] }
 0x67a   :  { %6795 = vmatmul.msk.f32.vlgmr.msra.gmra.mxu2 %vm183_vm2, %v4626_v12  ;;  %6797 = vmatmul.msk.f32.vlgmr.msrb.gmra.mxu3 %vm183_vm2, %v4626_v12  ;;  %v4839_v49 = vld [vmem:[%s10452_s9] sm:$0xff]  ;;  %v4889_v25 = vld [vmem:[%s10452_s9 + $0x190] sm:$0xff] }
 0x67b   :  { %4754 = vmatpush.msrb.mxu0 %v4614_v0  ;;  %4777 = vmatpush.msra.mxu1 %v4615_v16  ;;  %v4855_v59 = vld [vmem:[%s10452_s9 + $0x80] sm:$0xff]  ;;  %v4872_v0 = vld [vmem:[%s10452_s9 + $0x108] sm:$0xff] }
 0x67c   :  { %6791 = vmatmul.msk.f32.vlgmr.msrb.gmra.mxu0 %vm183_vm2, %v4626_v12  ;;  %6793 = vmatmul.msk.f32.vlgmr.msra.gmra.mxu1 %vm183_vm2, %v4626_v12  ;;  %v4856_v12 = vld [vmem:[%s10452_s9 + $0x88] sm:$0xff] }
 0x67d   :  { %4903 = vmatpush.msra.mxu0 %v4854_v38  ;;  %4926 = vmatpush.msrb.mxu1 %v4870_v44  ;;  %v4888_v16 = vld [vmem:[%s10452_s9 + $0x188] sm:$0xff]  ;;  %v4871_v38 = vld [vmem:[%s10452_s9 + $0x100] sm:$0xff] }
 0x67e   :  { %4949 = vmatpush.msrb.mxu2 %v4886_v31  ;;  %4972 = vmatpush.msra.mxu3 %v4902_v55  ;;  %v4887_v44 = vld [vmem:[%s10452_s9 + $0x180] sm:$0xff]  ;;  %v4681_v31 = vpop.f32.mrf.mxu1  ;;  %v4704_v55 = vpop.f32.mrf.mxu2 }
 0x67f   :  { %4904 = vmatpush.msra.mxu0 %v4853_v60  ;;  %4927 = vmatpush.msrb.mxu1 %v4869_v56  ;;  %v4727_v60 = vpop.f32.mrf.mxu3  ;;  %v4661_v56 = vpop.f32.mrf.mxu0 }
 0x680   :  { %4950 = vmatpush.msrb.mxu2 %v4885_v62  ;;  %4973 = vmatpush.msra.mxu3 %v4901_v50 }
 0x681   :  { %4905 = vmatpush.msra.mxu0 %v4852_v34  ;;  %4928 = vmatpush.msrb.mxu1 %v4868_v35 }
 0x682   :  { %6796 = vmatmul.msk.f32.gmra.mxu2 %vm183_vm2, %v4627_v14  ;;  %6798 = vmatmul.msk.f32.gmra.mxu3 %vm183_vm2, %v4627_v14 }
 0x683   :  { %4906 = vmatpush.msra.mxu0 %v4851_v27  ;;  %4929 = vmatpush.msrb.mxu1 %v4867_v8 }
 0x684   :  { %6792 = vmatmul.msk.f32.gmra.mxu0 %vm183_vm2, %v4627_v14  ;;  %6794 = vmatmul.msk.f32.gmra.mxu1 %vm183_vm2, %v4627_v14 }
 0x685   :  { %4907 = vmatpush.msra.mxu0 %v4850_v11  ;;  %4930 = vmatpush.msrb.mxu1 %v4866_v1 }
 0x686   :  { %4951 = vmatpush.msrb.mxu2 %v4884_v7  ;;  %4974 = vmatpush.msra.mxu3 %v4900_v57  ;;  %v4684_v62 = vpop.f32.mrf.mxu1  ;;  %v4707_v50 = vpop.f32.mrf.mxu2 }
 0x687   :  { %4908 = vmatpush.msra.mxu0 %v4849_v45  ;;  %4931 = vmatpush.msrb.mxu1 %v4865_v3  ;;  %v4730_v14 = vpop.f32.mrf.mxu3 }
 0x688   :  { %4952 = vmatpush.msrb.mxu2 %v4883_v47  ;;  %4975 = vmatpush.msra.mxu3 %v4899_v36 }
 0x689   :  { %4909 = vmatpush.msra.mxu0 %v4848_v13  ;;  %4932 = vmatpush.msrb.mxu1 %v4864_v52 }
 0x68a   :  { %4953 = vmatpush.msrb.mxu2 %v4882_v28  ;;  %4976 = vmatpush.msra.mxu3 %v4898_v43 }
 0x68b   :  { %4910 = vmatpush.msra.mxu0 %v4847_v51  ;;  %4933 = vmatpush.msrb.mxu1 %v4863_v26 }
 0x68c   :  { %4954 = vmatpush.msrb.mxu2 %v4881_v24  ;;  %4977 = vmatpush.msra.mxu3 %v4897_v42 }
 0x68d   :  { %4911 = vmatpush.msra.mxu0 %v4846_v48  ;;  %4934 = vmatpush.msrb.mxu1 %v4862_v23 }
 0x68e   :  { %4955 = vmatpush.msrb.mxu2 %v4880_v9  ;;  %4978 = vmatpush.msra.mxu3 %v4896_v17 }
 0x68f   :  { %4912 = vmatpush.msra.mxu0 %v4845_v46  ;;  %4935 = vmatpush.msrb.mxu1 %v4861_v53 }
 0x690   :  { %4956 = vmatpush.msrb.mxu2 %v4879_v19  ;;  %4979 = vmatpush.msra.mxu3 %v4895_v37 }
 0x691   :  { %4913 = vmatpush.msra.mxu0 %v4844_v21  ;;  %4936 = vmatpush.msrb.mxu1 %v4860_v5 }
 0x692   :  { %4957 = vmatpush.msrb.mxu2 %v4878_v30  ;;  %4980 = vmatpush.msra.mxu3 %v4894_v33 }
 0x693   :  { %4914 = vmatpush.msra.mxu0 %v4843_v10  ;;  %4937 = vmatpush.msrb.mxu1 %v4859_v63 }
 0x694   :  { %4958 = vmatpush.msrb.mxu2 %v4877_v40  ;;  %4981 = vmatpush.msra.mxu3 %v4893_v6 }
 0x695   :  { %4915 = vmatpush.msra.mxu0 %v4842_v22  ;;  %4938 = vmatpush.msrb.mxu1 %v4858_v29 }
 0x696   :  { %4959 = vmatpush.msrb.mxu2 %v4876_v32  ;;  %4982 = vmatpush.msra.mxu3 %v4892_v4  ;;  %v4995_v32 = vld [vmem:[%s10161_s16] sm:$0x1]  ;;  %v5000_v4 = vpop.permute.xlu0 %4999 }
 0x697   :  { %4916 = vmatpush.msra.mxu0 %v4841_v18  ;;  %4939 = vmatpush.msrb.mxu1 %v4857_v2  ;;  %v5002_v18 = vperm.slane %v5000_v4, 0 }
 0x698   :  { %4960 = vmatpush.msrb.mxu2 %v4875_v39  ;;  %4983 = vmatpush.msra.mxu3 %v4891_v41 }
 0x699   :  { %4917 = vmatpush.msra.mxu0 %v4840_v58  ;;  %4940 = vmatpush.msrb.mxu1 %v4856_v12  ;;  %v5027_v58 = vld [vmem:[%s10163_s18] sm:$0xff]  ;;  %v5028_v12 = vld [vmem:[%s10163_s18 + $0x8] sm:$0xff] }
 0x69a   :  { %4961 = vmatpush.msrb.mxu2 %v4874_v54  ;;  %4984 = vmatpush.msra.mxu3 %v4890_v61  ;;  %v5113_v54 = vld [vmem:[%s10453_s4] sm:$0xff] }
 0x69b   :  { %4918 = vmatpush.msra.mxu0 %v4839_v49  ;;  %4941 = vmatpush.msrb.mxu1 %v4855_v59  ;;  %5115 = vst [vmem:[#allocation1] ss:$4 sm:$0xff] %v5113_v54 }
 0x69c   :  { %4962 = vmatpush.msrb.mxu2 %v4873_v20  ;;  %4985 = vmatpush.msra.mxu3 %v4889_v25  ;;  %v5034_v25 = vpop.permute.xlu1 %5033 }
 0x69e   :  { %4963 = vmatpush.msrb.mxu2 %v4872_v0  ;;  %4986 = vmatpush.msra.mxu3 %v4888_v16 }
 0x6a0   :  { %4964 = vmatpush.msrb.mxu2 %v4871_v38  ;;  %4987 = vmatpush.msra.mxu3 %v4887_v44  ;;  %v5039_v44 = vpop.permute.xlu2 %5038 }
 0x6a2   :  { %v5116_v61 = vld.sshfl [vmem:[#allocation1] sm:$0xff pattern:$0x73625140]  ;;  %v5117_v49 = vld.sshfl [vmem:[#allocation1 + $0x8] sm:$0xff pattern:$0x73625140] }
 0x6a3   :  { %6805 = vmatpush.msk.msra.mxu2 %vm5127_vm13, %v5116_v61  ;;  %6808 = vmatpush.msk.msrb.mxu3 %vm5127_vm13, %v5117_v49  ;;  %v5118_v59 = vld.sshfl [vmem:[#allocation1 + $0x10] sm:$0xff pattern:$0x73625140]  ;;  %v5119_v20 = vld.sshfl [vmem:[#allocation1 + $0x18] sm:$0xff pattern:$0x73625140] }
 0x6f9   :  { %v4756_v34 = vpop.f32.mrf.mxu0  ;;  %v4779_v35 = vpop.f32.mrf.mxu1 }
 0x6fa   :  { %v9484_v27 = vadd.f32 %v4756_v34, %v4658_v15  ;;  %v9486_v8 = vadd.f32 %v4779_v35, %v4681_v31 }
 0x6fc   :  { %v4831_v11 = vmax.f32 %v9484_v27, 0.0  ;;  %v4832_v1 = vmax.f32 %v9486_v8, 0.0 }
 0x6fd   :  { %v4802_v7 = vpop.f32.mrf.mxu2  ;;  %v4825_v57 = vpop.f32.mrf.mxu3 }
 0x6fe   :  { %v9490_v45 = vadd.f32 %v4802_v7, %v4704_v55  ;;  %v9492_v3 = vadd.f32 %v4825_v57, %v4727_v60  ;;  %4919 = vmatmul.f32.vlgmr.msra.gmra.mxu0 %v4831_v11  ;;  %4942 = vmatmul.f32.vlgmr.msrb.gmra.mxu1 %v4832_v1 }
 0x700   :  { %v4833_v47 = vmax.f32 %v9490_v45, 0.0  ;;  %v4834_v36 = vmax.f32 %v9492_v3, 0.0 }
 0x701   :  { %v4759_v13 = vpop.f32.mrf.mxu0  ;;  %v4782_v52 = vpop.f32.mrf.mxu1 }
 0x702   :  { %v9500_v28 = vadd.f32 %v4759_v13, %v4661_v56  ;;  %v9502_v43 = vadd.f32 %v4782_v52, %v4684_v62  ;;  %4965 = vmatmul.f32.vlgmr.msrb.gmra.mxu2 %v4833_v47  ;;  %4988 = vmatmul.f32.vlgmr.msra.gmra.mxu3 %v4834_v36 }
 0x704   :  { %v4835_v51 = vmax.f32 %v9500_v28, 0.0  ;;  %v4836_v26 = vmax.f32 %v9502_v43, 0.0 }
 0x705   :  { %v4805_v24 = vpop.f32.mrf.mxu2  ;;  %v4828_v42 = vpop.f32.mrf.mxu3 }
 0x706   :  { %v9510_v48 = vadd.f32 %v4805_v24, %v4707_v50  ;;  %v9512_v23 = vadd.f32 %v4828_v42, %v4730_v14  ;;  %4922 = vmatmul.f32.gmra.mxu0 %v4835_v51  ;;  %4945 = vmatmul.f32.gmra.mxu1 %v4836_v26 }
 0x708   :  { %v4837_v9 = vmax.f32 %v9510_v48, 0.0  ;;  %v4838_v17 = vmax.f32 %v9512_v23, 0.0 }
 0x70a   :  { %4968 = vmatmul.f32.gmra.mxu2 %v4837_v9  ;;  %4991 = vmatmul.f32.gmra.mxu3 %v4838_v17 }
 0x77b   :  { %v4920_v46 = vpop.f32.mrf.mxu0  ;;  %v4943_v53 = vpop.f32.mrf.mxu1 }
 0x77c   :  { %v4944_v30 = vadd.f32 %v4943_v53, %v4920_v46 }
 0x783   :  { %v4923_v21 = vpop.f32.mrf.mxu0  ;;  %v4946_v5 = vpop.f32.mrf.mxu1 }
 0x784   :  { %v4947_v33 = vadd.f32 %v4946_v5, %v4923_v21 }
 0x785   :  { %v4966_v19 = vpop.f32.mrf.mxu2  ;;  %v4989_v37 = vpop.f32.mrf.mxu3 }
 0x786   :  { %v4967_v63 = vadd.f32 %v4966_v19, %v4944_v30 }
 0x788   :  { %v4990_v29 = vadd.f32 %v4989_v37, %v4967_v63 }
 0x78d   :  { %v4969_v10 = vpop.f32.mrf.mxu2  ;;  %v4992_v6 = vpop.f32.mrf.mxu3 }
 0x78e   :  { %v4970_v40 = vadd.f32 %v4969_v10, %v4947_v33 }
 0x790   :  { %v4993_v22 = vadd.f32 %v4992_v6, %v4970_v40 }
 0x792   :  { %5020 = vmatpush.msrb.mxu0 %v4993_v22 }
 0x794   :  { %5021 = vmatpush.msrb.mxu0 %v4990_v29 }
 0x795   :  { %6799 = vmatmul.msk.f32.vlgmr.msrb.gmra.mxu0 %vm183_vm2, %v4995_v32 }
 0x796   :  { %6811 = vmatpush.msk.msra.mxu0 %vm5127_vm13, %v5118_v59 }
 0x812   :  { %v5023_v2 = vpop.f32.mrf.mxu0 }
 0x813   :  { %v5024_v39 = vadd.f32 %v5023_v2, %v5002_v18 }
 0x815   :  { %v5026_v41 = vmax.f32 %v5024_v39, 0.0 }
 0x817   :  { %6800 = vmatpush.msk.msra.mxu1 %vm5048_vm11, %v5026_v41 }
 0x818   :  { %6801 = vmatmul.msk.f32.vlgmr.msra.gmra.mxu1 %vm5041_vm12, %v5027_v58 }
 0x819   :  { %6814 = vmatpush.msk.msrb.mxu1 %vm5127_vm13, %v5119_v20 }
 0x820   :  { %6802 = vmatmul.msk.f32.gmra.mxu1 %vm5041_vm12, %v5028_v12 }
 0x895   :  { %v5069_v0 = vpop.f32.mrf.mxu1 }
 0x896   :  { %v5070_v16 = vadd.f32 %v5069_v0, %v5034_v25  ;;  %v10455_v25 = vld [vmem:[#allocation11_spill] sm:$0xff] }
 0x898   :  { %v6803_v38 = vmul.f32 -1.442695, %v5070_v16 }
 0x89a   :  { %6920 = vpow2.f32 %v6803_v38 }
 0x89d   :  { %v5072_v15 = vpop.f32.mrf.mxu1 }
 0x89e   :  { %v5073_v31 = vadd.f32 %v5072_v15, %v5039_v44 }
 0x8a0   :  { %v6921_v55 = vpop.eup %6920  ;;  %v6804_v60 = vmul.f32 -1.442695, %v5073_v31 }
 0x8a1   :  { %v5081_v56 = vadd.f32 1.0, %v6921_v55  ;;  %v10456_v55 = vld [vmem:[#allocation14_spill] sm:$0xff] }
 0x8a2   :  { %6922 = vpow2.f32 %v6804_v60 }
 0x8a3   :  { %6924 = vrcp.f32 %v5081_v56  ;;  %v5094_v7 = vand.u32 2147483648, %v5081_v56  ;;  %v5092_v13 = vand.u32 2147483647, %v5081_v56  ;;  %vm5088_vm15 = vweird.f32 %v5081_v56 }
 0x8a5   :  { %v5095_v42 = vor.u32 1.1754944e-38, %v5094_v7  ;;  %vm5093_vm11 = vcmp.eq.f32.partialorder %v5092_v13, 8.507059e+37 }
 0x8a8   :  { %v6923_v62 = vpop.eup %6922 }
 0x8a9   :  { %v6925_v50 = vpop.eup %6924  ;;  %v5082_v14 = vadd.f32 1.0, %v6923_v62 }
 0x8aa   :  { %v5084_v34 = vmul.f32 %v6925_v50, %v5081_v56  ;;  %vm5089_vm14 = vweird.f32 %v6925_v50  ;;  %v10457_v56 = vld [vmem:[#allocation9_spill] sm:$0xff] }
 0x8ab   :  { %6926 = vrcp.f32 %v5082_v14  ;;  %vm5090_vm9 = vmor %vm5088_vm15, %vm5089_vm14  ;;  %v5109_v21 = vand.u32 2147483648, %v5082_v14  ;;  %v5107_v30 = vand.u32 2147483647, %v5082_v14  ;;  %vm5103_vm13 = vweird.f32 %v5082_v14 }
 0x8ac   :  { %v5085_v35 = vsub.f32 1.0, %v5084_v34 }
 0x8ad   :  { %v5110_v10 = vor.u32 1.1754944e-38, %v5109_v21  ;;  %vm5108_vm15 = vcmp.eq.f32.partialorder %v5107_v30, 8.507059e+37 }
 0x8ae   :  { %v5086_v57 = vmul.f32 %v6925_v50, %v5085_v35 }
 0x8b0   :  { %v5087_v52 = vadd.f32 %v6925_v50, %v5086_v57 }
 0x8b1   :  { %v6927_v24 = vpop.eup %6926 }
 0x8b2   :  { %v5091_v46 = vsel %vm5090_vm9, %v6925_v50, %v5087_v52  ;;  %v5099_v53 = vmul.f32 %v6927_v24, %v5082_v14  ;;  %vm5104_vm12 = vweird.f32 %v6927_v24  ;;  %v6817_v50 = vld [vmem:[%s10165_s20 + $0x10] sm:$0xff] }
 0x8b3   :  { %v5096_v19 = vsel %vm5093_vm11, %v5095_v42, %v5091_v46  ;;  %vm5105_vm14 = vmor %vm5103_vm13, %vm5104_vm12  ;;  %v10458_v52 = vld [vmem:[#allocation10_spill] sm:$0xff]  ;;  %v10459_v42 = vld [vmem:[#allocation7_spill] sm:$0xff] }
 0x8b4   :  { %6806 = vmatmul.msk.f32.vlgmr.msra.gmra.mxu2 %vm5120_vm10, %v5096_v19  ;;  %6809 = vmatmul.msk.f32.vlgmr.msrb.gmra.mxu3 %vm5120_vm10, %v5096_v19  ;;  %v5100_v37 = vsub.f32 1.0, %v5099_v53 }
 0x8b5   :  { %6812 = vmatmul.msk.f32.vlgmr.msra.gmra.mxu0 %vm5120_vm10, %v5096_v19  ;;  %6815 = vmatmul.msk.f32.vlgmr.msrb.gmra.mxu1 %vm5120_vm10, %v5096_v19 }
 0x8b6   :  { %v5101_v5 = vmul.f32 %v6927_v24, %v5100_v37 }
 0x8b8   :  { %v5102_v33 = vadd.f32 %v6927_v24, %v5101_v5 }
 0x8ba   :  { %v5106_v63 = vsel %vm5105_vm14, %v6927_v24, %v5102_v33  ;;  %v6818_v33 = vld [vmem:[%s10165_s20 + $0x18] sm:$0xff] }
 0x8bb   :  { %v5111_v40 = vsel %vm5108_vm15, %v5110_v10, %v5106_v63  ;;  %v10460_v10 = vld [vmem:[#allocation13_spill] sm:$0xff] }
 0x8bc   :  { %6807 = vmatmul.msk.f32.gmra.mxu2 %vm5120_vm10, %v5111_v40  ;;  %6810 = vmatmul.msk.f32.gmra.mxu3 %vm5120_vm10, %v5111_v40 }
 0x8bd   :  { %6813 = vmatmul.msk.f32.gmra.mxu0 %vm5120_vm10, %v5111_v40  ;;  %6816 = vmatmul.msk.f32.gmra.mxu1 %vm5120_vm10, %v5111_v40 }
 0x932   :  { %v5199_v6 = vpop.f32.mrf.mxu0  ;;  %v5222_v22 = vpop.f32.mrf.mxu1 }
 0x933   :  { %v9547_v29 = vmul.f32 %v5199_v6, %v4833_v47  ;;  %v9551_v32 = vmul.f32 %v5222_v22, %v4834_v36 }
 0x935   :  { %5282 = vrot.lane.b32.xlu2 %v9551_v32, %s6959_s17  ;;  %5278 = vrot.lane.b32.xlu1 %v9547_v29, %s6959_s17 }
 0x937   :  { %v5153_v4 = vpop.f32.mrf.mxu2  ;;  %v5176_v2 = vpop.f32.mrf.mxu3 }
 0x938   :  { %v9559_v18 = vmul.f32 %v5153_v4, %v4831_v11  ;;  %v9565_v45 = vmul.f32 %v5176_v2, %v4832_v1 }
 0x93a   :  { %5270 = vrot.lane.b32.xlu0 %v9559_v18, %s6959_s17  ;;  %v5225_v3 = vpop.f32.mrf.mxu1  ;;  %v5202_v11 = vpop.f32.mrf.mxu0 }
 0x93b   :  { %v9575_v27 = vmul.f32 %v5225_v3, %v4838_v17  ;;  %v9583_v8 = vmul.f32 %v5202_v11, %v4837_v9  ;;  %v5268_v11 = vld [vmem:[%s10165_s20] sm:$0xff] }
 0x93d   :  { %5274 = vrot.lane.b32.xlu1 %v9565_v45, %s6959_s17  ;;  %5236 = vrot.lane.b32.xlu2 %v9559_v18, %s6960_s5 }
 0x93f   :  { %v5179_v1 = vpop.f32.mrf.mxu3  ;;  %v5156_v36 = vpop.f32.mrf.mxu2 }
 0x940   :  { %v9589_v47 = vmul.f32 %v5179_v1, %v4836_v26  ;;  %v9597_v48 = vmul.f32 %v5156_v36, %v4835_v51 }
 0x942   :  { %5240 = vrot.lane.b32.xlu0 %v9565_v45, %s6960_s5 }
 0x945   :  { %5250 = vrot.lane.b32.xlu1 %v9575_v27, %s6960_s5  ;;  %5284 = vrot.lane.b32.xlu2 %v9575_v27, %s6959_s17 }
 0x94a   :  { %5280 = vrot.lane.b32.xlu0 %v9583_v8, %s6959_s17 }
 0x94d   :  { %5276 = vrot.lane.b32.xlu1 %v9589_v47, %s6959_s17  ;;  %5246 = vrot.lane.b32.xlu2 %v9583_v8, %s6960_s5 }
 0x952   :  { %5272 = vrot.lane.b32.xlu0 %v9597_v48, %s6959_s17 }
 0x955   :  { %5248 = vrot.lane.b32.xlu1 %v9551_v32, %s6960_s5  ;;  %5505 = vrot.lane.b32.xlu2 %v9565_v45, %s6961_s22 }
 0x95a   :  { %5244 = vrot.lane.b32.xlu0 %v9547_v29, %s6960_s5 }
 0x95d   :  { %5501 = vrot.lane.b32.xlu1 %v9559_v18, %s6961_s22  ;;  %5238 = vrot.lane.b32.xlu2 %v9597_v48, %s6960_s5 }
 0x962   :  { %5515 = vrot.lane.b32.xlu0 %v9575_v27, %s6961_s22 }
 0x965   :  { %5511 = vrot.lane.b32.xlu1 %v9583_v8, %s6961_s22  ;;  %5509 = vrot.lane.b32.xlu2 %v9547_v29, %s6961_s22 }
 0x96a   :  { %5242 = vrot.lane.b32.xlu0 %v9589_v47, %s6960_s5 }
 0x96d   :  { %5503 = vrot.lane.b32.xlu1 %v9597_v48, %s6961_s22  ;;  %5507 = vrot.lane.b32.xlu2 %v9589_v47, %s6961_s22 }
 0x972   :  { %5513 = vrot.lane.b32.xlu0 %v9551_v32, %s6961_s22 }
 0x975   :  { %5646 = vrot.lane.b32.xlu1 %v9565_v45, %s6962_s23  ;;  %5656 = vrot.lane.b32.xlu2 %v9575_v27, %s6962_s23 }
 0x97a   :  { %5642 = vrot.lane.b32.xlu0 %v9559_v18, %s6962_s23 }
 0x97d   :  { %5648 = vrot.lane.b32.xlu1 %v9589_v47, %s6962_s23  ;;  %5654 = vrot.lane.b32.xlu2 %v9551_v32, %s6962_s23 }
 0x982   :  { %5652 = vrot.lane.b32.xlu0 %v9583_v8, %s6962_s23 }
 0x985   :  { %5650 = vrot.lane.b32.xlu1 %v9547_v29, %s6962_s23  ;;  %5892 = vrot.lane.b32.xlu2 %v9559_v18, %s6963_s1 }
 0x98a   :  { %5644 = vrot.lane.b32.xlu0 %v9597_v48, %s6962_s23 }
 0x98d   :  { %5902 = vrot.lane.b32.xlu1 %v9583_v8, %s6963_s1  ;;  %5906 = vrot.lane.b32.xlu2 %v9575_v27, %s6963_s1 }
 0x98f   :  { %v5283_v28 = vpop.permute.xlu2 %5282 }
 0x992   :  { %5896 = vrot.lane.b32.xlu0 %v9565_v45, %s6963_s1 }
 0x995   :  { %5900 = vrot.lane.b32.xlu1 %v9547_v29, %s6963_s1  ;;  %6037 = vrot.lane.b32.xlu2 %v9565_v45, %s6964_s24 }
 0x997   :  { %v9653_v43 = vpop.permute.xlu2 %5236 }
 0x99a   :  { %5904 = vrot.lane.b32.xlu0 %v9551_v32, %s6963_s1 }
 0x99d   :  { %6033 = vrot.lane.b32.xlu1 %v9559_v18, %s6964_s24  ;;  %5894 = vrot.lane.b32.xlu2 %v9597_v48, %s6963_s1 }
 0x99f   :  { %v5285_v51 = vpop.permute.xlu2 %5284 }
 0x9a2   :  { %6043 = vrot.lane.b32.xlu0 %v9583_v8, %s6964_s24 }
 0x9a5   :  { %6047 = vrot.lane.b32.xlu1 %v9575_v27, %s6964_s24  ;;  %6045 = vrot.lane.b32.xlu2 %v9551_v32, %s6964_s24 }
 0x9a7   :  { %v5279_v26 = vpop.permute.xlu1 %5278  ;;  %v9667_v23 = vpop.permute.xlu2 %5246 }
 0x9a8   :  { %v5286_v49 = vsel %vm153_vm0, %v5279_v26, %v5283_v28 }
 0x9a9   :  { %v5297_v44 = vmul.f32 %v5286_v49, %v10455_v25 }
 0x9aa   :  { %5898 = vrot.lane.b32.xlu0 %v9589_v47, %s6963_s1 }
 0x9ac   :  { %v5271_v9 = vpop.permute.xlu0 %5270 }
 0x9ad   :  { %6035 = vrot.lane.b32.xlu1 %v9597_v48, %s6964_s24  ;;  %6039 = vrot.lane.b32.xlu2 %v9589_v47, %s6964_s24  ;;  %v5292_v35 = vsel %vm153_vm0, %v5283_v28, %v5271_v9 }
 0x9ae   :  { %v5294_v21 = vmul.f32 %v5292_v35, %v10458_v52  ;;  %v10466_v35 = vld [vmem:[#allocation16_spill] sm:$0xff] }
 0x9af   :  { %v5275_v17 = vpop.permute.xlu1 %5274  ;;  %v9675_v39 = vpop.permute.xlu2 %5505 }
 0x9b0   :  { %v5288_v15 = vsel %vm153_vm0, %v5275_v17, %v5279_v26  ;;  %v5290_v13 = vsel %vm153_vm0, %v5271_v9, %v5275_v17  ;;  %v10461_v26 = vld [vmem:[#allocation15_spill] sm:$0xff]  ;;  %v5269_v17 = vld [vmem:[%s10165_s20 + $0x8] sm:$0xff] }
 0x9b1   :  { %v5296_v14 = vmul.f32 %v5288_v15, %v10457_v56  ;;  %v5295_v5 = vmul.f32 %v5290_v13, %v10459_v42 }
 0x9b2   :  { %6041 = vrot.lane.b32.xlu0 %v9547_v29, %s6964_s24 }
 0x9b4   :  { %v9679_v41 = vpop.permute.xlu0 %5240 }
 0x9b5   :  { %6178 = vrot.lane.b32.xlu1 %v9565_v45, %s6965_s28  ;;  %6184 = vrot.lane.b32.xlu2 %v9583_v8, %s6965_s28 }
 0x9b7   :  { %v5251_v58 = vpop.permute.xlu1 %5250  ;;  %v9685_v12 = vpop.permute.xlu2 %5238 }
 0x9b8   :  { %v5253_v20 = vsel %vm109_vm1, %v9667_v23, %v5251_v58  ;;  %v5259_v53 = vsel %vm109_vm1, %v5251_v58, %v9685_v12 }
 0x9b9   :  { %v5267_v60 = vmul.f32 %v5253_v20, %v10456_v55  ;;  %v5264_v63 = vmul.f32 %v5259_v53, %v10460_v10 }
 0x9ba   :  { %6174 = vrot.lane.b32.xlu0 %v9559_v18, %s6965_s28 }
 0x9bc   :  { %v5281_v54 = vpop.permute.xlu0 %5280 }
 0x9bd   :  { %v5287_v59 = vsel %vm153_vm0, %v5281_v54, %v5285_v51  ;;  %6180 = vrot.lane.b32.xlu1 %v9589_v47, %s6965_s28  ;;  %6182 = vrot.lane.b32.xlu2 %v9547_v29, %s6965_s28 }
 0x9be   :  { %v5301_v0 = vmul.f32 %v5287_v59, %v10455_v25  ;;  %v10462_v25 = vld [vmem:[#allocation8_spill] sm:$0xff] }
 0x9bf   :  { %v5277_v16 = vpop.permute.xlu1 %5276  ;;  %v9701_v38 = vpop.permute.xlu2 %5509 }
 0x9c0   :  { %v5289_v31 = vsel %vm153_vm0, %v5277_v16, %v5281_v54  ;;  %5394 = vmatpush.msra.mxu1 %v5301_v0  ;;  %v5256_v54 = vsel %vm109_vm1, %v9653_v43, %v9679_v41 }
 0x9c1   :  { %v5300_v62 = vmul.f32 %v5289_v31, %v10457_v56 }
 0x9c2   :  { %5395 = vmatpush.msra.mxu1 %v5297_v44  ;;  %6188 = vrot.lane.b32.xlu0 %v9575_v27, %s6965_s28 }
 0x9c3   :  { %5371 = vmatpush.msrb.mxu0 %v5300_v62  ;;  %6825 = vmatmul.msk.f32.vlgmr.msra.gmra.mxu1 %vm183_vm2, %v6817_v50  ;;  %v10465_v62 = vld [vmem:[#allocation18_spill] sm:$0xff] }
 0x9c4   :  { %5492 = vmatpush.msrb.mxu1 %v5267_v60  ;;  %v5273_v34 = vpop.permute.xlu0 %5272  ;;  %v10464_v60 = vld [vmem:[#allocation17_spill] sm:$0xff] }
 0x9c5   :  { %5372 = vmatpush.msrb.mxu0 %v5296_v14  ;;  %6186 = vrot.lane.b32.xlu1 %v9551_v32, %s6965_s28  ;;  %v5291_v7 = vsel %vm153_vm0, %v5273_v34, %v5277_v16  ;;  %v5293_v57 = vsel %vm153_vm0, %v5285_v51, %v5273_v34  ;;  %v10463_v16 = vld [vmem:[#allocation12_spill] sm:$0xff]  ;;  %v5519_v34 = vsel %vm366_vm3, %v9675_v39, %v9701_v38 }
 0x9c6   :  { %6315 = vrot.lane.b32.xlu2 %v9559_v18, %s10331_s26  ;;  %v5298_v24 = vmul.f32 %v5293_v57, %v10458_v52  ;;  %v5299_v46 = vmul.f32 %v5291_v7, %v10459_v42  ;;  %6823 = vmatmul.msk.f32.vlgmr.msrb.gmra.mxu0 %vm183_vm2, %v6817_v50 }
 0x9c7   :  { %v5249_v19 = vpop.permute.xlu1 %5248  ;;  %v5508_v37 = vpop.permute.xlu2 %5507 }
 0x9c8   :  { %5325 = vmatpush.msrb.mxu2 %v5298_v24  ;;  %5348 = vmatpush.msra.mxu3 %v5299_v46  ;;  %v5258_v30 = vsel %vm109_vm1, %v5249_v19, %v9653_v43  ;;  %v5261_v43 = vmul.f32 %v5256_v54, %v10462_v25  ;;  %v5527_v24 = vmul.f32 %v5519_v34, %v10466_v35 }
 0x9c9   :  { %v5260_v40 = vmul.f32 %v5258_v30, %v10460_v10  ;;  %v6836_v30 = vld [vmem:[%s10165_s20 + $0x28] sm:$0xff] }
 0x9ca   :  { %6176 = vrot.lane.b32.xlu0 %v9597_v48, %s6965_s28  ;;  %5326 = vmatpush.msrb.mxu2 %v5294_v21 }
 0x9cb   :  { %5349 = vmatpush.msra.mxu3 %v5295_v5  ;;  %6819 = vmatmul.msk.f32.vlgmr.msrb.gmra.mxu2 %vm183_vm2, %v6817_v50 }
 0x9cc   :  { %5423 = vmatpush.msra.mxu2 %v5264_v63  ;;  %v5245_v6 = vpop.permute.xlu0 %5244  ;;  %6826 = vmatmul.msk.f32.gmra.mxu1 %vm183_vm2, %v6818_v33 }
 0x9cd   :  { %6325 = vrot.lane.b32.xlu1 %v9583_v8, %s10331_s26  ;;  %v5252_v22 = vsel %vm109_vm1, %v5245_v6, %v5249_v19  ;;  %6821 = vmatmul.msk.f32.vlgmr.msra.gmra.mxu3 %vm183_vm2, %v6817_v50  ;;  %v5254_v20 = vsel %vm109_vm1, %v9679_v41, %v5245_v6 }
 0x9ce   :  { %6317 = vrot.lane.b32.xlu2 %v9597_v48, %s10331_s26  ;;  %v5263_v4 = vmul.f32 %v5252_v22, %v10456_v55  ;;  %5424 = vmatpush.msra.mxu2 %v5260_v40  ;;  %v10467_v40 = vld [vmem:[#allocation19_spill] sm:$0xff]  ;;  %v10468_v22 = vld [vmem:[#allocation20_spill] sm:$0xff] }
 0x9cf   :  { %v5502_v2 = vpop.permute.xlu1 %5501  ;;  %v9757_v3 = vpop.permute.xlu2 %5656  ;;  %6824 = vmatmul.msk.f32.gmra.mxu0 %vm183_vm2, %v6818_v33 }
 0x9d0   :  { %5493 = vmatpush.msrb.mxu1 %v5263_v4  ;;  %v5521_v14 = vsel %vm366_vm3, %v5502_v2, %v9675_v39 }
 0x9d1   :  { %v5526_v13 = vmul.f32 %v5521_v14, %v10465_v62  ;;  %v6856_v14 = vld [vmem:[%s10165_s20 + $0x48] sm:$0xff] }
 0x9d2   :  { %6319 = vrot.lane.b32.xlu0 %v9565_v45, %s10331_s26 }
 0x9d3   :  { %6820 = vmatmul.msk.f32.gmra.mxu2 %vm183_vm2, %v6818_v33 }
 0x9d4   :  { %v5516_v1 = vpop.permute.xlu0 %5515  ;;  %6833 = vmatmul.msk.f32.vlgmr.msrb.gmra.mxu1 %vm183_vm2, %v5268_v11 }
 0x9d5   :  { %6323 = vrot.lane.b32.xlu1 %v9547_v29, %s10331_s26  ;;  %6822 = vmatmul.msk.f32.gmra.mxu3 %vm183_vm2, %v6818_v33 }
 0x9d6   :  { %6329 = vrot.lane.b32.xlu2 %v9575_v27, %s10331_s26 }
 0x9d7   :  { %v5512_v36 = vpop.permute.xlu1 %5511  ;;  %v9772_v28 = vpop.permute.xlu2 %5654 }
 0x9d8   :  { %v5518_v51 = vsel %vm366_vm3, %v5512_v36, %v5516_v1  ;;  %v5520_v41 = vsel %vm366_vm3, %v5508_v37, %v5512_v36 }
 0x9d9   :  { %v5532_v9 = vmul.f32 %v5518_v51, %v10461_v26  ;;  %v5531_v7 = vmul.f32 %v5520_v41, %v10466_v35 }
 0x9da   :  { %6321 = vrot.lane.b32.xlu0 %v9589_v47, %s10331_s26 }
 0x9db   :  { %5625 = vmatpush.msra.mxu1 %v5532_v9  ;;  %6827 = vmatmul.msk.f32.vlgmr.msra.gmra.mxu2 %vm183_vm2, %v5268_v11  ;;  %v6845_v9 = vld [vmem:[%s10165_s20 + $0x30] sm:$0xff] }
 0x9dc   :  { %v5243_v58 = vpop.permute.xlu0 %5242  ;;  %6834 = vmatmul.msk.f32.gmra.mxu1 %vm183_vm2, %v5269_v17 }
 0x9dd   :  { %v5255_v49 = vsel %vm109_vm1, %v5243_v58, %v9667_v23  ;;  %v5257_v59 = vsel %vm109_vm1, %v9685_v12, %v5243_v58  ;;  %v5262_v12 = vmul.f32 %v5254_v20, %v10463_v16 }
 0x9de   :  { %v5265_v0 = vmul.f32 %v5257_v59, %v10462_v25  ;;  %v5266_v44 = vmul.f32 %v5255_v49, %v10463_v16  ;;  %v10469_v25 = vld [vmem:[#allocation26_spill] sm:$0xff]  ;;  %v10470_v16 = vld [vmem:[#allocation21_spill] sm:$0xff] }
 0x9df   :  { %v5504_v15 = vpop.permute.xlu1 %5503  ;;  %v9799_v31 = vpop.permute.xlu2 %5892 }
 0x9e0   :  { %v5522_v23 = vsel %vm366_vm3, %v5504_v15, %v5508_v37  ;;  %v5524_v55 = vsel %vm366_vm3, %v5516_v1, %v5504_v15  ;;  %5446 = vmatpush.msrb.mxu3 %v5265_v0  ;;  %5469 = vmatpush.msra.mxu0 %v5266_v44  ;;  %v6835_v37 = vld [vmem:[%s10165_s20 + $0x20] sm:$0xff]  ;;  %v10471_v15 = vld [vmem:[#allocation22_spill] sm:$0xff] }
 0x9e1   :  { %v5529_v56 = vmul.f32 %v5524_v55, %v10464_v60  ;;  %v5530_v50 = vmul.f32 %v5522_v23, %v10465_v62 }
 0x9e2   :  { %6327 = vrot.lane.b32.xlu0 %v9551_v32, %s10331_s26  ;;  %5447 = vmatpush.msrb.mxu3 %v5261_v43  ;;  %s6906_s26 = sld [smem:[#allocation3 + $0x7]] }
 0x9e3   :  { %5470 = vmatpush.msra.mxu0 %v5262_v12  ;;  %5556 = vmatpush.msrb.mxu2 %v5529_v56 }
 0x9e4   :  { %6828 = vmatmul.msk.f32.gmra.mxu2 %vm183_vm2, %v5269_v17  ;;  %6829 = vmatmul.msk.f32.vlgmr.msrb.gmra.mxu3 %vm183_vm2, %v5268_v11  ;;  %v5514_v57 = vpop.permute.xlu0 %5513 }
 0x9e5   :  { %6831 = vmatmul.msk.f32.vlgmr.msra.gmra.mxu0 %vm183_vm2, %v5268_v11  ;;  %5579 = vmatpush.msra.mxu3 %v5530_v50  ;;  %v5517_v52 = vsel %vm366_vm3, %v9701_v38, %v5514_v57  ;;  %v5523_v39 = vsel %vm366_vm3, %v5514_v57, %v5502_v2 }
 0x9e6   :  { %5602 = vmatpush.msrb.mxu0 %v5531_v7  ;;  %v5525_v42 = vmul.f32 %v5523_v39, %v10464_v60  ;;  %v5528_v46 = vmul.f32 %v5517_v52, %v10461_v26  ;;  %v6855_v60 = vld [vmem:[%s10165_s20 + $0x40] sm:$0xff]  ;;  %v6865_v39 = vld [vmem:[%s10165_s20 + $0x50] sm:$0xff] }
 0x9e7   :  { %5580 = vmatpush.msra.mxu3 %v5526_v13  ;;  %v5647_v53 = vpop.permute.xlu1 %5646  ;;  %v5907_v19 = vpop.permute.xlu2 %5906  ;;  %v10473_v13 = vld [vmem:[#allocation27_spill] sm:$0xff] }
 0x9e8   :  { %5603 = vmatpush.msrb.mxu0 %v5527_v24  ;;  %5557 = vmatpush.msrb.mxu2 %v5525_v42 }
 0x9e9   :  { %5626 = vmatpush.msra.mxu1 %v5528_v46 }
 0x9ea   :  { %6843 = vmatmul.msk.f32.vlgmr.msra.gmra.mxu1 %vm183_vm2, %v6835_v37 }
 0x9ec   :  { %6830 = vmatmul.msk.f32.gmra.mxu3 %vm183_vm2, %v5269_v17  ;;  %6837 = vmatmul.msk.f32.vlgmr.msrb.gmra.mxu2 %vm183_vm2, %v6835_v37  ;;  %v5643_v38 = vpop.permute.xlu0 %5642 }
 0x9ed   :  { %6832 = vmatmul.msk.f32.gmra.mxu0 %vm183_vm2, %v5269_v17  ;;  %v5662_v54 = vsel %vm499_vm4, %v5643_v38, %v5647_v53  ;;  %v5664_v20 = vsel %vm499_vm4, %v9772_v28, %v5643_v38  ;;  %v10475_v38 = vld [vmem:[#allocation23_spill] sm:$0xff] }
 0x9ee   :  { %v5666_v23 = vmul.f32 %v5664_v20, %v10470_v16 }
 0x9ef   :  { %v5649_v21 = vpop.permute.xlu1 %5648  ;;  %v9840_v5 = vpop.permute.xlu2 %6037 }
 0x9f2   :  { %6844 = vmatmul.msk.f32.gmra.mxu1 %vm183_vm2, %v6836_v30 }
 0x9f4   :  { %6838 = vmatmul.msk.f32.gmra.mxu2 %vm183_vm2, %v6836_v30  ;;  %6839 = vmatmul.msk.f32.vlgmr.msra.gmra.mxu3 %vm183_vm2, %v6835_v37  ;;  %v5653_v33 = vpop.permute.xlu0 %5652 }
 0x9f5   :  { %6841 = vmatmul.msk.f32.vlgmr.msrb.gmra.mxu0 %vm183_vm2, %v6835_v37  ;;  %v5659_v10 = vsel %vm499_vm4, %v5653_v33, %v9757_v3  ;;  %v5661_v63 = vsel %vm499_vm4, %v5649_v21, %v5653_v33 }
 0x9f6   :  { %v5672_v6 = vmul.f32 %v5661_v63, %v10467_v40  ;;  %v5673_v4 = vmul.f32 %v5659_v10, %v10468_v22 }
 0x9f7   :  { %v5651_v2 = vpop.permute.xlu1 %5650  ;;  %v9856_v11 = vpop.permute.xlu2 %5894 }
 0x9f8   :  { %v5658_v1 = vsel %vm499_vm4, %v5651_v2, %v9772_v28  ;;  %v5660_v36 = vsel %vm499_vm4, %v5647_v53, %v5651_v2  ;;  %5743 = vmatpush.msra.mxu0 %v5672_v6  ;;  %5766 = vmatpush.msrb.mxu1 %v5673_v4  ;;  %v5915_v17 = vsel %vm721_vm5, %v5907_v19, %v9856_v11  ;;  %v10476_v2 = vld [vmem:[#allocation29_spill] sm:$0xff] }
 0x9f9   :  { %v5668_v51 = vmul.f32 %v5660_v36, %v10467_v40  ;;  %v5669_v26 = vmul.f32 %v5658_v1, %v10468_v22  ;;  %v5923_v0 = vmul.f32 %v5915_v17, %v10469_v25  ;;  %v5667_v28 = vmul.f32 %v5662_v54, %v10471_v15  ;;  %v10477_v1 = vld [vmem:[#allocation28_spill] sm:$0xff]  ;;  %v10478_v17 = vld [vmem:[#allocation30_spill] sm:$0xff] }
 0x9fb   :  { %5744 = vmatpush.msra.mxu0 %v5668_v51  ;;  %5767 = vmatpush.msrb.mxu1 %v5669_v26  ;;  %v6866_v26 = vld [vmem:[%s10165_s20 + $0x58] sm:$0xff] }
 0x9fc   :  { %6840 = vmatmul.msk.f32.gmra.mxu3 %vm183_vm2, %v6836_v30  ;;  %6853 = vmatmul.msk.f32.vlgmr.msrb.gmra.mxu1 %vm183_vm2, %v6845_v9  ;;  %v5645_v58 = vpop.permute.xlu0 %5644 }
 0x9fd   :  { %6842 = vmatmul.msk.f32.gmra.mxu0 %vm183_vm2, %v6836_v30  ;;  %5875 = vmatpush.msra.mxu1 %v9575_v27  ;;  %v5663_v49 = vsel %vm499_vm4, %v5645_v58, %v5649_v21  ;;  %v5665_v59 = vsel %vm499_vm4, %v9757_v3, %v5645_v58 }
 0x9fe   :  { %5852 = vmatpush.msrb.mxu0 %v9583_v8  ;;  %v5670_v44 = vmul.f32 %v5665_v59, %v10470_v16  ;;  %v5671_v43 = vmul.f32 %v5663_v49, %v10471_v15  ;;  %v6846_v8 = vld [vmem:[%s10165_s20 + $0x38] sm:$0xff]  ;;  %v6875_v15 = vld [vmem:[%s10165_s20 + $0x60] sm:$0xff] }
 0x9ff   :  { %5876 = vmatpush.msra.mxu1 %v9551_v32  ;;  %v5903_v27 = vpop.permute.xlu1 %5902  ;;  %v9895_v55 = vpop.permute.xlu2 %6045  ;;  %v10472_v32 = vld [vmem:[#allocation24_spill] sm:$0xff] }
 0xa00   :  { %5853 = vmatpush.msrb.mxu0 %v9547_v29  ;;  %v5909_v3 = vsel %vm721_vm5, %v5903_v27, %v5907_v19  ;;  %5697 = vmatpush.msra.mxu2 %v5670_v44 }
 0xa01   :  { %6016 = vmatpush.msrb.mxu1 %v5923_v0  ;;  %5720 = vmatpush.msrb.mxu3 %v5671_v43  ;;  %v5922_v12 = vmul.f32 %v5909_v3, %v10472_v32 }
 0xa02   :  { %5698 = vmatpush.msra.mxu2 %v5666_v23  ;;  %v10479_v23 = vld [vmem:[#allocation34_spill] sm:$0xff] }
 0xa03   :  { %5721 = vmatpush.msrb.mxu3 %v5667_v28  ;;  %6847 = vmatmul.msk.f32.vlgmr.msra.gmra.mxu2 %vm183_vm2, %v6845_v9 }
 0xa04   :  { %6849 = vmatmul.msk.f32.vlgmr.msrb.gmra.mxu3 %vm183_vm2, %v6845_v9  ;;  %v5897_v29 = vpop.permute.xlu0 %5896  ;;  %6854 = vmatmul.msk.f32.gmra.mxu1 %vm183_vm2, %v6846_v8 }
 0xa05   :  { %6851 = vmatmul.msk.f32.vlgmr.msra.gmra.mxu0 %vm183_vm2, %v6845_v9  ;;  %5806 = vmatpush.msrb.mxu2 %v9597_v48  ;;  %v5912_v24 = vsel %vm721_vm5, %v9799_v31, %v5897_v29 }
 0xa06   :  { %5829 = vmatpush.msra.mxu3 %v9589_v47  ;;  %5993 = vmatpush.msra.mxu0 %v5922_v12 }
 0xa07   :  { %v5901_v41 = vpop.permute.xlu1 %5900  ;;  %5807 = vmatpush.msrb.mxu2 %v9559_v18  ;;  %v6040_v56 = vpop.permute.xlu2 %6039 }
 0xa08   :  { %5830 = vmatpush.msra.mxu3 %v9565_v45  ;;  %v5910_v46 = vsel %vm721_vm5, %v5897_v29, %v5901_v41 }
 0xa09   :  { %v5917_v63 = vmul.f32 %v5910_v46, %v10475_v38 }
 0xa0b   :  { %6848 = vmatmul.msk.f32.gmra.mxu2 %vm183_vm2, %v6846_v8 }
 0xa0c   :  { %6850 = vmatmul.msk.f32.gmra.mxu3 %vm183_vm2, %v6846_v8  ;;  %v5905_v62 = vpop.permute.xlu0 %5904  ;;  %6863 = vmatmul.msk.f32.vlgmr.msra.gmra.mxu1 %vm183_vm2, %v6855_v60 }
 0xa0d   :  { %6852 = vmatmul.msk.f32.gmra.mxu0 %vm183_vm2, %v6846_v8  ;;  %v5908_v47 = vsel %vm721_vm5, %v5901_v41, %v5905_v62  ;;  %v5914_v18 = vsel %vm721_vm5, %v5905_v62, %v9799_v31  ;;  %v10474_v31 = vld [vmem:[#allocation25_spill] sm:$0xff]  ;;  %v10480_v41 = vld [vmem:[#allocation31_spill] sm:$0xff] }
 0xa0e   :  { %v5918_v45 = vmul.f32 %v5908_v47, %v10472_v32  ;;  %v5919_v48 = vmul.f32 %v5914_v18, %v10469_v25  ;;  %v5916_v30 = vmul.f32 %v5912_v24, %v10474_v31 }
 0xa0f   :  { %v6034_v50 = vpop.permute.xlu1 %6033  ;;  %v9928_v35 = vpop.permute.xlu2 %6184 }
 0xa10   :  { %5994 = vmatpush.msra.mxu0 %v5918_v45  ;;  %6017 = vmatpush.msrb.mxu1 %v5919_v48  ;;  %v6055_v22 = vsel %vm854_vm6, %v9895_v55, %v6034_v50  ;;  %v6053_v51 = vsel %vm854_vm6, %v6034_v50, %v9840_v5 }
 0xa11   :  { %v6060_v9 = vmul.f32 %v6055_v22, %v10477_v1  ;;  %v6057_v49 = vmul.f32 %v6053_v51, %v10476_v2 }
 0xa13   :  { %6857 = vmatmul.msk.f32.vlgmr.msrb.gmra.mxu2 %vm183_vm2, %v6855_v60 }
 0xa14   :  { %6859 = vmatmul.msk.f32.vlgmr.msra.gmra.mxu3 %vm183_vm2, %v6855_v60  ;;  %v6044_v34 = vpop.permute.xlu0 %6043  ;;  %6864 = vmatmul.msk.f32.gmra.mxu1 %vm183_vm2, %v6856_v14 }
 0xa15   :  { %6861 = vmatmul.msk.f32.vlgmr.msrb.gmra.mxu0 %vm183_vm2, %v6855_v60  ;;  %v6052_v4 = vsel %vm854_vm6, %v6040_v56, %v6044_v34 }
 0xa16   :  { %v6062_v58 = vmul.f32 %v6052_v4, %v10478_v17 }
 0xa17   :  { %v6048_v7 = vpop.permute.xlu1 %6047  ;;  %v6183_v33 = vpop.permute.xlu2 %6182 }
 0xa18   :  { %v6050_v57 = vsel %vm854_vm6, %v6044_v34, %v6048_v7 }
 0xa19   :  { %v6063_v52 = vmul.f32 %v6050_v57, %v10473_v13  ;;  %v10482_v57 = vld [vmem:[#allocation32_spill] sm:$0xff] }
 0xa1b   :  { %6134 = vmatpush.msrb.mxu0 %v6063_v52  ;;  %6858 = vmatmul.msk.f32.gmra.mxu2 %vm183_vm2, %v6856_v14 }
 0xa1c   :  { %6860 = vmatmul.msk.f32.gmra.mxu3 %vm183_vm2, %v6856_v14  ;;  %v5899_v42 = vpop.permute.xlu0 %5898  ;;  %6873 = vmatmul.msk.f32.vlgmr.msrb.gmra.mxu1 %vm183_vm2, %v6865_v39 }
 0xa1d   :  { %6862 = vmatmul.msk.f32.gmra.mxu0 %vm183_vm2, %v6856_v14  ;;  %v5911_v53 = vsel %vm721_vm5, %v5899_v42, %v5903_v27  ;;  %v5913_v19 = vsel %vm721_vm5, %v9856_v11, %v5899_v42 }
 0xa1e   :  { %v5920_v37 = vmul.f32 %v5913_v19, %v10474_v31  ;;  %v5921_v21 = vmul.f32 %v5911_v53, %v10475_v38  ;;  %v6885_v53 = vld [vmem:[%s10165_s20 + $0x70] sm:$0xff]  ;;  %v10483_v19 = vld [vmem:[#allocation36_spill] sm:$0xff] }
 0xa1f   :  { %v6036_v10 = vpop.permute.xlu1 %6035  ;;  %v10484_v38 = vld [vmem:[#allocation38_spill] sm:$0xff] }
 0xa20   :  { %v6054_v40 = vsel %vm854_vm6, %v6036_v10, %v6040_v56  ;;  %v6056_v6 = vsel %vm854_vm6, %v6048_v7, %v6036_v10  ;;  %5947 = vmatpush.msra.mxu2 %v5920_v37  ;;  %5970 = vmatpush.msrb.mxu3 %v5921_v21  ;;  %v9988_v44 = vpop.permute.xlu2 %6315 }
 0xa21   :  { %v6061_v11 = vmul.f32 %v6054_v40, %v10476_v2  ;;  %v6064_v36 = vmul.f32 %v6056_v6, %v10477_v1 }
 0xa22   :  { %5948 = vmatpush.msra.mxu2 %v5916_v30  ;;  %5971 = vmatpush.msrb.mxu3 %v5917_v63 }
 0xa23   :  { %6157 = vmatpush.msra.mxu1 %v6064_v36  ;;  %6867 = vmatmul.msk.f32.vlgmr.msra.gmra.mxu2 %vm183_vm2, %v6865_v39  ;;  %v10486_v36 = vld [vmem:[#allocation35_spill] sm:$0xff] }
 0xa24   :  { %6088 = vmatpush.msrb.mxu2 %v6061_v11  ;;  %6869 = vmatmul.msk.f32.vlgmr.msrb.gmra.mxu3 %vm183_vm2, %v6865_v39  ;;  %v6042_v54 = vpop.permute.xlu0 %6041  ;;  %v10485_v11 = vld [vmem:[#allocation37_spill] sm:$0xff] }
 0xa25   :  { %6871 = vmatmul.msk.f32.vlgmr.msra.gmra.mxu0 %vm183_vm2, %v6865_v39  ;;  %6874 = vmatmul.msk.f32.gmra.mxu1 %vm183_vm2, %v6866_v26  ;;  %v6049_v59 = vsel %vm854_vm6, %v6042_v54, %v9895_v55  ;;  %v6051_v20 = vsel %vm854_vm6, %v9840_v5, %v6042_v54  ;;  %v6876_v55 = vld [vmem:[%s10165_s20 + $0x68] sm:$0xff]  ;;  %v6895_v54 = vld [vmem:[%s10165_s20 + $0x80] sm:$0xff] }
 0xa26   :  { %6111 = vmatpush.msra.mxu3 %v6062_v58  ;;  %6158 = vmatpush.msra.mxu1 %v6060_v9  ;;  %v6058_v25 = vmul.f32 %v6051_v20, %v10478_v17  ;;  %v6059_v0 = vmul.f32 %v6049_v59, %v10473_v13 }
 0xa27   :  { %6089 = vmatpush.msrb.mxu2 %v6057_v49  ;;  %v6179_v16 = vpop.permute.xlu1 %6178 }
 0xa28   :  { %6112 = vmatpush.msra.mxu3 %v6058_v25  ;;  %6135 = vmatpush.msrb.mxu0 %v6059_v0  ;;  %v6192_v3 = vsel %vm987_vm7, %v6179_v16, %v6183_v33  ;;  %v6318_v8 = vpop.permute.xlu2 %6317 }
 0xa29   :  { %v6199_v32 = vmul.f32 %v6192_v3, %v10479_v23  ;;  %v6896_v3 = vld [vmem:[%s10165_s20 + $0x88] sm:$0xff] }
 0xa2b   :  { %6868 = vmatmul.msk.f32.gmra.mxu2 %vm183_vm2, %v6866_v26 }
 0xa2c   :  { %6870 = vmatmul.msk.f32.gmra.mxu3 %vm183_vm2, %v6866_v26  ;;  %v6175_v5 = vpop.permute.xlu0 %6174 }
 0xa2d   :  { %6872 = vmatmul.msk.f32.gmra.mxu0 %vm183_vm2, %v6866_v26  ;;  %6883 = vmatmul.msk.f32.vlgmr.msra.gmra.mxu1 %vm183_vm2, %v6875_v15  ;;  %v6194_v18 = vsel %vm987_vm7, %v6175_v5, %v6179_v16 }
 0xa2f   :  { %v6181_v43 = vpop.permute.xlu1 %6180 }
 0xa30   :  { %v6193_v27 = vsel %vm987_vm7, %v6181_v43, %v9928_v35  ;;  %v6330_v48 = vpop.permute.xlu2 %6329 }
 0xa31   :  { %v6203_v28 = vmul.f32 %v6193_v27, %v10479_v23  ;;  %v6338_v24 = vsel %vm1120_vm8, %v6330_v48, %v6318_v8 }
 0xa32   :  { %v6346_v21 = vmul.f32 %v6338_v24, %v10484_v38 }
 0xa33   :  { %6252 = vmatpush.msrb.mxu3 %v6203_v28  ;;  %6877 = vmatmul.msk.f32.vlgmr.msrb.gmra.mxu2 %vm183_vm2, %v6875_v15 }
 0xa34   :  { %6879 = vmatmul.msk.f32.vlgmr.msra.gmra.mxu3 %vm183_vm2, %v6875_v15  ;;  %v6189_v12 = vpop.permute.xlu0 %6188 }
 0xa35   :  { %6881 = vmatmul.msk.f32.vlgmr.msrb.gmra.mxu0 %vm183_vm2, %v6875_v15  ;;  %6884 = vmatmul.msk.f32.gmra.mxu1 %vm183_vm2, %v6876_v55  ;;  %v6191_v29 = vsel %vm987_vm7, %v9928_v35, %v6189_v12  ;;  %v10481_v35 = vld [vmem:[#allocation33_spill] sm:$0xff] }
 0xa36   :  { %6253 = vmatpush.msrb.mxu3 %v6199_v32  ;;  %v6204_v60 = vmul.f32 %v6191_v29, %v10480_v41  ;;  %v6198_v52 = vmul.f32 %v6194_v18, %v10481_v35 }
 0xa37   :  { %v6187_v56 = vpop.permute.xlu1 %6186 }
 0xa38   :  { %v6190_v62 = vsel %vm987_vm7, %v6183_v33, %v6187_v56  ;;  %6275 = vmatpush.msra.mxu0 %v6204_v60  ;;  %v6196_v50 = vsel %vm987_vm7, %v6187_v56, %v6175_v5  ;;  %v6886_v33 = vld [vmem:[%s10165_s20 + $0x78] sm:$0xff]  ;;  %s6905_s20 = sld [smem:[#allocation3 + $0x6]] }
 0xa39   :  { %v6200_v47 = vmul.f32 %v6190_v62, %v10480_v41  ;;  %v6201_v42 = vmul.f32 %v6196_v50, %v10482_v57 }
 0xa3b   :  { %6276 = vmatpush.msra.mxu0 %v6200_v47  ;;  %6878 = vmatmul.msk.f32.gmra.mxu2 %vm183_vm2, %v6876_v55 }
 0xa3c   :  { %6880 = vmatmul.msk.f32.gmra.mxu3 %vm183_vm2, %v6876_v55  ;;  %v6177_v45 = vpop.permute.xlu0 %6176 }
 0xa3d   :  { %6882 = vmatmul.msk.f32.gmra.mxu0 %vm183_vm2, %v6876_v55  ;;  %v6195_v14 = vsel %vm987_vm7, %v6177_v45, %v6181_v43  ;;  %v6197_v34 = vsel %vm987_vm7, %v6189_v12, %v6177_v45 }
 0xa3e   :  { %v6202_v7 = vmul.f32 %v6195_v14, %v10481_v35  ;;  %v6205_v13 = vmul.f32 %v6197_v34, %v10482_v57 }
 0xa3f   :  { %v6326_v39 = vpop.permute.xlu1 %6325 }
 0xa40   :  { %v6332_v46 = vsel %vm1120_vm8, %v6326_v39, %v6330_v48  ;;  %6229 = vmatpush.msra.mxu2 %v6202_v7  ;;  %6298 = vmatpush.msrb.mxu1 %v6205_v13  ;;  %v5397_v37 = vpop.f32.mrf.mxu1 }
 0xa41   :  { %v6345_v31 = vmul.f32 %v6332_v46, %v10483_v19 }
 0xa42   :  { %6230 = vmatpush.msra.mxu2 %v6198_v52  ;;  %6299 = vmatpush.msrb.mxu1 %v6201_v42 }
 0xa43   :  { %6416 = vmatpush.msrb.mxu0 %v6345_v31  ;;  %6893 = vmatmul.msk.f32.vlgmr.msrb.gmra.mxu1 %vm183_vm2, %v6885_v53  ;;  %v5374_v9 = vpop.f32.mrf.mxu0 }
 0xa44   :  { %6887 = vmatmul.msk.f32.vlgmr.msra.gmra.mxu2 %vm183_vm2, %v6885_v53  ;;  %6889 = vmatmul.msk.f32.vlgmr.msrb.gmra.mxu3 %vm183_vm2, %v6885_v53  ;;  %v6320_v30 = vpop.permute.xlu0 %6319 }
 0xa45   :  { %6891 = vmatmul.msk.f32.vlgmr.msra.gmra.mxu0 %vm183_vm2, %v6885_v53  ;;  %6439 = vmatpush.msra.mxu1 %v6346_v21  ;;  %v6335_v6 = vsel %vm1120_vm8, %v9988_v44, %v6320_v30 }
 0xa46   :  { %v6339_v17 = vmul.f32 %v6335_v6, %v10485_v11 }
 0xa47   :  { %v6324_v63 = vpop.permute.xlu1 %6323 }
 0xa48   :  { %v6333_v22 = vsel %vm1120_vm8, %v6320_v30, %v6324_v63 }
 0xa49   :  { %v5400_v10 = vpop.f32.mrf.mxu1  ;;  %v6340_v58 = vmul.f32 %v6333_v22, %v10486_v36 }
 0xa4b   :  { %6894 = vmatmul.msk.f32.gmra.mxu1 %vm183_vm2, %v6886_v33 }
 0xa4c   :  { %6888 = vmatmul.msk.f32.gmra.mxu2 %vm183_vm2, %v6886_v33  ;;  %6890 = vmatmul.msk.f32.gmra.mxu3 %vm183_vm2, %v6886_v33  ;;  %v6322_v40 = vpop.permute.xlu0 %6321  ;;  %v5377_v27 = vpop.f32.mrf.mxu0 }
 0xa4d   :  { %6892 = vmatmul.msk.f32.gmra.mxu0 %vm183_vm2, %v6886_v33  ;;  %v6334_v4 = vsel %vm1120_vm8, %v6322_v40, %v6326_v39  ;;  %v6336_v2 = vsel %vm1120_vm8, %v6318_v8, %v6322_v40 }
 0xa4e   :  { %v6343_v1 = vmul.f32 %v6336_v2, %v10485_v11  ;;  %v6344_v51 = vmul.f32 %v6334_v4, %v10486_v36  ;;  %v5328_v26 = vpop.f32.mrf.mxu2 }
 0xa50   :  { %6370 = vmatpush.msrb.mxu2 %v6343_v1  ;;  %6393 = vmatpush.msra.mxu3 %v6344_v51  ;;  %v5351_v20 = vpop.f32.mrf.mxu3 }
 0xa51   :  { %v5495_v49 = vpop.f32.mrf.mxu1 }
 0xa52   :  { %6371 = vmatpush.msrb.mxu2 %v6339_v17  ;;  %6394 = vmatpush.msra.mxu3 %v6340_v58  ;;  %v5496_v59 = vadd.f32 %v5495_v49, %v5397_v37 }
 0xa54   :  { %6897 = vmatmul.msk.f32.vlgmr.msrb.gmra.mxu2 %vm183_vm2, %v6895_v54  ;;  %6899 = vmatmul.msk.f32.vlgmr.msra.gmra.mxu3 %vm183_vm2, %v6895_v54  ;;  %v6328_v25 = vpop.permute.xlu0 %6327 }
 0xa55   :  { %v6331_v0 = vsel %vm1120_vm8, %v6324_v63, %v6328_v25  ;;  %v6337_v16 = vsel %vm1120_vm8, %v6328_v25, %v9988_v44 }
 0xa56   :  { %v6341_v15 = vmul.f32 %v6331_v0, %v10483_v19  ;;  %v6342_v5 = vmul.f32 %v6337_v16, %v10484_v38  ;;  %v5331_v43 = vpop.f32.mrf.mxu2 }
 0xa58   :  { %6417 = vmatpush.msrb.mxu0 %v6341_v15  ;;  %6440 = vmatpush.msra.mxu1 %v6342_v5  ;;  %v5354_v61 = vpop.f32.mrf.mxu3 }
 0xa59   :  { %6901 = vmatmul.msk.f32.vlgmr.msrb.gmra.mxu0 %vm183_vm2, %v6895_v54  ;;  %6903 = vmatmul.msk.f32.vlgmr.msra.gmra.mxu1 %vm183_vm2, %v6895_v54  ;;  %v5498_v23 = vpop.f32.mrf.mxu1 }
 0xa5a   :  { %v5499_v28 = vadd.f32 %v5498_v23, %v5400_v10 }
 0xa5c   :  { %6898 = vmatmul.msk.f32.gmra.mxu2 %vm183_vm2, %v6896_v3  ;;  %6900 = vmatmul.msk.f32.gmra.mxu3 %vm183_vm2, %v6896_v3 }
 0xa5e   :  { %v5426_v44 = vpop.f32.mrf.mxu2 }
 0xa5f   :  { %v5427_v55 = vadd.f32 %v5426_v44, %v5328_v26 }
 0xa61   :  { %6902 = vmatmul.msk.f32.gmra.mxu0 %vm183_vm2, %v6896_v3  ;;  %6904 = vmatmul.msk.f32.gmra.mxu1 %vm183_vm2, %v6896_v3 }
 0xa62   :  { %v5472_v8 = vpop.f32.mrf.mxu0 }
 0xa63   :  { %v5473_v32 = vadd.f32 %v5472_v8, %v5374_v9 }
 0xa67   :  { %v5429_v12 = vpop.f32.mrf.mxu2  ;;  %v5449_v29 = vpop.f32.mrf.mxu3 }
 0xa68   :  { %v5430_v41 = vadd.f32 %v5429_v12, %v5331_v43  ;;  %v5450_v60 = vadd.f32 %v5449_v29, %v5351_v20  ;;  %v5628_v56 = vpop.f32.mrf.mxu1 }
 0xa69   :  { %v5637_v62 = vadd.f32 %v5628_v56, %v5496_v59 }
 0xa6a   :  { %v5475_v47 = vpop.f32.mrf.mxu0 }
 0xa6b   :  { %v5476_v18 = vadd.f32 %v5475_v47, %v5377_v27 }
 0xa6f   :  { %v5452_v45 = vpop.f32.mrf.mxu3  ;;  %v5559_v48 = vpop.f32.mrf.mxu2 }
 0xa70   :  { %v5453_v50 = vadd.f32 %v5452_v45, %v5354_v61  ;;  %v5634_v14 = vadd.f32 %v5559_v48, %v5427_v55  ;;  %v5631_v34 = vpop.f32.mrf.mxu1 }
 0xa71   :  { %v5641_v35 = vadd.f32 %v5631_v34, %v5499_v28 }
 0xa72   :  { %v5605_v7 = vpop.f32.mrf.mxu0 }
 0xa73   :  { %v5636_v57 = vadd.f32 %v5605_v7, %v5473_v32 }
 0xa77   :  { %v5562_v13 = vpop.f32.mrf.mxu2  ;;  %v5582_v52 = vpop.f32.mrf.mxu3 }
 0xa78   :  { %v5638_v39 = vadd.f32 %v5562_v13, %v5430_v41  ;;  %v5635_v24 = vadd.f32 %v5582_v52, %v5450_v60 }
 0xa79   :  { %v5769_v42 = vpop.f32.mrf.mxu1 }
 0xa7a   :  { %v5608_v46 = vpop.f32.mrf.mxu0  ;;  %v5778_v53 = vadd.f32 %v5769_v42, %v5637_v62 }
 0xa7b   :  { %v5640_v19 = vadd.f32 %v5608_v46, %v5476_v18 }
 0xa7f   :  { %v5585_v31 = vpop.f32.mrf.mxu3 }
 0xa80   :  { %v5639_v37 = vadd.f32 %v5585_v31, %v5453_v50 }
 0xa81   :  { %v5772_v21 = vpop.f32.mrf.mxu1 }
 0xa82   :  { %v5746_v38 = vpop.f32.mrf.mxu0  ;;  %v5782_v33 = vadd.f32 %v5772_v21, %v5641_v35 }
 0xa83   :  { %v5777_v30 = vadd.f32 %v5746_v38, %v5636_v57 }
 0xa86   :  { %v5700_v10 = vpop.f32.mrf.mxu2 }
 0xa87   :  { %v5723_v63 = vpop.f32.mrf.mxu3  ;;  %v5775_v40 = vadd.f32 %v5700_v10, %v5634_v14 }
 0xa88   :  { %v5776_v6 = vadd.f32 %v5723_v63, %v5635_v24  ;;  %v10087_v63 = vstv %s6905_s20 }
 0xa89   :  { %v5878_v4 = vpop.f32.mrf.mxu1 }
 0xa8a   :  { %v5749_v22 = vpop.f32.mrf.mxu0  ;;  %v5887_v47 = vadd.f32 %v5878_v4, %v5778_v53 }
 0xa8b   :  { %v5781_v2 = vadd.f32 %v5749_v22, %v5640_v19 }
 0xa8e   :  { %v5703_v11 = vpop.f32.mrf.mxu2 }
 0xa8f   :  { %v5726_v1 = vpop.f32.mrf.mxu3  ;;  %v5779_v36 = vadd.f32 %v5703_v11, %v5638_v39 }
 0xa90   :  { %v5780_v51 = vadd.f32 %v5726_v1, %v5639_v37 }
 0xa91   :  { %v5881_v9 = vpop.f32.mrf.mxu1 }
 0xa92   :  { %v5855_v26 = vpop.f32.mrf.mxu0  ;;  %v5891_v13 = vadd.f32 %v5881_v9, %v5782_v33  ;;  %v6475_v9 = vstv %s6906_s26 }
 0xa93   :  { %v5886_v18 = vadd.f32 %v5855_v26, %v5777_v30 }
 0xa96   :  { %v5809_v17 = vpop.f32.mrf.mxu2 }
 0xa97   :  { %v5832_v58 = vpop.f32.mrf.mxu3  ;;  %v5884_v50 = vadd.f32 %v5809_v17, %v5775_v40  ;;  %v6936_v17 = vld [vmem:[%s10295_s30] sm:$0xff] }
 0xa98   :  { %v5885_v14 = vadd.f32 %v5832_v58, %v5776_v6  ;;  %v6466_v58 = vmul.f32 %v6936_v17, %v10087_v63 }
 0xa99   :  { %v6019_v49 = vpop.f32.mrf.mxu1 }
 0xa9a   :  { %v5858_v54 = vpop.f32.mrf.mxu0  ;;  %v6028_v34 = vadd.f32 %v6019_v49, %v5887_v47  ;;  %v6937_v49 = vld [vmem:[%s10295_s30 + $0x10] sm:$0xff] }
 0xa9b   :  { %v5890_v24 = vadd.f32 %v5858_v54, %v5781_v2 }
 0xa9e   :  { %v5812_v59 = vpop.f32.mrf.mxu2 }
 0xa9f   :  { %v5835_v20 = vpop.f32.mrf.mxu3  ;;  %v5888_v42 = vadd.f32 %v5812_v59, %v5779_v36  ;;  %v6468_v59 = vmul.f32 %v6937_v49, %v10087_v63 }
 0xaa0   :  { %v5889_v31 = vadd.f32 %v5835_v20, %v5780_v51 }
 0xaa2   :  { %v5996_v25 = vpop.f32.mrf.mxu0  ;;  %v6022_v15 = vpop.f32.mrf.mxu1 }
 0xaa3   :  { %v6027_v35 = vadd.f32 %v5996_v25, %v5886_v18  ;;  %v6032_v37 = vadd.f32 %v6022_v15, %v5891_v13 }
 0xaa6   :  { %v5950_v0 = vpop.f32.mrf.mxu2 }
 0xaa7   :  { %v5973_v16 = vpop.f32.mrf.mxu3  ;;  %v6025_v7 = vadd.f32 %v5950_v0, %v5884_v50 }
 0xaa8   :  { %v6026_v57 = vadd.f32 %v5973_v16, %v5885_v14  ;;  %v6938_v16 = vld [vmem:[%s10295_s30 + $0x8] sm:$0xff] }
 0xaa9   :  { %v6467_v15 = vmul.f32 %v6938_v16, %v10087_v63 }
 0xaaa   :  { %v5999_v5 = vpop.f32.mrf.mxu0  ;;  %v6160_v3 = vpop.f32.mrf.mxu1 }
 0xaab   :  { %v6169_v52 = vadd.f32 %v6160_v3, %v6028_v34  ;;  %v6031_v21 = vadd.f32 %v5999_v5, %v5890_v24  ;;  %v6939_v5 = vld [vmem:[%s10295_s30 + $0x18] sm:$0xff] }
 0xaae   :  { %v5953_v43 = vpop.f32.mrf.mxu2 }
 0xaaf   :  { %v5976_v27 = vpop.f32.mrf.mxu3  ;;  %v6029_v22 = vadd.f32 %v5953_v43, %v5888_v42  ;;  %v6469_v43 = vmul.f32 %v6939_v5, %v10087_v63 }
 0xab0   :  { %v6030_v4 = vadd.f32 %v5976_v27, %v5889_v31 }
 0xab2   :  { %v6137_v23 = vpop.f32.mrf.mxu0  ;;  %v6163_v55 = vpop.f32.mrf.mxu1 }
 0xab3   :  { %v6168_v39 = vadd.f32 %v6137_v23, %v6027_v35  ;;  %v6173_v36 = vadd.f32 %v6163_v55, %v6032_v37  ;;  %v6943_v37 = vld [vmem:[%s10295_s30 + $0x38] sm:$0xff] }
 0xab6   :  { %v6091_v28 = vpop.f32.mrf.mxu2 }
 0xab7   :  { %v6114_v61 = vpop.f32.mrf.mxu3  ;;  %v6166_v46 = vadd.f32 %v6091_v28, %v6025_v7 }
 0xab8   :  { %v6167_v19 = vadd.f32 %v6114_v61, %v6026_v57 }
 0xaba   :  { %v6140_v44 = vpop.f32.mrf.mxu0 }
 0xabb   :  { %v6172_v27 = vadd.f32 %v6140_v44, %v6031_v21 }
 0xabe   :  { %v6094_v8 = vpop.f32.mrf.mxu2 }
 0xabf   :  { %v6117_v32 = vpop.f32.mrf.mxu3  ;;  %v6170_v3 = vadd.f32 %v6094_v8, %v6029_v22 }
 0xac0   :  { %v6301_v29 = vpop.f32.mrf.mxu1  ;;  %v6171_v61 = vadd.f32 %v6117_v32, %v6030_v4 }
 0xac1   :  { %v6310_v38 = vadd.f32 %v6301_v29, %v6169_v52  ;;  %v6941_v52 = vld [vmem:[%s10295_s30 + $0x30] sm:$0xff] }
 0xac2   :  { %v6278_v12 = vpop.f32.mrf.mxu0 }
 0xac3   :  { %v6309_v53 = vadd.f32 %v6278_v12, %v6168_v39  ;;  %v6472_v39 = vmul.f32 %v6941_v52, %v10087_v63 }
 0xac7   :  { %v6232_v41 = vpop.f32.mrf.mxu2  ;;  %v6255_v60 = vpop.f32.mrf.mxu3 }
 0xac8   :  { %v6304_v62 = vpop.f32.mrf.mxu1  ;;  %v6307_v30 = vadd.f32 %v6232_v41, %v6166_v46  ;;  %v6308_v10 = vadd.f32 %v6255_v60, %v6167_v19  ;;  %v6942_v19 = vld [vmem:[%s10295_s30 + $0x28] sm:$0xff] }
 0xac9   :  { %v6314_v41 = vadd.f32 %v6304_v62, %v6173_v36  ;;  %v6471_v31 = vmul.f32 %v6942_v19, %v10087_v63 }
 0xaca   :  { %v6281_v56 = vpop.f32.mrf.mxu0 }
 0xacb   :  { %v6313_v29 = vadd.f32 %v6281_v56, %v6172_v27 }
 0xacf   :  { %v6235_v45 = vpop.f32.mrf.mxu2  ;;  %v6258_v48 = vpop.f32.mrf.mxu3 }
 0xad0   :  { %v6311_v60 = vadd.f32 %v6235_v45, %v6170_v3  ;;  %v6312_v18 = vadd.f32 %v6258_v48, %v6171_v61  ;;  %v6940_v45 = vld [vmem:[%s10295_s30 + $0x20] sm:$0xff] }
 0xad1   :  { %v6470_v48 = vmul.f32 %v6940_v45, %v10087_v63 }
 0xad6   :  { %v6419_v40 = vpop.f32.mrf.mxu0  ;;  %v6442_v6 = vpop.f32.mrf.mxu1 }
 0xad7   :  { %v6373_v33 = vpop.f32.mrf.mxu2  ;;  %v6396_v11 = vpop.f32.mrf.mxu3  ;;  %v6450_v1 = vadd.f32 %v6419_v40, %v6309_v53  ;;  %v6451_v2 = vadd.f32 %v6442_v6, %v6310_v38  ;;  %v6473_v53 = vmul.f32 %v6943_v37, %v10087_v63 }
 0xad8   :  { %v6448_v26 = vadd.f32 %v6373_v33, %v6307_v30  ;;  %v6449_v51 = vadd.f32 %v6396_v11, %v6308_v10 }
 0xad9   :  { %v6458_v54 = vmax.f32 %v6450_v1, 0.0  ;;  %v6459_v20 = vmax.f32 %v6451_v2, 0.0 }
 0xada   :  { %v6456_v25 = vmax.f32 %v6448_v26, 0.0  ;;  %v6457_v0 = vmax.f32 %v6449_v51, 0.0 }
 0xadb   :  { %v6478_v23 = vmul.f32 %v6475_v9, %v6458_v54  ;;  %v6479_v28 = vmul.f32 %v6475_v9, %v6459_v20 }
 0xadc   :  { %v6476_v55 = vmul.f32 %v6475_v9, %v6456_v25  ;;  %v6477_v12 = vmul.f32 %v6475_v9, %v6457_v0 }
 0xadd   :  { %v6486_v47 = vadd.f32 %v6478_v23, %v6468_v59  ;;  %v6487_v34 = vadd.f32 %v6479_v28, %v6469_v43 }
 0xade   :  { %v6484_v50 = vadd.f32 %v6476_v55, %v6466_v58  ;;  %v6485_v14 = vadd.f32 %v6477_v12, %v6467_v15  ;;  %v6422_v35 = vpop.f32.mrf.mxu0  ;;  %v6445_v7 = vpop.f32.mrf.mxu1 }
 0xadf   :  { %6494 = vst [vmem:[%s10166_s21 + $0x10] sm:$0xff] %v6486_v47  ;;  %v6376_v44 = vpop.f32.mrf.mxu2  ;;  %v6399_v8 = vpop.f32.mrf.mxu3  ;;  %v6454_v57 = vadd.f32 %v6422_v35, %v6313_v29  ;;  %v6455_v32 = vadd.f32 %v6445_v7, %v6314_v41 }
 0xae0   :  { %6492 = vst [vmem:[%s10166_s21] sm:$0xff] %v6484_v50  ;;  %v6452_v56 = vadd.f32 %v6376_v44, %v6311_v60  ;;  %v6453_v62 = vadd.f32 %v6399_v8, %v6312_v18 }
 0xae1   :  { %6493 = vst [vmem:[%s10166_s21 + $0x8] sm:$0xff] %v6485_v14  ;;  %v6462_v13 = vmax.f32 %v6454_v57, 0.0  ;;  %v6463_v24 = vmax.f32 %v6455_v32, 0.0 }
 0xae2   :  { %6495 = vst [vmem:[%s10166_s21 + $0x18] sm:$0xff] %v6487_v34  ;;  %v6460_v42 = vmax.f32 %v6452_v56, 0.0  ;;  %v6461_v46 = vmax.f32 %v6453_v62, 0.0 }
 0xae3   :  { %v6482_v38 = vmul.f32 %v6475_v9, %v6462_v13  ;;  %v6483_v21 = vmul.f32 %v6475_v9, %v6463_v24 }
 0xae4   :  { %v6480_v30 = vmul.f32 %v6475_v9, %v6460_v42  ;;  %v6481_v10 = vmul.f32 %v6475_v9, %v6461_v46 }
 0xae5   :  { %v6490_v40 = vadd.f32 %v6482_v38, %v6472_v39  ;;  %v6491_v4 = vadd.f32 %v6483_v21, %v6473_v53 }
 0xae6   :  { %v6488_v6 = vadd.f32 %v6480_v30, %v6470_v48  ;;  %v6489_v22 = vadd.f32 %v6481_v10, %v6471_v31 }
 0xae7   :  { %6498 = vst [vmem:[%s10166_s21 + $0x30] sm:$0xff] %v6490_v40 }
 0xae8   :  { %6496 = vst [vmem:[%s10166_s21 + $0x20] sm:$0xff] %v6488_v6 }
 0xae9   :  { %6497 = vst [vmem:[%s10166_s21 + $0x28] sm:$0xff] %v6489_v22 }
 0xaea   :  { %6499 = vst [vmem:[%s10166_s21 + $0x38] sm:$0xff] %v6491_v4 }
 0xaeb   :  { %6504 = vsyncpa [#allocation4], 1 }

</bundles_post_ra>
